<compile_context>
chip_gen: v6e
topology: v6e:2x2x1
jax: 0.10.0
libtpu: 0.0.40
codegen_flags: <defaults>
</compile_context>

<pallas_src>
import functools

import jax
import jax.numpy as jnp
from jax import lax
from jax.experimental import pallas as pl
from jax.experimental.pallas import tpu as pltpu

_LANE = 128      # lane width: last-dim alignment
_SUBLANE = 8     # sublane width: second-to-last-dim alignment
_VMEM_BUDGET = 40 * 1024 * 1024   # per-chunk working-set target (fits v7x 64 MiB)


def _round_up(n, m):
    return (n + m - 1) // m * m


def _pad_gate_cols(w, H, Hp):
    """Pad the gate axis (..., 4H) -> (..., 4Hp): each [i|f|g|o] block is
    zero-padded from H to Hp so gates split on 128-lane boundaries."""
    if H == Hp:
        return w
    lead = w.shape[:-1]
    w4 = w.reshape(lead + (4, H))
    pad = [(0, 0)] * len(lead) + [(0, 0), (0, Hp - H)]
    return jnp.pad(w4, pad).reshape(lead + (4 * Hp,))


def _chunk_vmem_bytes(tc, Bp, Hp, Ip, mm_bytes):
    """Approximate VMEM working set for one grid step (both directions)."""
    G = 4 * Hp
    x_stream = 2 * 2 * tc * Bp * Ip * mm_bytes       # 2 dirs x double buffer
    out_stream = 2 * 2 * tc * Bp * Hp * 4
    weights = 2 * 2 * (Ip + Hp) * G * mm_bytes       # W_ih + W_hh, 2 dirs, 2 bufs
    bias = 2 * 2 * G * 4
    gate_scratch = 2 * tc * Bp * G * 4               # fused-projection scratch
    state_scratch = 4 * Bp * Hp * 4                  # h/c per direction
    return x_stream + out_stream + weights + bias + gate_scratch + state_scratch


def _pick_time_chunk(T, Bp, Hp, Ip, mm_bytes, budget=_VMEM_BUDGET, max_chunk=64):
    """Largest chunk that fits the VMEM budget; T is padded up (no exact-divisor
    requirement), then the chunk is re-balanced to minimize time padding."""
    tc = 1
    for cand in range(1, min(T, max_chunk) + 1):
        if _chunk_vmem_bytes(cand, Bp, Hp, Ip, mm_bytes) <= budget:
            tc = cand
    nc = -(-T // tc)          # number of chunks
    tc = -(-T // nc)          # re-balance: padding < nc steps
    return tc, nc


# ----------------------------------------------------------------------------
# Kernel: fused bidirectional recurrence over one time chunk, with the input
# projection computed in-kernel per chunk.
# ----------------------------------------------------------------------------
def _bilstm_kernel(x_f_ref, x_b_ref, wih_f_ref, wih_b_ref,
                   whh_f_ref, whh_b_ref, b_f_ref, b_b_ref,
                   out_f_ref, out_b_ref,
                   h_f, c_f, h_b, c_b, g_f, g_b,
                   *, T, Tc, unroll, mask_tail):
    c_idx = pl.program_id(0)
    nc = pl.num_programs(0)

    @pl.when(c_idx == 0)
    def _():
        h_f[...] = jnp.zeros_like(h_f)
        c_f[...] = jnp.zeros_like(c_f)
        h_b[...] = jnp.zeros_like(h_b)
        c_b[...] = jnp.zeros_like(c_b)

    Bp, Hp = h_f.shape
    G = 4 * Hp

    # ---- fused per-chunk input projection (no sequential dependency) -------
    # One big (Tc*Bp, Ip) @ (Ip, 4Hp) MXU matmul per direction; bias folded in.
    g_f[...] = (jnp.dot(x_f_ref[...], wih_f_ref[...],
                        preferred_element_type=jnp.float32) + b_f_ref[...])
    g_b[...] = (jnp.dot(x_b_ref[...], wih_b_ref[...],
                        preferred_element_type=jnp.float32) + b_b_ref[...])

    def sigmoid(x):
        # 1 EUP op (tanh) instead of exp + divide.
        return 0.5 * jnp.tanh(0.5 * x) + 0.5

    def cell(pre, h, c, whh_ref):
        # Weights streamed from VMEM ref per step (no hoisted full-tile value).
        gates = pre + jnp.dot(h.astype(whh_ref.dtype), whh_ref[...],
                              preferred_element_type=jnp.float32)
        i = sigmoid(gates[:, 0 * Hp:1 * Hp])
        f = sigmoid(gates[:, 1 * Hp:2 * Hp])
        g = jnp.tanh(gates[:, 2 * Hp:3 * Hp])
        o = sigmoid(gates[:, 3 * Hp:4 * Hp])
        c_new = f * c + i * g
        h_new = o * jnp.tanh(c_new)
        return h_new, c_new

    def gate_rows(g_ref, j):
        start = pl.multiple_of(j * Bp, _SUBLANE)
        return g_ref[pl.ds(start, Bp), :]

    def step(j, carry):
        jb = Tc - 1 - j   # backward dir walks the (reversed-order) chunk backwards
        hf, cf = cell(gate_rows(g_f, j), h_f[...], c_f[...], whh_f_ref)
        hb, cb = cell(gate_rows(g_b, jb), h_b[...], c_b[...], whh_b_ref)
        if mask_tail:
            # Padded tail steps (t >= T) must not advance the backward state.
            t_b = (nc - 1 - c_idx) * Tc + jb
            m = (t_b < T).astype(jnp.float32)
            hb = m * hb + (1.0 - m) * h_b[...]
            cb = m * cb + (1.0 - m) * c_b[...]
        out_f_ref[j] = hf
        out_b_ref[jb] = hb
        h_f[...] = hf
        c_f[...] = cf
        h_b[...] = hb
        c_b[...] = cb
        return carry

    lax.fori_loop(0, Tc, step, 0, unroll=unroll)


# ----------------------------------------------------------------------------
# Wrapper
# ----------------------------------------------------------------------------
def lstm_forward(x, params, *, matmul_dtype=jnp.bfloat16):
    """x: (B, T, I).  Returns (enc_out (B, T, 2H), last_hn (B, 2H)), matching
    the PyTorch module's forward with hx=None, non_pad_mask=None.
    MXU operands use `matmul_dtype` (bf16 default) with f32 accumulation;
    gate elementwise math stays f32."""
    x = x.astype(jnp.float32)
    B, T, I = x.shape
    H = params["whh_f"].shape[0]

    Hp = _round_up(H, _LANE)
    Ip = _round_up(I, _LANE)
    Bp = _round_up(B, _SUBLANE)
    mm_bytes = jnp.dtype(matmul_dtype).itemsize
    Tc, nc = _pick_time_chunk(T, Bp, Hp, Ip, mm_bytes)
    Tp = Tc * nc
    G = 4 * Hp

    # ---- pad parameters to lane/sublane-aligned gate layout ----------------
    def pad_dir(wih, whh, b):
        wih_p = jnp.pad(_pad_gate_cols(wih, H, Hp), ((0, Ip - I), (0, 0)))   # (Ip, 4Hp)
        whh_p = jnp.pad(_pad_gate_cols(whh, H, Hp), ((0, Hp - H), (0, 0)))   # (Hp, 4Hp)
        b_p = _pad_gate_cols(b, H, Hp)                                       # (1, 4Hp)
        return (wih_p.astype(matmul_dtype), whh_p.astype(matmul_dtype),
                b_p.astype(jnp.float32))

    wih_f_p, whh_f_p, b_f_p = pad_dir(params["wih_f"], params["whh_f"], params["b_f"])
    wih_b_p, whh_b_p, b_b_p = pad_dir(params["wih_b"], params["whh_b"], params["b_b"])

    # ---- time-major, padded input flattened to a lane-dense 2-D slab -------
    x_t = jnp.transpose(x, (1, 0, 2))                                 # (T, B, I)
    x_t = jnp.pad(x_t, ((0, Tp - T), (0, Bp - B), (0, Ip - I)))       # (Tp, Bp, Ip)
    x_2d = x_t.reshape(Tp * Bp, Ip).astype(matmul_dtype)              # row = t*Bp + b

    need = _chunk_vmem_bytes(Tc, Bp, Hp, Ip, mm_bytes)
    vmem_limit = int(min(max(need * 3 // 2 + (1 << 20), 32 * 1024 * 1024),
                         64 * 1024 * 1024))
    unroll = True if Tc <= 8 else 4

    out_f, out_b = pl.pallas_call(
        functools.partial(_bilstm_kernel, T=T, Tc=Tc, unroll=unroll,
                          mask_tail=(Tp != T)),
        out_shape=(jax.ShapeDtypeStruct((Tp, Bp, Hp), jnp.float32),
                   jax.ShapeDtypeStruct((Tp, Bp, Hp), jnp.float32)),
        grid_spec=pltpu.PrefetchScalarGridSpec(
            num_scalar_prefetch=0,
            grid=(nc,),
            in_specs=[
                # x chunks: forward order / reversed chunk order (no [::-1] copy)
                pl.BlockSpec((Tc * Bp, Ip), lambda c: (c, 0)),
                pl.BlockSpec((Tc * Bp, Ip), lambda c: (nc - 1 - c, 0)),
                # weights / bias: constant index_map (fetched once, stay resident)
                pl.BlockSpec((Ip, G), lambda c: (0, 0)),
                pl.BlockSpec((Ip, G), lambda c: (0, 0)),
                pl.BlockSpec((Hp, G), lambda c: (0, 0)),
                pl.BlockSpec((Hp, G), lambda c: (0, 0)),
                pl.BlockSpec((1, G), lambda c: (0, 0)),
                pl.BlockSpec((1, G), lambda c: (0, 0)),
            ],
            out_specs=[
                pl.BlockSpec((Tc, Bp, Hp), lambda c: (c, 0, 0)),
                pl.BlockSpec((Tc, Bp, Hp), lambda c: (nc - 1 - c, 0, 0)),
            ],
            scratch_shapes=[pltpu.VMEM((Bp, Hp), jnp.float32)] * 4      # h_f,c_f,h_b,c_b
                         + [pltpu.VMEM((Tc * Bp, G), jnp.float32)] * 2,  # gate pre-acts
        ),
        compiler_params=pltpu.CompilerParams(
            dimension_semantics=("arbitrary",),    # time axis carries h/c state
            vmem_limit_bytes=vmem_limit),
    )(x_2d, x_2d, wih_f_p, wih_b_p, whh_f_p, whh_b_p, b_f_p, b_b_p)

    fwd = out_f[:T, :B, :H]                                   # (T, B, H)
    bwd = out_b[:T, :B, :H]                                   # (T, B, H)

    enc_out = jnp.transpose(jnp.concatenate([fwd, bwd], axis=-1), (1, 0, 2))
    # h_n: forward dir -> state at t = T-1; backward dir -> state at t = 0.
    last_hn = jnp.concatenate([fwd[-1], bwd[0]], axis=-1)     # (B, 2H)
    return enc_out, last_hn


# ----------------------------------------------------------------------------
# Deterministic parameter init (mirrors the module's init_param):
#   weights: xavier_uniform; biases: zeros except forget-gate slice = 1 on
#   both bias_ih and bias_hh (fused bias = 2.0 on the forget gate).
# ----------------------------------------------------------------------------
def _xavier_uniform(key, out_dim, in_dim):
    bound = jnp.sqrt(6.0 / (in_dim + out_dim))
    return jax.random.uniform(key, (out_dim, in_dim), jnp.float32,
                              minval=-bound, maxval=bound)


def make_params(key, input_size, hidden_size):
    H = hidden_size
    keys = jax.random.split(key, 4)
    w_ih_f = _xavier_uniform(keys[0], 4 * H, input_size)   # (4H, I)
    w_hh_f = _xavier_uniform(keys[1], 4 * H, H)            # (4H, H)
    w_ih_b = _xavier_uniform(keys[2], 4 * H, input_size)
    w_hh_b = _xavier_uniform(keys[3], 4 * H, H)

    bias = jnp.zeros((4 * H,), jnp.float32).at[H:2 * H].set(1.0)
    fused_bias = (bias + bias).reshape(1, 4 * H)           # b_ih + b_hh

    return {
        "wih_f": w_ih_f.T, "whh_f": w_hh_f.T, "b_f": fused_bias,
        "wih_b": w_ih_b.T, "whh_b": w_hh_b.T, "b_b": fused_bias,
    }


# ----------------------------------------------------------------------------
# Pure-JAX reference (lax.scan) for the correctness check.
# ----------------------------------------------------------------------------
def _ref_direction(x_tbi, w_ih_t, w_hh_t, bias):
    H = w_hh_t.shape[0]
    B = x_tbi.shape[1]

    def step(carry, x_t):
        h, c = carry
        gates = (jnp.dot(x_t, w_ih_t, precision=lax.Precision.HIGHEST)
                 + jnp.dot(h, w_hh_t, precision=lax.Precision.HIGHEST)
                 + bias)
        i = jax.nn.sigmoid(gates[:, 0 * H:1 * H])
        f = jax.nn.sigmoid(gates[:, 1 * H:2 * H])
        g = jnp.tanh(gates[:, 2 * H:3 * H])
        o = jax.nn.sigmoid(gates[:, 3 * H:4 * H])
        c = f * c + i * g
        h = o * jnp.tanh(c)
        return (h, c), h

    init = (jnp.zeros((B, H), jnp.float32), jnp.zeros((B, H), jnp.float32))
    _, hs = lax.scan(step, init, x_tbi)
    return hs


def lstm_forward_ref(x, params):
    x_t = jnp.transpose(x, (1, 0, 2)).astype(jnp.float32)
    fwd = _ref_direction(x_t, params["wih_f"], params["whh_f"], params["b_f"])
    bwd_rev = _ref_direction(x_t[::-1], params["wih_b"], params["whh_b"],
                             params["b_b"])
    bwd = bwd_rev[::-1]
    enc_out = jnp.transpose(jnp.concatenate([fwd, bwd], axis=-1), (1, 0, 2))
    last_hn = jnp.concatenate([fwd[-1], bwd_rev[-1]], axis=-1)
    return enc_out, last_hn


if __name__ == "__main__":
    B, T, I, H = 2, 8, 16, 32

    key = jax.random.PRNGKey(0)
    kx, kp = jax.random.split(key)
    x = jax.random.normal(kx, (B, T, I), jnp.float32)
    params = make_params(kp, I, H)

    enc_ref, hn_ref = lstm_forward_ref(x, params)

    # Default path: bf16 MXU operands, f32 accumulation / gate math.
    enc_out, last_hn = jax.jit(lstm_forward)(x, params)
    jax.block_until_ready((enc_out, last_hn))
    assert enc_out.shape == (B, T, 2 * H)
    assert last_hn.shape == (B, 2 * H)
    assert jnp.allclose(enc_out, enc_ref, atol=7.5e-2, rtol=7.5e-2), \
        float(jnp.max(jnp.abs(enc_out - enc_ref)))
    assert jnp.allclose(last_hn, hn_ref, atol=7.5e-2, rtol=7.5e-2), \
        float(jnp.max(jnp.abs(last_hn - hn_ref)))

    # f32 validation path (tight tolerance).
    enc_f32, hn_f32 = jax.jit(
        functools.partial(lstm_forward, matmul_dtype=jnp.float32))(x, params)
    jax.block_until_ready((enc_f32, hn_f32))
    assert jnp.allclose(enc_f32, enc_ref, atol=1e-3, rtol=1e-3), \
        float(jnp.max(jnp.abs(enc_f32 - enc_ref)))
    assert jnp.allclose(hn_f32, hn_ref, atol=1e-3, rtol=1e-3), \
        float(jnp.max(jnp.abs(hn_f32 - hn_ref)))

    print("KERNEL_OK")
</pallas_src>

<mosaic_0001>
module attributes {stable_mosaic.version = 11 : i64} {
  func.func @_bilstm_kernel(%arg0: i32, %arg1: memref<64x128xbf16, #tpu.memory_space<vmem>>, %arg2: memref<64x128xbf16, #tpu.memory_space<vmem>>, %arg3: memref<128x512xbf16, #tpu.memory_space<vmem>>, %arg4: memref<128x512xbf16, #tpu.memory_space<vmem>>, %arg5: memref<128x512xbf16, #tpu.memory_space<vmem>>, %arg6: memref<128x512xbf16, #tpu.memory_space<vmem>>, %arg7: memref<1x512xf32, #tpu.memory_space<vmem>>, %arg8: memref<1x512xf32, #tpu.memory_space<vmem>>, %arg9: memref<8x8x128xf32, #tpu.memory_space<vmem>>, %arg10: memref<8x8x128xf32, #tpu.memory_space<vmem>>, %arg11: memref<8x128xf32, #tpu.memory_space<vmem>>, %arg12: memref<8x128xf32, #tpu.memory_space<vmem>>, %arg13: memref<8x128xf32, #tpu.memory_space<vmem>>, %arg14: memref<8x128xf32, #tpu.memory_space<vmem>>, %arg15: memref<64x512xf32, #tpu.memory_space<vmem>>, %arg16: memref<64x512xf32, #tpu.memory_space<vmem>>) attributes {dimension_semantics = [#tpu.dimension_semantics<arbitrary>], iteration_bounds = array<i64: 1>, scalar_prefetch = 0 : i64, scratch_operands = 6 : i64, tpu.core_type = #tpu.core_type<tc>, window_params = [{transform_indices = @transform_0, window_bounds = array<i64: 64, 128>}, {transform_indices = @transform_1, window_bounds = array<i64: 64, 128>}, {pipeline_mode = #tpu.pipeline_mode<synchronous>, transform_indices = @transform_2, window_bounds = array<i64: 128, 512>}, {pipeline_mode = #tpu.pipeline_mode<synchronous>, transform_indices = @transform_3, window_bounds = array<i64: 128, 512>}, {pipeline_mode = #tpu.pipeline_mode<synchronous>, transform_indices = @transform_4, window_bounds = array<i64: 128, 512>}, {pipeline_mode = #tpu.pipeline_mode<synchronous>, transform_indices = @transform_5, window_bounds = array<i64: 128, 512>}, {pipeline_mode = #tpu.pipeline_mode<synchronous>, transform_indices = @transform_6, window_bounds = array<i64: 1, 512>}, {pipeline_mode = #tpu.pipeline_mode<synchronous>, transform_indices = @transform_7, window_bounds = array<i64: 1, 512>}, {transform_indices = @transform_8, window_bounds = array<i64: 8, 8, 128>}, {transform_indices = @transform_9, window_bounds = array<i64: 8, 8, 128>}]} {
    %c0_i32 = arith.constant 0 : i32
    %0 = arith.cmpi eq, %arg0, %c0_i32 : i32
    %1 = arith.extui %0 : i1 to i32
    %c0_i32_0 = arith.constant 0 : i32
    %2 = arith.cmpi ne, %1, %c0_i32_0 : i32
    scf.if %2 {
      %cst_410 = arith.constant 0.000000e+00 : f32
      %777 = vector.broadcast %cst_410 : f32 to vector<8x128xf32>
      %c0_411 = arith.constant 0 : index
      %c0_412 = arith.constant 0 : index
      %778 = vector.load %arg11[%c0_411, %c0_412] : memref<8x128xf32, #tpu.memory_space<vmem>>, vector<8x128xf32>
      tpu.vector_store %arg11[%c0_411, %c0_412], %777 {strides = array<i32>} : memref<8x128xf32, #tpu.memory_space<vmem>>, vector<8x128xf32>,
      %cst_413 = arith.constant 0.000000e+00 : f32
      %779 = vector.broadcast %cst_413 : f32 to vector<8x128xf32>
      %c0_414 = arith.constant 0 : index
      %c0_415 = arith.constant 0 : index
      %780 = vector.load %arg12[%c0_414, %c0_415] : memref<8x128xf32, #tpu.memory_space<vmem>>, vector<8x128xf32>
      tpu.vector_store %arg12[%c0_414, %c0_415], %779 {strides = array<i32>} : memref<8x128xf32, #tpu.memory_space<vmem>>, vector<8x128xf32>,
      %cst_416 = arith.constant 0.000000e+00 : f32
      %781 = vector.broadcast %cst_416 : f32 to vector<8x128xf32>
      %c0_417 = arith.constant 0 : index
      %c0_418 = arith.constant 0 : index
      %782 = vector.load %arg13[%c0_417, %c0_418] : memref<8x128xf32, #tpu.memory_space<vmem>>, vector<8x128xf32>
      tpu.vector_store %arg13[%c0_417, %c0_418], %781 {strides = array<i32>} : memref<8x128xf32, #tpu.memory_space<vmem>>, vector<8x128xf32>,
      %cst_419 = arith.constant 0.000000e+00 : f32
      %783 = vector.broadcast %cst_419 : f32 to vector<8x128xf32>
      %c0_420 = arith.constant 0 : index
      %c0_421 = arith.constant 0 : index
      %784 = vector.load %arg14[%c0_420, %c0_421] : memref<8x128xf32, #tpu.memory_space<vmem>>, vector<8x128xf32>
      tpu.vector_store %arg14[%c0_420, %c0_421], %783 {strides = array<i32>} : memref<8x128xf32, #tpu.memory_space<vmem>>, vector<8x128xf32>,
    } else {
    }
    %c0 = arith.constant 0 : index
    %c0_1 = arith.constant 0 : index
    %3 = vector.load %arg1[%c0, %c0_1] : memref<64x128xbf16, #tpu.memory_space<vmem>>, vector<64x128xbf16>
    %c0_2 = arith.constant 0 : index
    %c0_3 = arith.constant 0 : index
    %4 = vector.load %arg3[%c0_2, %c0_3] : memref<128x512xbf16, #tpu.memory_space<vmem>>, vector<128x512xbf16>
    %cst = arith.constant dense<0.000000e+00> : vector<64x512xf32>
    %5 = tpu.matmul %3, %4, %cst {dimension_numbers = #tpu.dot_dimension_numbers<[1], [0], [0], [1], [0, 0, 1, 1], [], []>} : vector<64x128xbf16>, vector<128x512xbf16>, vector<64x512xf32> -> vector<64x512xf32>
    %c0_4 = arith.constant 0 : index
    %c0_5 = arith.constant 0 : index
    %6 = vector.load %arg7[%c0_4, %c0_5] : memref<1x512xf32, #tpu.memory_space<vmem>>, vector<1x512xf32>
    %7 = vector.broadcast %6 : vector<1x512xf32> to vector<64x512xf32>
    %8 = arith.addf %5, %7 : vector<64x512xf32>
    %c0_6 = arith.constant 0 : index
    %c0_7 = arith.constant 0 : index
    %9 = vector.load %arg15[%c0_6, %c0_7] : memref<64x512xf32, #tpu.memory_space<vmem>>, vector<64x512xf32>
    tpu.vector_store %arg15[%c0_6, %c0_7], %8 {strides = array<i32>} : memref<64x512xf32, #tpu.memory_space<vmem>>, vector<64x512xf32>,
    %c0_8 = arith.constant 0 : index
    %c0_9 = arith.constant 0 : index
    %10 = vector.load %arg2[%c0_8, %c0_9] : memref<64x128xbf16, #tpu.memory_space<vmem>>, vector<64x128xbf16>
    %c0_10 = arith.constant 0 : index
    %c0_11 = arith.constant 0 : index
    %11 = vector.load %arg4[%c0_10, %c0_11] : memref<128x512xbf16, #tpu.memory_space<vmem>>, vector<128x512xbf16>
    %cst_12 = arith.constant dense<0.000000e+00> : vector<64x512xf32>
    %12 = tpu.matmul %10, %11, %cst_12 {dimension_numbers = #tpu.dot_dimension_numbers<[1], [0], [0], [1], [0, 0, 1, 1], [], []>} : vector<64x128xbf16>, vector<128x512xbf16>, vector<64x512xf32> -> vector<64x512xf32>
    %c0_13 = arith.constant 0 : index
    %c0_14 = arith.constant 0 : index
    %13 = vector.load %arg8[%c0_13, %c0_14] : memref<1x512xf32, #tpu.memory_space<vmem>>, vector<1x512xf32>
    %14 = vector.broadcast %13 : vector<1x512xf32> to vector<64x512xf32>
    %15 = arith.addf %12, %14 : vector<64x512xf32>
    %c0_15 = arith.constant 0 : index
    %c0_16 = arith.constant 0 : index
    %16 = vector.load %arg16[%c0_15, %c0_16] : memref<64x512xf32, #tpu.memory_space<vmem>>, vector<64x512xf32>
    tpu.vector_store %arg16[%c0_15, %c0_16], %15 {strides = array<i32>} : memref<64x512xf32, #tpu.memory_space<vmem>>, vector<64x512xf32>,
    %c0_i32_17 = arith.constant 0 : i32
    %c7_i32 = arith.constant 7 : i32
    %17 = arith.subi %c7_i32, %c0_i32_17 : i32
    %c8_i32 = arith.constant 8 : i32
    %18 = arith.muli %c0_i32_17, %c8_i32 : i32
    %19 = tpu.assume_multiple %18, 8 : i32
    %20 = arith.index_cast %19 : i32 to index
    %c0_18 = arith.constant 0 : index
    %21 = vector.load %arg15[%20, %c0_18] : memref<64x512xf32, #tpu.memory_space<vmem>>, vector<8x512xf32>
    %c0_19 = arith.constant 0 : index
    %c0_20 = arith.constant 0 : index
    %22 = vector.load %arg11[%c0_19, %c0_20] : memref<8x128xf32, #tpu.memory_space<vmem>>, vector<8x128xf32>
    %c0_21 = arith.constant 0 : index
    %c0_22 = arith.constant 0 : index
    %23 = vector.load %arg12[%c0_21, %c0_22] : memref<8x128xf32, #tpu.memory_space<vmem>>, vector<8x128xf32>
    %24 = arith.truncf %22 : vector<8x128xf32> to vector<8x128xbf16>
    %c0_23 = arith.constant 0 : index
    %c0_24 = arith.constant 0 : index
    %25 = vector.load %arg5[%c0_23, %c0_24] : memref<128x512xbf16, #tpu.memory_space<vmem>>, vector<128x512xbf16>
    %cst_25 = arith.constant dense<0.000000e+00> : vector<8x512xf32>
    %26 = tpu.matmul %24, %25, %cst_25 {dimension_numbers = #tpu.dot_dimension_numbers<[1], [0], [0], [1], [0, 0, 1, 1], [], []>} : vector<8x128xbf16>, vector<128x512xbf16>, vector<8x512xf32> -> vector<8x512xf32>
    %27 = arith.addf %21, %26 : vector<8x512xf32>
    %28 = vector.extract_strided_slice %27 {offsets = [0, 0], sizes = [8, 128], strides = [1, 1]} : vector<8x512xf32> to vector<8x128xf32>
    %cst_26 = arith.constant 5.000000e-01 : f32
    %29 = vector.broadcast %cst_26 : f32 to vector<8x128xf32>
    %30 = arith.mulf %29, %28 : vector<8x128xf32>
    %31 = math.tanh %30 : vector<8x128xf32>
    %cst_27 = arith.constant 5.000000e-01 : f32
    %32 = vector.broadcast %cst_27 : f32 to vector<8x128xf32>
    %33 = arith.mulf %32, %31 : vector<8x128xf32>
    %cst_28 = arith.constant 5.000000e-01 : f32
    %34 = vector.broadcast %cst_28 : f32 to vector<8x128xf32>
    %35 = arith.addf %33, %34 : vector<8x128xf32>
    %36 = vector.extract_strided_slice %27 {offsets = [0, 128], sizes = [8, 128], strides = [1, 1]} : vector<8x512xf32> to vector<8x128xf32>
    %cst_29 = arith.constant 5.000000e-01 : f32
    %37 = vector.broadcast %cst_29 : f32 to vector<8x128xf32>
    %38 = arith.mulf %37, %36 : vector<8x128xf32>
    %39 = math.tanh %38 : vector<8x128xf32>
    %cst_30 = arith.constant 5.000000e-01 : f32
    %40 = vector.broadcast %cst_30 : f32 to vector<8x128xf32>
    %41 = arith.mulf %40, %39 : vector<8x128xf32>
    %cst_31 = arith.constant 5.000000e-01 : f32
    %42 = vector.broadcast %cst_31 : f32 to vector<8x128xf32>
    %43 = arith.addf %41, %42 : vector<8x128xf32>
    %44 = vector.extract_strided_slice %27 {offsets = [0, 256], sizes = [8, 128], strides = [1, 1]} : vector<8x512xf32> to vector<8x128xf32>
    %45 = math.tanh %44 : vector<8x128xf32>
    %46 = vector.extract_strided_slice %27 {offsets = [0, 384], sizes = [8, 128], strides = [1, 1]} : vector<8x512xf32> to vector<8x128xf32>
    %cst_32 = arith.constant 5.000000e-01 : f32
    %47 = vector.broadcast %cst_32 : f32 to vector<8x128xf32>
    %48 = arith.mulf %47, %46 : vector<8x128xf32>
    %49 = math.tanh %48 : vector<8x128xf32>
    %cst_33 = arith.constant 5.000000e-01 : f32
    %50 = vector.broadcast %cst_33 : f32 to vector<8x128xf32>
    %51 = arith.mulf %50, %49 : vector<8x128xf32>
    %cst_34 = arith.constant 5.000000e-01 : f32
    %52 = vector.broadcast %cst_34 : f32 to vector<8x128xf32>
    %53 = arith.addf %51, %52 : vector<8x128xf32>
    %54 = arith.mulf %43, %23 : vector<8x128xf32>
    %55 = arith.mulf %35, %45 : vector<8x128xf32>
    %56 = arith.addf %54, %55 : vector<8x128xf32>
    %57 = math.tanh %56 : vector<8x128xf32>
    %58 = arith.mulf %53, %57 : vector<8x128xf32>
    %c8_i32_35 = arith.constant 8 : i32
    %59 = arith.muli %17, %c8_i32_35 : i32
    %60 = tpu.assume_multiple %59, 8 : i32
    %61 = arith.index_cast %60 : i32 to index
    %c0_36 = arith.constant 0 : index
    %62 = vector.load %arg16[%61, %c0_36] : memref<64x512xf32, #tpu.memory_space<vmem>>, vector<8x512xf32>
    %c0_37 = arith.constant 0 : index
    %c0_38 = arith.constant 0 : index
    %63 = vector.load %arg13[%c0_37, %c0_38] : memref<8x128xf32, #tpu.memory_space<vmem>>, vector<8x128xf32>
    %c0_39 = arith.constant 0 : index
    %c0_40 = arith.constant 0 : index
    %64 = vector.load %arg14[%c0_39, %c0_40] : memref<8x128xf32, #tpu.memory_space<vmem>>, vector<8x128xf32>
    %65 = arith.truncf %63 : vector<8x128xf32> to vector<8x128xbf16>
    %c0_41 = arith.constant 0 : index
    %c0_42 = arith.constant 0 : index
    %66 = vector.load %arg6[%c0_41, %c0_42] : memref<128x512xbf16, #tpu.memory_space<vmem>>, vector<128x512xbf16>
    %cst_43 = arith.constant dense<0.000000e+00> : vector<8x512xf32>
    %67 = tpu.matmul %65, %66, %cst_43 {dimension_numbers = #tpu.dot_dimension_numbers<[1], [0], [0], [1], [0, 0, 1, 1], [], []>} : vector<8x128xbf16>, vector<128x512xbf16>, vector<8x512xf32> -> vector<8x512xf32>
    %68 = arith.addf %62, %67 : vector<8x512xf32>
    %69 = vector.extract_strided_slice %68 {offsets = [0, 0], sizes = [8, 128], strides = [1, 1]} : vector<8x512xf32> to vector<8x128xf32>
    %cst_44 = arith.constant 5.000000e-01 : f32
    %70 = vector.broadcast %cst_44 : f32 to vector<8x128xf32>
    %71 = arith.mulf %70, %69 : vector<8x128xf32>
    %72 = math.tanh %71 : vector<8x128xf32>
    %cst_45 = arith.constant 5.000000e-01 : f32
    %73 = vector.broadcast %cst_45 : f32 to vector<8x128xf32>
    %74 = arith.mulf %73, %72 : vector<8x128xf32>
    %cst_46 = arith.constant 5.000000e-01 : f32
    %75 = vector.broadcast %cst_46 : f32 to vector<8x128xf32>
    %76 = arith.addf %74, %75 : vector<8x128xf32>
    %77 = vector.extract_strided_slice %68 {offsets = [0, 128], sizes = [8, 128], strides = [1, 1]} : vector<8x512xf32> to vector<8x128xf32>
    %cst_47 = arith.constant 5.000000e-01 : f32
    %78 = vector.broadcast %cst_47 : f32 to vector<8x128xf32>
    %79 = arith.mulf %78, %77 : vector<8x128xf32>
    %80 = math.tanh %79 : vector<8x128xf32>
    %cst_48 = arith.constant 5.000000e-01 : f32
    %81 = vector.broadcast %cst_48 : f32 to vector<8x128xf32>
    %82 = arith.mulf %81, %80 : vector<8x128xf32>
    %cst_49 = arith.constant 5.000000e-01 : f32
    %83 = vector.broadcast %cst_49 : f32 to vector<8x128xf32>
    %84 = arith.addf %82, %83 : vector<8x128xf32>
    %85 = vector.extract_strided_slice %68 {offsets = [0, 256], sizes = [8, 128], strides = [1, 1]} : vector<8x512xf32> to vector<8x128xf32>
    %86 = math.tanh %85 : vector<8x128xf32>
    %87 = vector.extract_strided_slice %68 {offsets = [0, 384], sizes = [8, 128], strides = [1, 1]} : vector<8x512xf32> to vector<8x128xf32>
    %cst_50 = arith.constant 5.000000e-01 : f32
    %88 = vector.broadcast %cst_50 : f32 to vector<8x128xf32>
    %89 = arith.mulf %88, %87 : vector<8x128xf32>
    %90 = math.tanh %89 : vector<8x128xf32>
    %cst_51 = arith.constant 5.000000e-01 : f32
    %91 = vector.broadcast %cst_51 : f32 to vector<8x128xf32>
    %92 = arith.mulf %91, %90 : vector<8x128xf32>
    %cst_52 = arith.constant 5.000000e-01 : f32
    %93 = vector.broadcast %cst_52 : f32 to vector<8x128xf32>
    %94 = arith.addf %92, %93 : vector<8x128xf32>
    %95 = arith.mulf %84, %64 : vector<8x128xf32>
    %96 = arith.mulf %76, %86 : vector<8x128xf32>
    %97 = arith.addf %95, %96 : vector<8x128xf32>
    %98 = math.tanh %97 : vector<8x128xf32>
    %99 = arith.mulf %94, %98 : vector<8x128xf32>
    %100 = arith.index_cast %c0_i32_17 : i32 to index
    %c0_53 = arith.constant 0 : index
    %c0_54 = arith.constant 0 : index
    %101 = vector.load %arg9[%100, %c0_53, %c0_54] : memref<8x8x128xf32, #tpu.memory_space<vmem>>, vector<1x8x128xf32>
    %102 = vector.shape_cast %101 : vector<1x8x128xf32> to vector<8x128xf32>
    %103 = vector.shape_cast %58 : vector<8x128xf32> to vector<1x8x128xf32>
    tpu.vector_store %arg9[%100, %c0_53, %c0_54], %103 {strides = array<i32>} : memref<8x8x128xf32, #tpu.memory_space<vmem>>, vector<1x8x128xf32>,
    %104 = arith.index_cast %17 : i32 to index
    %c0_55 = arith.constant 0 : index
    %c0_56 = arith.constant 0 : index
    %105 = vector.load %arg10[%104, %c0_55, %c0_56] : memref<8x8x128xf32, #tpu.memory_space<vmem>>, vector<1x8x128xf32>
    %106 = vector.shape_cast %105 : vector<1x8x128xf32> to vector<8x128xf32>
    %107 = vector.shape_cast %99 : vector<8x128xf32> to vector<1x8x128xf32>
    tpu.vector_store %arg10[%104, %c0_55, %c0_56], %107 {strides = array<i32>} : memref<8x8x128xf32, #tpu.memory_space<vmem>>, vector<1x8x128xf32>,
    %c0_57 = arith.constant 0 : index
    %c0_58 = arith.constant 0 : index
    %108 = vector.load %arg11[%c0_57, %c0_58] : memref<8x128xf32, #tpu.memory_space<vmem>>, vector<8x128xf32>
    tpu.vector_store %arg11[%c0_57, %c0_58], %58 {strides = array<i32>} : memref<8x128xf32, #tpu.memory_space<vmem>>, vector<8x128xf32>,
    %c0_59 = arith.constant 0 : index
    %c0_60 = arith.constant 0 : index
    %109 = vector.load %arg12[%c0_59, %c0_60] : memref<8x128xf32, #tpu.memory_space<vmem>>, vector<8x128xf32>
    tpu.vector_store %arg12[%c0_59, %c0_60], %56 {strides = array<i32>} : memref<8x128xf32, #tpu.memory_space<vmem>>, vector<8x128xf32>,
    %c0_61 = arith.constant 0 : index
    %c0_62 = arith.constant 0 : index
    %110 = vector.load %arg13[%c0_61, %c0_62] : memref<8x128xf32, #tpu.memory_space<vmem>>, vector<8x128xf32>
    tpu.vector_store %arg13[%c0_61, %c0_62], %99 {strides = array<i32>} : memref<8x128xf32, #tpu.memory_space<vmem>>, vector<8x128xf32>,
    %c0_63 = arith.constant 0 : index
    %c0_64 = arith.constant 0 : index
    %111 = vector.load %arg14[%c0_63, %c0_64] : memref<8x128xf32, #tpu.memory_space<vmem>>, vector<8x128xf32>
    tpu.vector_store %arg14[%c0_63, %c0_64], %97 {strides = array<i32>} : memref<8x128xf32, #tpu.memory_space<vmem>>, vector<8x128xf32>,
    %c1_i32 = arith.constant 1 : i32
    %c7_i32_65 = arith.constant 7 : i32
    %112 = arith.subi %c7_i32_65, %c1_i32 : i32
    %c8_i32_66 = arith.constant 8 : i32
    %113 = arith.muli %c1_i32, %c8_i32_66 : i32
    %114 = tpu.assume_multiple %113, 8 : i32
    %115 = arith.index_cast %114 : i32 to index
    %c0_67 = arith.constant 0 : index
    %116 = vector.load %arg15[%115, %c0_67] : memref<64x512xf32, #tpu.memory_space<vmem>>, vector<8x512xf32>
    %c0_68 = arith.constant 0 : index
    %c0_69 = arith.constant 0 : index
    %117 = vector.load %arg11[%c0_68, %c0_69] : memref<8x128xf32, #tpu.memory_space<vmem>>, vector<8x128xf32>
    %c0_70 = arith.constant 0 : index
    %c0_71 = arith.constant 0 : index
    %118 = vector.load %arg12[%c0_70, %c0_71] : memref<8x128xf32, #tpu.memory_space<vmem>>, vector<8x128xf32>
    %119 = arith.truncf %117 : vector<8x128xf32> to vector<8x128xbf16>
    %c0_72 = arith.constant 0 : index
    %c0_73 = arith.constant 0 : index
    %120 = vector.load %arg5[%c0_72, %c0_73] : memref<128x512xbf16, #tpu.memory_space<vmem>>, vector<128x512xbf16>
    %cst_74 = arith.constant dense<0.000000e+00> : vector<8x512xf32>
    %121 = tpu.matmul %119, %120, %cst_74 {dimension_numbers = #tpu.dot_dimension_numbers<[1], [0], [0], [1], [0, 0, 1, 1], [], []>} : vector<8x128xbf16>, vector<128x512xbf16>, vector<8x512xf32> -> vector<8x512xf32>
    %122 = arith.addf %116, %121 : vector<8x512xf32>
    %123 = vector.extract_strided_slice %122 {offsets = [0, 0], sizes = [8, 128], strides = [1, 1]} : vector<8x512xf32> to vector<8x128xf32>
    %cst_75 = arith.constant 5.000000e-01 : f32
    %124 = vector.broadcast %cst_75 : f32 to vector<8x128xf32>
    %125 = arith.mulf %124, %123 : vector<8x128xf32>
    %126 = math.tanh %125 : vector<8x128xf32>
    %cst_76 = arith.constant 5.000000e-01 : f32
    %127 = vector.broadcast %cst_76 : f32 to vector<8x128xf32>
    %128 = arith.mulf %127, %126 : vector<8x128xf32>
    %cst_77 = arith.constant 5.000000e-01 : f32
    %129 = vector.broadcast %cst_77 : f32 to vector<8x128xf32>
    %130 = arith.addf %128, %129 : vector<8x128xf32>
    %131 = vector.extract_strided_slice %122 {offsets = [0, 128], sizes = [8, 128], strides = [1, 1]} : vector<8x512xf32> to vector<8x128xf32>
    %cst_78 = arith.constant 5.000000e-01 : f32
    %132 = vector.broadcast %cst_78 : f32 to vector<8x128xf32>
    %133 = arith.mulf %132, %131 : vector<8x128xf32>
    %134 = math.tanh %133 : vector<8x128xf32>
    %cst_79 = arith.constant 5.000000e-01 : f32
    %135 = vector.broadcast %cst_79 : f32 to vector<8x128xf32>
    %136 = arith.mulf %135, %134 : vector<8x128xf32>
    %cst_80 = arith.constant 5.000000e-01 : f32
    %137 = vector.broadcast %cst_80 : f32 to vector<8x128xf32>
    %138 = arith.addf %136, %137 : vector<8x128xf32>
    %139 = vector.extract_strided_slice %122 {offsets = [0, 256], sizes = [8, 128], strides = [1, 1]} : vector<8x512xf32> to vector<8x128xf32>
    %140 = math.tanh %139 : vector<8x128xf32>
    %141 = vector.extract_strided_slice %122 {offsets = [0, 384], sizes = [8, 128], strides = [1, 1]} : vector<8x512xf32> to vector<8x128xf32>
    %cst_81 = arith.constant 5.000000e-01 : f32
    %142 = vector.broadcast %cst_81 : f32 to vector<8x128xf32>
    %143 = arith.mulf %142, %141 : vector<8x128xf32>
    %144 = math.tanh %143 : vector<8x128xf32>
    %cst_82 = arith.constant 5.000000e-01 : f32
    %145 = vector.broadcast %cst_82 : f32 to vector<8x128xf32>
    %146 = arith.mulf %145, %144 : vector<8x128xf32>
    %cst_83 = arith.constant 5.000000e-01 : f32
    %147 = vector.broadcast %cst_83 : f32 to vector<8x128xf32>
    %148 = arith.addf %146, %147 : vector<8x128xf32>
    %149 = arith.mulf %138, %118 : vector<8x128xf32>
    %150 = arith.mulf %130, %140 : vector<8x128xf32>
    %151 = arith.addf %149, %150 : vector<8x128xf32>
    %152 = math.tanh %151 : vector<8x128xf32>
    %153 = arith.mulf %148, %152 : vector<8x128xf32>
    %c8_i32_84 = arith.constant 8 : i32
    %154 = arith.muli %112, %c8_i32_84 : i32
    %155 = tpu.assume_multiple %154, 8 : i32
    %156 = arith.index_cast %155 : i32 to index
    %c0_85 = arith.constant 0 : index
    %157 = vector.load %arg16[%156, %c0_85] : memref<64x512xf32, #tpu.memory_space<vmem>>, vector<8x512xf32>
    %c0_86 = arith.constant 0 : index
    %c0_87 = arith.constant 0 : index
    %158 = vector.load %arg13[%c0_86, %c0_87] : memref<8x128xf32, #tpu.memory_space<vmem>>, vector<8x128xf32>
    %c0_88 = arith.constant 0 : index
    %c0_89 = arith.constant 0 : index
    %159 = vector.load %arg14[%c0_88, %c0_89] : memref<8x128xf32, #tpu.memory_space<vmem>>, vector<8x128xf32>
    %160 = arith.truncf %158 : vector<8x128xf32> to vector<8x128xbf16>
    %c0_90 = arith.constant 0 : index
    %c0_91 = arith.constant 0 : index
    %161 = vector.load %arg6[%c0_90, %c0_91] : memref<128x512xbf16, #tpu.memory_space<vmem>>, vector<128x512xbf16>
    %cst_92 = arith.constant dense<0.000000e+00> : vector<8x512xf32>
    %162 = tpu.matmul %160, %161, %cst_92 {dimension_numbers = #tpu.dot_dimension_numbers<[1], [0], [0], [1], [0, 0, 1, 1], [], []>} : vector<8x128xbf16>, vector<128x512xbf16>, vector<8x512xf32> -> vector<8x512xf32>
    %163 = arith.addf %157, %162 : vector<8x512xf32>
    %164 = vector.extract_strided_slice %163 {offsets = [0, 0], sizes = [8, 128], strides = [1, 1]} : vector<8x512xf32> to vector<8x128xf32>
    %cst_93 = arith.constant 5.000000e-01 : f32
    %165 = vector.broadcast %cst_93 : f32 to vector<8x128xf32>
    %166 = arith.mulf %165, %164 : vector<8x128xf32>
    %167 = math.tanh %166 : vector<8x128xf32>
    %cst_94 = arith.constant 5.000000e-01 : f32
    %168 = vector.broadcast %cst_94 : f32 to vector<8x128xf32>
    %169 = arith.mulf %168, %167 : vector<8x128xf32>
    %cst_95 = arith.constant 5.000000e-01 : f32
    %170 = vector.broadcast %cst_95 : f32 to vector<8x128xf32>
    %171 = arith.addf %169, %170 : vector<8x128xf32>
    %172 = vector.extract_strided_slice %163 {offsets = [0, 128], sizes = [8, 128], strides = [1, 1]} : vector<8x512xf32> to vector<8x128xf32>
    %cst_96 = arith.constant 5.000000e-01 : f32
    %173 = vector.broadcast %cst_96 : f32 to vector<8x128xf32>
    %174 = arith.mulf %173, %172 : vector<8x128xf32>
    %175 = math.tanh %174 : vector<8x128xf32>
    %cst_97 = arith.constant 5.000000e-01 : f32
    %176 = vector.broadcast %cst_97 : f32 to vector<8x128xf32>
    %177 = arith.mulf %176, %175 : vector<8x128xf32>
    %cst_98 = arith.constant 5.000000e-01 : f32
    %178 = vector.broadcast %cst_98 : f32 to vector<8x128xf32>
    %179 = arith.addf %177, %178 : vector<8x128xf32>
    %180 = vector.extract_strided_slice %163 {offsets = [0, 256], sizes = [8, 128], strides = [1, 1]} : vector<8x512xf32> to vector<8x128xf32>
    %181 = math.tanh %180 : vector<8x128xf32>
    %182 = vector.extract_strided_slice %163 {offsets = [0, 384], sizes = [8, 128], strides = [1, 1]} : vector<8x512xf32> to vector<8x128xf32>
    %cst_99 = arith.constant 5.000000e-01 : f32
    %183 = vector.broadcast %cst_99 : f32 to vector<8x128xf32>
    %184 = arith.mulf %183, %182 : vector<8x128xf32>
    %185 = math.tanh %184 : vector<8x128xf32>
    %cst_100 = arith.constant 5.000000e-01 : f32
    %186 = vector.broadcast %cst_100 : f32 to vector<8x128xf32>
    %187 = arith.mulf %186, %185 : vector<8x128xf32>
    %cst_101 = arith.constant 5.000000e-01 : f32
    %188 = vector.broadcast %cst_101 : f32 to vector<8x128xf32>
    %189 = arith.addf %187, %188 : vector<8x128xf32>
    %190 = arith.mulf %179, %159 : vector<8x128xf32>
    %191 = arith.mulf %171, %181 : vector<8x128xf32>
    %192 = arith.addf %190, %191 : vector<8x128xf32>
    %193 = math.tanh %192 : vector<8x128xf32>
    %194 = arith.mulf %189, %193 : vector<8x128xf32>
    %195 = arith.index_cast %c1_i32 : i32 to index
    %c0_102 = arith.constant 0 : index
    %c0_103 = arith.constant 0 : index
    %196 = vector.load %arg9[%195, %c0_102, %c0_103] : memref<8x8x128xf32, #tpu.memory_space<vmem>>, vector<1x8x128xf32>
    %197 = vector.shape_cast %196 : vector<1x8x128xf32> to vector<8x128xf32>
    %198 = vector.shape_cast %153 : vector<8x128xf32> to vector<1x8x128xf32>
    tpu.vector_store %arg9[%195, %c0_102, %c0_103], %198 {strides = array<i32>} : memref<8x8x128xf32, #tpu.memory_space<vmem>>, vector<1x8x128xf32>,
    %199 = arith.index_cast %112 : i32 to index
    %c0_104 = arith.constant 0 : index
    %c0_105 = arith.constant 0 : index
    %200 = vector.load %arg10[%199, %c0_104, %c0_105] : memref<8x8x128xf32, #tpu.memory_space<vmem>>, vector<1x8x128xf32>
    %201 = vector.shape_cast %200 : vector<1x8x128xf32> to vector<8x128xf32>
    %202 = vector.shape_cast %194 : vector<8x128xf32> to vector<1x8x128xf32>
    tpu.vector_store %arg10[%199, %c0_104, %c0_105], %202 {strides = array<i32>} : memref<8x8x128xf32, #tpu.memory_space<vmem>>, vector<1x8x128xf32>,
    %c0_106 = arith.constant 0 : index
    %c0_107 = arith.constant 0 : index
    %203 = vector.load %arg11[%c0_106, %c0_107] : memref<8x128xf32, #tpu.memory_space<vmem>>, vector<8x128xf32>
    tpu.vector_store %arg11[%c0_106, %c0_107], %153 {strides = array<i32>} : memref<8x128xf32, #tpu.memory_space<vmem>>, vector<8x128xf32>,
    %c0_108 = arith.constant 0 : index
    %c0_109 = arith.constant 0 : index
    %204 = vector.load %arg12[%c0_108, %c0_109] : memref<8x128xf32, #tpu.memory_space<vmem>>, vector<8x128xf32>
    tpu.vector_store %arg12[%c0_108, %c0_109], %151 {strides = array<i32>} : memref<8x128xf32, #tpu.memory_space<vmem>>, vector<8x128xf32>,
    %c0_110 = arith.constant 0 : index
    %c0_111 = arith.constant 0 : index
    %205 = vector.load %arg13[%c0_110, %c0_111] : memref<8x128xf32, #tpu.memory_space<vmem>>, vector<8x128xf32>
    tpu.vector_store %arg13[%c0_110, %c0_111], %194 {strides = array<i32>} : memref<8x128xf32, #tpu.memory_space<vmem>>, vector<8x128xf32>,
    %c0_112 = arith.constant 0 : index
    %c0_113 = arith.constant 0 : index
    %206 = vector.load %arg14[%c0_112, %c0_113] : memref<8x128xf32, #tpu.memory_space<vmem>>, vector<8x128xf32>
    tpu.vector_store %arg14[%c0_112, %c0_113], %192 {strides = array<i32>} : memref<8x128xf32, #tpu.memory_space<vmem>>, vector<8x128xf32>,
    %c2_i32 = arith.constant 2 : i32
    %c7_i32_114 = arith.constant 7 : i32
    %207 = arith.subi %c7_i32_114, %c2_i32 : i32
    %c8_i32_115 = arith.constant 8 : i32
    %208 = arith.muli %c2_i32, %c8_i32_115 : i32
    %209 = tpu.assume_multiple %208, 8 : i32
    %210 = arith.index_cast %209 : i32 to index
    %c0_116 = arith.constant 0 : index
    %211 = vector.load %arg15[%210, %c0_116] : memref<64x512xf32, #tpu.memory_space<vmem>>, vector<8x512xf32>
    %c0_117 = arith.constant 0 : index
    %c0_118 = arith.constant 0 : index
    %212 = vector.load %arg11[%c0_117, %c0_118] : memref<8x128xf32, #tpu.memory_space<vmem>>, vector<8x128xf32>
    %c0_119 = arith.constant 0 : index
    %c0_120 = arith.constant 0 : index
    %213 = vector.load %arg12[%c0_119, %c0_120] : memref<8x128xf32, #tpu.memory_space<vmem>>, vector<8x128xf32>
    %214 = arith.truncf %212 : vector<8x128xf32> to vector<8x128xbf16>
    %c0_121 = arith.constant 0 : index
    %c0_122 = arith.constant 0 : index
    %215 = vector.load %arg5[%c0_121, %c0_122] : memref<128x512xbf16, #tpu.memory_space<vmem>>, vector<128x512xbf16>
    %cst_123 = arith.constant dense<0.000000e+00> : vector<8x512xf32>
    %216 = tpu.matmul %214, %215, %cst_123 {dimension_numbers = #tpu.dot_dimension_numbers<[1], [0], [0], [1], [0, 0, 1, 1], [], []>} : vector<8x128xbf16>, vector<128x512xbf16>, vector<8x512xf32> -> vector<8x512xf32>
    %217 = arith.addf %211, %216 : vector<8x512xf32>
    %218 = vector.extract_strided_slice %217 {offsets = [0, 0], sizes = [8, 128], strides = [1, 1]} : vector<8x512xf32> to vector<8x128xf32>
    %cst_124 = arith.constant 5.000000e-01 : f32
    %219 = vector.broadcast %cst_124 : f32 to vector<8x128xf32>
    %220 = arith.mulf %219, %218 : vector<8x128xf32>
    %221 = math.tanh %220 : vector<8x128xf32>
    %cst_125 = arith.constant 5.000000e-01 : f32
    %222 = vector.broadcast %cst_125 : f32 to vector<8x128xf32>
    %223 = arith.mulf %222, %221 : vector<8x128xf32>
    %cst_126 = arith.constant 5.000000e-01 : f32
    %224 = vector.broadcast %cst_126 : f32 to vector<8x128xf32>
    %225 = arith.addf %223, %224 : vector<8x128xf32>
    %226 = vector.extract_strided_slice %217 {offsets = [0, 128], sizes = [8, 128], strides = [1, 1]} : vector<8x512xf32> to vector<8x128xf32>
    %cst_127 = arith.constant 5.000000e-01 : f32
    %227 = vector.broadcast %cst_127 : f32 to vector<8x128xf32>
    %228 = arith.mulf %227, %226 : vector<8x128xf32>
    %229 = math.tanh %228 : vector<8x128xf32>
    %cst_128 = arith.constant 5.000000e-01 : f32
    %230 = vector.broadcast %cst_128 : f32 to vector<8x128xf32>
    %231 = arith.mulf %230, %229 : vector<8x128xf32>
    %cst_129 = arith.constant 5.000000e-01 : f32
    %232 = vector.broadcast %cst_129 : f32 to vector<8x128xf32>
    %233 = arith.addf %231, %232 : vector<8x128xf32>
    %234 = vector.extract_strided_slice %217 {offsets = [0, 256], sizes = [8, 128], strides = [1, 1]} : vector<8x512xf32> to vector<8x128xf32>
    %235 = math.tanh %234 : vector<8x128xf32>
    %236 = vector.extract_strided_slice %217 {offsets = [0, 384], sizes = [8, 128], strides = [1, 1]} : vector<8x512xf32> to vector<8x128xf32>
    %cst_130 = arith.constant 5.000000e-01 : f32
    %237 = vector.broadcast %cst_130 : f32 to vector<8x128xf32>
    %238 = arith.mulf %237, %236 : vector<8x128xf32>
    %239 = math.tanh %238 : vector<8x128xf32>
    %cst_131 = arith.constant 5.000000e-01 : f32
    %240 = vector.broadcast %cst_131 : f32 to vector<8x128xf32>
    %241 = arith.mulf %240, %239 : vector<8x128xf32>
    %cst_132 = arith.constant 5.000000e-01 : f32
    %242 = vector.broadcast %cst_132 : f32 to vector<8x128xf32>
    %243 = arith.addf %241, %242 : vector<8x128xf32>
    %244 = arith.mulf %233, %213 : vector<8x128xf32>
    %245 = arith.mulf %225, %235 : vector<8x128xf32>
    %246 = arith.addf %244, %245 : vector<8x128xf32>
    %247 = math.tanh %246 : vector<8x128xf32>
    %248 = arith.mulf %243, %247 : vector<8x128xf32>
    %c8_i32_133 = arith.constant 8 : i32
    %249 = arith.muli %207, %c8_i32_133 : i32
    %250 = tpu.assume_multiple %249, 8 : i32
    %251 = arith.index_cast %250 : i32 to index
    %c0_134 = arith.constant 0 : index
    %252 = vector.load %arg16[%251, %c0_134] : memref<64x512xf32, #tpu.memory_space<vmem>>, vector<8x512xf32>
    %c0_135 = arith.constant 0 : index
    %c0_136 = arith.constant 0 : index
    %253 = vector.load %arg13[%c0_135, %c0_136] : memref<8x128xf32, #tpu.memory_space<vmem>>, vector<8x128xf32>
    %c0_137 = arith.constant 0 : index
    %c0_138 = arith.constant 0 : index
    %254 = vector.load %arg14[%c0_137, %c0_138] : memref<8x128xf32, #tpu.memory_space<vmem>>, vector<8x128xf32>
    %255 = arith.truncf %253 : vector<8x128xf32> to vector<8x128xbf16>
    %c0_139 = arith.constant 0 : index
    %c0_140 = arith.constant 0 : index
    %256 = vector.load %arg6[%c0_139, %c0_140] : memref<128x512xbf16, #tpu.memory_space<vmem>>, vector<128x512xbf16>
    %cst_141 = arith.constant dense<0.000000e+00> : vector<8x512xf32>
    %257 = tpu.matmul %255, %256, %cst_141 {dimension_numbers = #tpu.dot_dimension_numbers<[1], [0], [0], [1], [0, 0, 1, 1], [], []>} : vector<8x128xbf16>, vector<128x512xbf16>, vector<8x512xf32> -> vector<8x512xf32>
    %258 = arith.addf %252, %257 : vector<8x512xf32>
    %259 = vector.extract_strided_slice %258 {offsets = [0, 0], sizes = [8, 128], strides = [1, 1]} : vector<8x512xf32> to vector<8x128xf32>
    %cst_142 = arith.constant 5.000000e-01 : f32
    %260 = vector.broadcast %cst_142 : f32 to vector<8x128xf32>
    %261 = arith.mulf %260, %259 : vector<8x128xf32>
    %262 = math.tanh %261 : vector<8x128xf32>
    %cst_143 = arith.constant 5.000000e-01 : f32
    %263 = vector.broadcast %cst_143 : f32 to vector<8x128xf32>
    %264 = arith.mulf %263, %262 : vector<8x128xf32>
    %cst_144 = arith.constant 5.000000e-01 : f32
    %265 = vector.broadcast %cst_144 : f32 to vector<8x128xf32>
    %266 = arith.addf %264, %265 : vector<8x128xf32>
    %267 = vector.extract_strided_slice %258 {offsets = [0, 128], sizes = [8, 128], strides = [1, 1]} : vector<8x512xf32> to vector<8x128xf32>
    %cst_145 = arith.constant 5.000000e-01 : f32
    %268 = vector.broadcast %cst_145 : f32 to vector<8x128xf32>
    %269 = arith.mulf %268, %267 : vector<8x128xf32>
    %270 = math.tanh %269 : vector<8x128xf32>
    %cst_146 = arith.constant 5.000000e-01 : f32
    %271 = vector.broadcast %cst_146 : f32 to vector<8x128xf32>
    %272 = arith.mulf %271, %270 : vector<8x128xf32>
    %cst_147 = arith.constant 5.000000e-01 : f32
    %273 = vector.broadcast %cst_147 : f32 to vector<8x128xf32>
    %274 = arith.addf %272, %273 : vector<8x128xf32>
    %275 = vector.extract_strided_slice %258 {offsets = [0, 256], sizes = [8, 128], strides = [1, 1]} : vector<8x512xf32> to vector<8x128xf32>
    %276 = math.tanh %275 : vector<8x128xf32>
    %277 = vector.extract_strided_slice %258 {offsets = [0, 384], sizes = [8, 128], strides = [1, 1]} : vector<8x512xf32> to vector<8x128xf32>
    %cst_148 = arith.constant 5.000000e-01 : f32
    %278 = vector.broadcast %cst_148 : f32 to vector<8x128xf32>
    %279 = arith.mulf %278, %277 : vector<8x128xf32>
    %280 = math.tanh %279 : vector<8x128xf32>
    %cst_149 = arith.constant 5.000000e-01 : f32
    %281 = vector.broadcast %cst_149 : f32 to vector<8x128xf32>
    %282 = arith.mulf %281, %280 : vector<8x128xf32>
    %cst_150 = arith.constant 5.000000e-01 : f32
    %283 = vector.broadcast %cst_150 : f32 to vector<8x128xf32>
    %284 = arith.addf %282, %283 : vector<8x128xf32>
    %285 = arith.mulf %274, %254 : vector<8x128xf32>
    %286 = arith.mulf %266, %276 : vector<8x128xf32>
    %287 = arith.addf %285, %286 : vector<8x128xf32>
    %288 = math.tanh %287 : vector<8x128xf32>
    %289 = arith.mulf %284, %288 : vector<8x128xf32>
    %290 = arith.index_cast %c2_i32 : i32 to index
    %c0_151 = arith.constant 0 : index
    %c0_152 = arith.constant 0 : index
    %291 = vector.load %arg9[%290, %c0_151, %c0_152] : memref<8x8x128xf32, #tpu.memory_space<vmem>>, vector<1x8x128xf32>
    %292 = vector.shape_cast %291 : vector<1x8x128xf32> to vector<8x128xf32>
    %293 = vector.shape_cast %248 : vector<8x128xf32> to vector<1x8x128xf32>
    tpu.vector_store %arg9[%290, %c0_151, %c0_152], %293 {strides = array<i32>} : memref<8x8x128xf32, #tpu.memory_space<vmem>>, vector<1x8x128xf32>,
    %294 = arith.index_cast %207 : i32 to index
    %c0_153 = arith.constant 0 : index
    %c0_154 = arith.constant 0 : index
    %295 = vector.load %arg10[%294, %c0_153, %c0_154] : memref<8x8x128xf32, #tpu.memory_space<vmem>>, vector<1x8x128xf32>
    %296 = vector.shape_cast %295 : vector<1x8x128xf32> to vector<8x128xf32>
    %297 = vector.shape_cast %289 : vector<8x128xf32> to vector<1x8x128xf32>
    tpu.vector_store %arg10[%294, %c0_153, %c0_154], %297 {strides = array<i32>} : memref<8x8x128xf32, #tpu.memory_space<vmem>>, vector<1x8x128xf32>,
    %c0_155 = arith.constant 0 : index
    %c0_156 = arith.constant 0 : index
    %298 = vector.load %arg11[%c0_155, %c0_156] : memref<8x128xf32, #tpu.memory_space<vmem>>, vector<8x128xf32>
    tpu.vector_store %arg11[%c0_155, %c0_156], %248 {strides = array<i32>} : memref<8x128xf32, #tpu.memory_space<vmem>>, vector<8x128xf32>,
    %c0_157 = arith.constant 0 : index
    %c0_158 = arith.constant 0 : index
    %299 = vector.load %arg12[%c0_157, %c0_158] : memref<8x128xf32, #tpu.memory_space<vmem>>, vector<8x128xf32>
    tpu.vector_store %arg12[%c0_157, %c0_158], %246 {strides = array<i32>} : memref<8x128xf32, #tpu.memory_space<vmem>>, vector<8x128xf32>,
    %c0_159 = arith.constant 0 : index
    %c0_160 = arith.constant 0 : index
    %300 = vector.load %arg13[%c0_159, %c0_160] : memref<8x128xf32, #tpu.memory_space<vmem>>, vector<8x128xf32>
    tpu.vector_store %arg13[%c0_159, %c0_160], %289 {strides = array<i32>} : memref<8x128xf32, #tpu.memory_space<vmem>>, vector<8x128xf32>,
    %c0_161 = arith.constant 0 : index
    %c0_162 = arith.constant 0 : index
    %301 = vector.load %arg14[%c0_161, %c0_162] : memref<8x128xf32, #tpu.memory_space<vmem>>, vector<8x128xf32>
    tpu.vector_store %arg14[%c0_161, %c0_162], %287 {strides = array<i32>} : memref<8x128xf32, #tpu.memory_space<vmem>>, vector<8x128xf32>,
    %c3_i32 = arith.constant 3 : i32
    %c7_i32_163 = arith.constant 7 : i32
    %302 = arith.subi %c7_i32_163, %c3_i32 : i32
    %c8_i32_164 = arith.constant 8 : i32
    %303 = arith.muli %c3_i32, %c8_i32_164 : i32
    %304 = tpu.assume_multiple %303, 8 : i32
    %305 = arith.index_cast %304 : i32 to index
    %c0_165 = arith.constant 0 : index
    %306 = vector.load %arg15[%305, %c0_165] : memref<64x512xf32, #tpu.memory_space<vmem>>, vector<8x512xf32>
    %c0_166 = arith.constant 0 : index
    %c0_167 = arith.constant 0 : index
    %307 = vector.load %arg11[%c0_166, %c0_167] : memref<8x128xf32, #tpu.memory_space<vmem>>, vector<8x128xf32>
    %c0_168 = arith.constant 0 : index
    %c0_169 = arith.constant 0 : index
    %308 = vector.load %arg12[%c0_168, %c0_169] : memref<8x128xf32, #tpu.memory_space<vmem>>, vector<8x128xf32>
    %309 = arith.truncf %307 : vector<8x128xf32> to vector<8x128xbf16>
    %c0_170 = arith.constant 0 : index
    %c0_171 = arith.constant 0 : index
    %310 = vector.load %arg5[%c0_170, %c0_171] : memref<128x512xbf16, #tpu.memory_space<vmem>>, vector<128x512xbf16>
    %cst_172 = arith.constant dense<0.000000e+00> : vector<8x512xf32>
    %311 = tpu.matmul %309, %310, %cst_172 {dimension_numbers = #tpu.dot_dimension_numbers<[1], [0], [0], [1], [0, 0, 1, 1], [], []>} : vector<8x128xbf16>, vector<128x512xbf16>, vector<8x512xf32> -> vector<8x512xf32>
    %312 = arith.addf %306, %311 : vector<8x512xf32>
    %313 = vector.extract_strided_slice %312 {offsets = [0, 0], sizes = [8, 128], strides = [1, 1]} : vector<8x512xf32> to vector<8x128xf32>
    %cst_173 = arith.constant 5.000000e-01 : f32
    %314 = vector.broadcast %cst_173 : f32 to vector<8x128xf32>
    %315 = arith.mulf %314, %313 : vector<8x128xf32>
    %316 = math.tanh %315 : vector<8x128xf32>
    %cst_174 = arith.constant 5.000000e-01 : f32
    %317 = vector.broadcast %cst_174 : f32 to vector<8x128xf32>
    %318 = arith.mulf %317, %316 : vector<8x128xf32>
    %cst_175 = arith.constant 5.000000e-01 : f32
    %319 = vector.broadcast %cst_175 : f32 to vector<8x128xf32>
    %320 = arith.addf %318, %319 : vector<8x128xf32>
    %321 = vector.extract_strided_slice %312 {offsets = [0, 128], sizes = [8, 128], strides = [1, 1]} : vector<8x512xf32> to vector<8x128xf32>
    %cst_176 = arith.constant 5.000000e-01 : f32
    %322 = vector.broadcast %cst_176 : f32 to vector<8x128xf32>
    %323 = arith.mulf %322, %321 : vector<8x128xf32>
    %324 = math.tanh %323 : vector<8x128xf32>
    %cst_177 = arith.constant 5.000000e-01 : f32
    %325 = vector.broadcast %cst_177 : f32 to vector<8x128xf32>
    %326 = arith.mulf %325, %324 : vector<8x128xf32>
    %cst_178 = arith.constant 5.000000e-01 : f32
    %327 = vector.broadcast %cst_178 : f32 to vector<8x128xf32>
    %328 = arith.addf %326, %327 : vector<8x128xf32>
    %329 = vector.extract_strided_slice %312 {offsets = [0, 256], sizes = [8, 128], strides = [1, 1]} : vector<8x512xf32> to vector<8x128xf32>
    %330 = math.tanh %329 : vector<8x128xf32>
    %331 = vector.extract_strided_slice %312 {offsets = [0, 384], sizes = [8, 128], strides = [1, 1]} : vector<8x512xf32> to vector<8x128xf32>
    %cst_179 = arith.constant 5.000000e-01 : f32
    %332 = vector.broadcast %cst_179 : f32 to vector<8x128xf32>
    %333 = arith.mulf %332, %331 : vector<8x128xf32>
    %334 = math.tanh %333 : vector<8x128xf32>
    %cst_180 = arith.constant 5.000000e-01 : f32
    %335 = vector.broadcast %cst_180 : f32 to vector<8x128xf32>
    %336 = arith.mulf %335, %334 : vector<8x128xf32>
    %cst_181 = arith.constant 5.000000e-01 : f32
    %337 = vector.broadcast %cst_181 : f32 to vector<8x128xf32>
    %338 = arith.addf %336, %337 : vector<8x128xf32>
    %339 = arith.mulf %328, %308 : vector<8x128xf32>
    %340 = arith.mulf %320, %330 : vector<8x128xf32>
    %341 = arith.addf %339, %340 : vector<8x128xf32>
    %342 = math.tanh %341 : vector<8x128xf32>
    %343 = arith.mulf %338, %342 : vector<8x128xf32>
    %c8_i32_182 = arith.constant 8 : i32
    %344 = arith.muli %302, %c8_i32_182 : i32
    %345 = tpu.assume_multiple %344, 8 : i32
    %346 = arith.index_cast %345 : i32 to index
    %c0_183 = arith.constant 0 : index
    %347 = vector.load %arg16[%346, %c0_183] : memref<64x512xf32, #tpu.memory_space<vmem>>, vector<8x512xf32>
    %c0_184 = arith.constant 0 : index
    %c0_185 = arith.constant 0 : index
    %348 = vector.load %arg13[%c0_184, %c0_185] : memref<8x128xf32, #tpu.memory_space<vmem>>, vector<8x128xf32>
    %c0_186 = arith.constant 0 : index
    %c0_187 = arith.constant 0 : index
    %349 = vector.load %arg14[%c0_186, %c0_187] : memref<8x128xf32, #tpu.memory_space<vmem>>, vector<8x128xf32>
    %350 = arith.truncf %348 : vector<8x128xf32> to vector<8x128xbf16>
    %c0_188 = arith.constant 0 : index
    %c0_189 = arith.constant 0 : index
    %351 = vector.load %arg6[%c0_188, %c0_189] : memref<128x512xbf16, #tpu.memory_space<vmem>>, vector<128x512xbf16>
    %cst_190 = arith.constant dense<0.000000e+00> : vector<8x512xf32>
    %352 = tpu.matmul %350, %351, %cst_190 {dimension_numbers = #tpu.dot_dimension_numbers<[1], [0], [0], [1], [0, 0, 1, 1], [], []>} : vector<8x128xbf16>, vector<128x512xbf16>, vector<8x512xf32> -> vector<8x512xf32>
    %353 = arith.addf %347, %352 : vector<8x512xf32>
    %354 = vector.extract_strided_slice %353 {offsets = [0, 0], sizes = [8, 128], strides = [1, 1]} : vector<8x512xf32> to vector<8x128xf32>
    %cst_191 = arith.constant 5.000000e-01 : f32
    %355 = vector.broadcast %cst_191 : f32 to vector<8x128xf32>
    %356 = arith.mulf %355, %354 : vector<8x128xf32>
    %357 = math.tanh %356 : vector<8x128xf32>
    %cst_192 = arith.constant 5.000000e-01 : f32
    %358 = vector.broadcast %cst_192 : f32 to vector<8x128xf32>
    %359 = arith.mulf %358, %357 : vector<8x128xf32>
    %cst_193 = arith.constant 5.000000e-01 : f32
    %360 = vector.broadcast %cst_193 : f32 to vector<8x128xf32>
    %361 = arith.addf %359, %360 : vector<8x128xf32>
    %362 = vector.extract_strided_slice %353 {offsets = [0, 128], sizes = [8, 128], strides = [1, 1]} : vector<8x512xf32> to vector<8x128xf32>
    %cst_194 = arith.constant 5.000000e-01 : f32
    %363 = vector.broadcast %cst_194 : f32 to vector<8x128xf32>
    %364 = arith.mulf %363, %362 : vector<8x128xf32>
    %365 = math.tanh %364 : vector<8x128xf32>
    %cst_195 = arith.constant 5.000000e-01 : f32
    %366 = vector.broadcast %cst_195 : f32 to vector<8x128xf32>
    %367 = arith.mulf %366, %365 : vector<8x128xf32>
    %cst_196 = arith.constant 5.000000e-01 : f32
    %368 = vector.broadcast %cst_196 : f32 to vector<8x128xf32>
    %369 = arith.addf %367, %368 : vector<8x128xf32>
    %370 = vector.extract_strided_slice %353 {offsets = [0, 256], sizes = [8, 128], strides = [1, 1]} : vector<8x512xf32> to vector<8x128xf32>
    %371 = math.tanh %370 : vector<8x128xf32>
    %372 = vector.extract_strided_slice %353 {offsets = [0, 384], sizes = [8, 128], strides = [1, 1]} : vector<8x512xf32> to vector<8x128xf32>
    %cst_197 = arith.constant 5.000000e-01 : f32
    %373 = vector.broadcast %cst_197 : f32 to vector<8x128xf32>
    %374 = arith.mulf %373, %372 : vector<8x128xf32>
    %375 = math.tanh %374 : vector<8x128xf32>
    %cst_198 = arith.constant 5.000000e-01 : f32
    %376 = vector.broadcast %cst_198 : f32 to vector<8x128xf32>
    %377 = arith.mulf %376, %375 : vector<8x128xf32>
    %cst_199 = arith.constant 5.000000e-01 : f32
    %378 = vector.broadcast %cst_199 : f32 to vector<8x128xf32>
    %379 = arith.addf %377, %378 : vector<8x128xf32>
    %380 = arith.mulf %369, %349 : vector<8x128xf32>
    %381 = arith.mulf %361, %371 : vector<8x128xf32>
    %382 = arith.addf %380, %381 : vector<8x128xf32>
    %383 = math.tanh %382 : vector<8x128xf32>
    %384 = arith.mulf %379, %383 : vector<8x128xf32>
    %385 = arith.index_cast %c3_i32 : i32 to index
    %c0_200 = arith.constant 0 : index
    %c0_201 = arith.constant 0 : index
    %386 = vector.load %arg9[%385, %c0_200, %c0_201] : memref<8x8x128xf32, #tpu.memory_space<vmem>>, vector<1x8x128xf32>
    %387 = vector.shape_cast %386 : vector<1x8x128xf32> to vector<8x128xf32>
    %388 = vector.shape_cast %343 : vector<8x128xf32> to vector<1x8x128xf32>
    tpu.vector_store %arg9[%385, %c0_200, %c0_201], %388 {strides = array<i32>} : memref<8x8x128xf32, #tpu.memory_space<vmem>>, vector<1x8x128xf32>,
    %389 = arith.index_cast %302 : i32 to index
    %c0_202 = arith.constant 0 : index
    %c0_203 = arith.constant 0 : index
    %390 = vector.load %arg10[%389, %c0_202, %c0_203] : memref<8x8x128xf32, #tpu.memory_space<vmem>>, vector<1x8x128xf32>
    %391 = vector.shape_cast %390 : vector<1x8x128xf32> to vector<8x128xf32>
    %392 = vector.shape_cast %384 : vector<8x128xf32> to vector<1x8x128xf32>
    tpu.vector_store %arg10[%389, %c0_202, %c0_203], %392 {strides = array<i32>} : memref<8x8x128xf32, #tpu.memory_space<vmem>>, vector<1x8x128xf32>,
    %c0_204 = arith.constant 0 : index
    %c0_205 = arith.constant 0 : index
    %393 = vector.load %arg11[%c0_204, %c0_205] : memref<8x128xf32, #tpu.memory_space<vmem>>, vector<8x128xf32>
    tpu.vector_store %arg11[%c0_204, %c0_205], %343 {strides = array<i32>} : memref<8x128xf32, #tpu.memory_space<vmem>>, vector<8x128xf32>,
    %c0_206 = arith.constant 0 : index
    %c0_207 = arith.constant 0 : index
    %394 = vector.load %arg12[%c0_206, %c0_207] : memref<8x128xf32, #tpu.memory_space<vmem>>, vector<8x128xf32>
    tpu.vector_store %arg12[%c0_206, %c0_207], %341 {strides = array<i32>} : memref<8x128xf32, #tpu.memory_space<vmem>>, vector<8x128xf32>,
    %c0_208 = arith.constant 0 : index
    %c0_209 = arith.constant 0 : index
    %395 = vector.load %arg13[%c0_208, %c0_209] : memref<8x128xf32, #tpu.memory_space<vmem>>, vector<8x128xf32>
    tpu.vector_store %arg13[%c0_208, %c0_209], %384 {strides = array<i32>} : memref<8x128xf32, #tpu.memory_space<vmem>>, vector<8x128xf32>,
    %c0_210 = arith.constant 0 : index
    %c0_211 = arith.constant 0 : index
    %396 = vector.load %arg14[%c0_210, %c0_211] : memref<8x128xf32, #tpu.memory_space<vmem>>, vector<8x128xf32>
    tpu.vector_store %arg14[%c0_210, %c0_211], %382 {strides = array<i32>} : memref<8x128xf32, #tpu.memory_space<vmem>>, vector<8x128xf32>,
    %c4_i32 = arith.constant 4 : i32
    %c7_i32_212 = arith.constant 7 : i32
    %397 = arith.subi %c7_i32_212, %c4_i32 : i32
    %c8_i32_213 = arith.constant 8 : i32
    %398 = arith.muli %c4_i32, %c8_i32_213 : i32
    %399 = tpu.assume_multiple %398, 8 : i32
    %400 = arith.index_cast %399 : i32 to index
    %c0_214 = arith.constant 0 : index
    %401 = vector.load %arg15[%400, %c0_214] : memref<64x512xf32, #tpu.memory_space<vmem>>, vector<8x512xf32>
    %c0_215 = arith.constant 0 : index
    %c0_216 = arith.constant 0 : index
    %402 = vector.load %arg11[%c0_215, %c0_216] : memref<8x128xf32, #tpu.memory_space<vmem>>, vector<8x128xf32>
    %c0_217 = arith.constant 0 : index
    %c0_218 = arith.constant 0 : index
    %403 = vector.load %arg12[%c0_217, %c0_218] : memref<8x128xf32, #tpu.memory_space<vmem>>, vector<8x128xf32>
    %404 = arith.truncf %402 : vector<8x128xf32> to vector<8x128xbf16>
    %c0_219 = arith.constant 0 : index
    %c0_220 = arith.constant 0 : index
    %405 = vector.load %arg5[%c0_219, %c0_220] : memref<128x512xbf16, #tpu.memory_space<vmem>>, vector<128x512xbf16>
    %cst_221 = arith.constant dense<0.000000e+00> : vector<8x512xf32>
    %406 = tpu.matmul %404, %405, %cst_221 {dimension_numbers = #tpu.dot_dimension_numbers<[1], [0], [0], [1], [0, 0, 1, 1], [], []>} : vector<8x128xbf16>, vector<128x512xbf16>, vector<8x512xf32> -> vector<8x512xf32>
    %407 = arith.addf %401, %406 : vector<8x512xf32>
    %408 = vector.extract_strided_slice %407 {offsets = [0, 0], sizes = [8, 128], strides = [1, 1]} : vector<8x512xf32> to vector<8x128xf32>
    %cst_222 = arith.constant 5.000000e-01 : f32
    %409 = vector.broadcast %cst_222 : f32 to vector<8x128xf32>
    %410 = arith.mulf %409, %408 : vector<8x128xf32>
    %411 = math.tanh %410 : vector<8x128xf32>
    %cst_223 = arith.constant 5.000000e-01 : f32
    %412 = vector.broadcast %cst_223 : f32 to vector<8x128xf32>
    %413 = arith.mulf %412, %411 : vector<8x128xf32>
    %cst_224 = arith.constant 5.000000e-01 : f32
    %414 = vector.broadcast %cst_224 : f32 to vector<8x128xf32>
    %415 = arith.addf %413, %414 : vector<8x128xf32>
    %416 = vector.extract_strided_slice %407 {offsets = [0, 128], sizes = [8, 128], strides = [1, 1]} : vector<8x512xf32> to vector<8x128xf32>
    %cst_225 = arith.constant 5.000000e-01 : f32
    %417 = vector.broadcast %cst_225 : f32 to vector<8x128xf32>
    %418 = arith.mulf %417, %416 : vector<8x128xf32>
    %419 = math.tanh %418 : vector<8x128xf32>
    %cst_226 = arith.constant 5.000000e-01 : f32
    %420 = vector.broadcast %cst_226 : f32 to vector<8x128xf32>
    %421 = arith.mulf %420, %419 : vector<8x128xf32>
    %cst_227 = arith.constant 5.000000e-01 : f32
    %422 = vector.broadcast %cst_227 : f32 to vector<8x128xf32>
    %423 = arith.addf %421, %422 : vector<8x128xf32>
    %424 = vector.extract_strided_slice %407 {offsets = [0, 256], sizes = [8, 128], strides = [1, 1]} : vector<8x512xf32> to vector<8x128xf32>
    %425 = math.tanh %424 : vector<8x128xf32>
    %426 = vector.extract_strided_slice %407 {offsets = [0, 384], sizes = [8, 128], strides = [1, 1]} : vector<8x512xf32> to vector<8x128xf32>
    %cst_228 = arith.constant 5.000000e-01 : f32
    %427 = vector.broadcast %cst_228 : f32 to vector<8x128xf32>
    %428 = arith.mulf %427, %426 : vector<8x128xf32>
    %429 = math.tanh %428 : vector<8x128xf32>
    %cst_229 = arith.constant 5.000000e-01 : f32
    %430 = vector.broadcast %cst_229 : f32 to vector<8x128xf32>
    %431 = arith.mulf %430, %429 : vector<8x128xf32>
    %cst_230 = arith.constant 5.000000e-01 : f32
    %432 = vector.broadcast %cst_230 : f32 to vector<8x128xf32>
    %433 = arith.addf %431, %432 : vector<8x128xf32>
    %434 = arith.mulf %423, %403 : vector<8x128xf32>
    %435 = arith.mulf %415, %425 : vector<8x128xf32>
    %436 = arith.addf %434, %435 : vector<8x128xf32>
    %437 = math.tanh %436 : vector<8x128xf32>
    %438 = arith.mulf %433, %437 : vector<8x128xf32>
    %c8_i32_231 = arith.constant 8 : i32
    %439 = arith.muli %397, %c8_i32_231 : i32
    %440 = tpu.assume_multiple %439, 8 : i32
    %441 = arith.index_cast %440 : i32 to index
    %c0_232 = arith.constant 0 : index
    %442 = vector.load %arg16[%441, %c0_232] : memref<64x512xf32, #tpu.memory_space<vmem>>, vector<8x512xf32>
    %c0_233 = arith.constant 0 : index
    %c0_234 = arith.constant 0 : index
    %443 = vector.load %arg13[%c0_233, %c0_234] : memref<8x128xf32, #tpu.memory_space<vmem>>, vector<8x128xf32>
    %c0_235 = arith.constant 0 : index
    %c0_236 = arith.constant 0 : index
    %444 = vector.load %arg14[%c0_235, %c0_236] : memref<8x128xf32, #tpu.memory_space<vmem>>, vector<8x128xf32>
    %445 = arith.truncf %443 : vector<8x128xf32> to vector<8x128xbf16>
    %c0_237 = arith.constant 0 : index
    %c0_238 = arith.constant 0 : index
    %446 = vector.load %arg6[%c0_237, %c0_238] : memref<128x512xbf16, #tpu.memory_space<vmem>>, vector<128x512xbf16>
    %cst_239 = arith.constant dense<0.000000e+00> : vector<8x512xf32>
    %447 = tpu.matmul %445, %446, %cst_239 {dimension_numbers = #tpu.dot_dimension_numbers<[1], [0], [0], [1], [0, 0, 1, 1], [], []>} : vector<8x128xbf16>, vector<128x512xbf16>, vector<8x512xf32> -> vector<8x512xf32>
    %448 = arith.addf %442, %447 : vector<8x512xf32>
    %449 = vector.extract_strided_slice %448 {offsets = [0, 0], sizes = [8, 128], strides = [1, 1]} : vector<8x512xf32> to vector<8x128xf32>
    %cst_240 = arith.constant 5.000000e-01 : f32
    %450 = vector.broadcast %cst_240 : f32 to vector<8x128xf32>
    %451 = arith.mulf %450, %449 : vector<8x128xf32>
    %452 = math.tanh %451 : vector<8x128xf32>
    %cst_241 = arith.constant 5.000000e-01 : f32
    %453 = vector.broadcast %cst_241 : f32 to vector<8x128xf32>
    %454 = arith.mulf %453, %452 : vector<8x128xf32>
    %cst_242 = arith.constant 5.000000e-01 : f32
    %455 = vector.broadcast %cst_242 : f32 to vector<8x128xf32>
    %456 = arith.addf %454, %455 : vector<8x128xf32>
    %457 = vector.extract_strided_slice %448 {offsets = [0, 128], sizes = [8, 128], strides = [1, 1]} : vector<8x512xf32> to vector<8x128xf32>
    %cst_243 = arith.constant 5.000000e-01 : f32
    %458 = vector.broadcast %cst_243 : f32 to vector<8x128xf32>
    %459 = arith.mulf %458, %457 : vector<8x128xf32>
    %460 = math.tanh %459 : vector<8x128xf32>
    %cst_244 = arith.constant 5.000000e-01 : f32
    %461 = vector.broadcast %cst_244 : f32 to vector<8x128xf32>
    %462 = arith.mulf %461, %460 : vector<8x128xf32>
    %cst_245 = arith.constant 5.000000e-01 : f32
    %463 = vector.broadcast %cst_245 : f32 to vector<8x128xf32>
    %464 = arith.addf %462, %463 : vector<8x128xf32>
    %465 = vector.extract_strided_slice %448 {offsets = [0, 256], sizes = [8, 128], strides = [1, 1]} : vector<8x512xf32> to vector<8x128xf32>
    %466 = math.tanh %465 : vector<8x128xf32>
    %467 = vector.extract_strided_slice %448 {offsets = [0, 384], sizes = [8, 128], strides = [1, 1]} : vector<8x512xf32> to vector<8x128xf32>
    %cst_246 = arith.constant 5.000000e-01 : f32
    %468 = vector.broadcast %cst_246 : f32 to vector<8x128xf32>
    %469 = arith.mulf %468, %467 : vector<8x128xf32>
    %470 = math.tanh %469 : vector<8x128xf32>
    %cst_247 = arith.constant 5.000000e-01 : f32
    %471 = vector.broadcast %cst_247 : f32 to vector<8x128xf32>
    %472 = arith.mulf %471, %470 : vector<8x128xf32>
    %cst_248 = arith.constant 5.000000e-01 : f32
    %473 = vector.broadcast %cst_248 : f32 to vector<8x128xf32>
    %474 = arith.addf %472, %473 : vector<8x128xf32>
    %475 = arith.mulf %464, %444 : vector<8x128xf32>
    %476 = arith.mulf %456, %466 : vector<8x128xf32>
    %477 = arith.addf %475, %476 : vector<8x128xf32>
    %478 = math.tanh %477 : vector<8x128xf32>
    %479 = arith.mulf %474, %478 : vector<8x128xf32>
    %480 = arith.index_cast %c4_i32 : i32 to index
    %c0_249 = arith.constant 0 : index
    %c0_250 = arith.constant 0 : index
    %481 = vector.load %arg9[%480, %c0_249, %c0_250] : memref<8x8x128xf32, #tpu.memory_space<vmem>>, vector<1x8x128xf32>
    %482 = vector.shape_cast %481 : vector<1x8x128xf32> to vector<8x128xf32>
    %483 = vector.shape_cast %438 : vector<8x128xf32> to vector<1x8x128xf32>
    tpu.vector_store %arg9[%480, %c0_249, %c0_250], %483 {strides = array<i32>} : memref<8x8x128xf32, #tpu.memory_space<vmem>>, vector<1x8x128xf32>,
    %484 = arith.index_cast %397 : i32 to index
    %c0_251 = arith.constant 0 : index
    %c0_252 = arith.constant 0 : index
    %485 = vector.load %arg10[%484, %c0_251, %c0_252] : memref<8x8x128xf32, #tpu.memory_space<vmem>>, vector<1x8x128xf32>
    %486 = vector.shape_cast %485 : vector<1x8x128xf32> to vector<8x128xf32>
    %487 = vector.shape_cast %479 : vector<8x128xf32> to vector<1x8x128xf32>
    tpu.vector_store %arg10[%484, %c0_251, %c0_252], %487 {strides = array<i32>} : memref<8x8x128xf32, #tpu.memory_space<vmem>>, vector<1x8x128xf32>,
    %c0_253 = arith.constant 0 : index
    %c0_254 = arith.constant 0 : index
    %488 = vector.load %arg11[%c0_253, %c0_254] : memref<8x128xf32, #tpu.memory_space<vmem>>, vector<8x128xf32>
    tpu.vector_store %arg11[%c0_253, %c0_254], %438 {strides = array<i32>} : memref<8x128xf32, #tpu.memory_space<vmem>>, vector<8x128xf32>,
    %c0_255 = arith.constant 0 : index
    %c0_256 = arith.constant 0 : index
    %489 = vector.load %arg12[%c0_255, %c0_256] : memref<8x128xf32, #tpu.memory_space<vmem>>, vector<8x128xf32>
    tpu.vector_store %arg12[%c0_255, %c0_256], %436 {strides = array<i32>} : memref<8x128xf32, #tpu.memory_space<vmem>>, vector<8x128xf32>,
    %c0_257 = arith.constant 0 : index
    %c0_258 = arith.constant 0 : index
    %490 = vector.load %arg13[%c0_257, %c0_258] : memref<8x128xf32, #tpu.memory_space<vmem>>, vector<8x128xf32>
    tpu.vector_store %arg13[%c0_257, %c0_258], %479 {strides = array<i32>} : memref<8x128xf32, #tpu.memory_space<vmem>>, vector<8x128xf32>,
    %c0_259 = arith.constant 0 : index
    %c0_260 = arith.constant 0 : index
    %491 = vector.load %arg14[%c0_259, %c0_260] : memref<8x128xf32, #tpu.memory_space<vmem>>, vector<8x128xf32>
    tpu.vector_store %arg14[%c0_259, %c0_260], %477 {strides = array<i32>} : memref<8x128xf32, #tpu.memory_space<vmem>>, vector<8x128xf32>,
    %c5_i32 = arith.constant 5 : i32
    %c7_i32_261 = arith.constant 7 : i32
    %492 = arith.subi %c7_i32_261, %c5_i32 : i32
    %c8_i32_262 = arith.constant 8 : i32
    %493 = arith.muli %c5_i32, %c8_i32_262 : i32
    %494 = tpu.assume_multiple %493, 8 : i32
    %495 = arith.index_cast %494 : i32 to index
    %c0_263 = arith.constant 0 : index
    %496 = vector.load %arg15[%495, %c0_263] : memref<64x512xf32, #tpu.memory_space<vmem>>, vector<8x512xf32>
    %c0_264 = arith.constant 0 : index
    %c0_265 = arith.constant 0 : index
    %497 = vector.load %arg11[%c0_264, %c0_265] : memref<8x128xf32, #tpu.memory_space<vmem>>, vector<8x128xf32>
    %c0_266 = arith.constant 0 : index
    %c0_267 = arith.constant 0 : index
    %498 = vector.load %arg12[%c0_266, %c0_267] : memref<8x128xf32, #tpu.memory_space<vmem>>, vector<8x128xf32>
    %499 = arith.truncf %497 : vector<8x128xf32> to vector<8x128xbf16>
    %c0_268 = arith.constant 0 : index
    %c0_269 = arith.constant 0 : index
    %500 = vector.load %arg5[%c0_268, %c0_269] : memref<128x512xbf16, #tpu.memory_space<vmem>>, vector<128x512xbf16>
    %cst_270 = arith.constant dense<0.000000e+00> : vector<8x512xf32>
    %501 = tpu.matmul %499, %500, %cst_270 {dimension_numbers = #tpu.dot_dimension_numbers<[1], [0], [0], [1], [0, 0, 1, 1], [], []>} : vector<8x128xbf16>, vector<128x512xbf16>, vector<8x512xf32> -> vector<8x512xf32>
    %502 = arith.addf %496, %501 : vector<8x512xf32>
    %503 = vector.extract_strided_slice %502 {offsets = [0, 0], sizes = [8, 128], strides = [1, 1]} : vector<8x512xf32> to vector<8x128xf32>
    %cst_271 = arith.constant 5.000000e-01 : f32
    %504 = vector.broadcast %cst_271 : f32 to vector<8x128xf32>
    %505 = arith.mulf %504, %503 : vector<8x128xf32>
    %506 = math.tanh %505 : vector<8x128xf32>
    %cst_272 = arith.constant 5.000000e-01 : f32
    %507 = vector.broadcast %cst_272 : f32 to vector<8x128xf32>
    %508 = arith.mulf %507, %506 : vector<8x128xf32>
    %cst_273 = arith.constant 5.000000e-01 : f32
    %509 = vector.broadcast %cst_273 : f32 to vector<8x128xf32>
    %510 = arith.addf %508, %509 : vector<8x128xf32>
    %511 = vector.extract_strided_slice %502 {offsets = [0, 128], sizes = [8, 128], strides = [1, 1]} : vector<8x512xf32> to vector<8x128xf32>
    %cst_274 = arith.constant 5.000000e-01 : f32
    %512 = vector.broadcast %cst_274 : f32 to vector<8x128xf32>
    %513 = arith.mulf %512, %511 : vector<8x128xf32>
    %514 = math.tanh %513 : vector<8x128xf32>
    %cst_275 = arith.constant 5.000000e-01 : f32
    %515 = vector.broadcast %cst_275 : f32 to vector<8x128xf32>
    %516 = arith.mulf %515, %514 : vector<8x128xf32>
    %cst_276 = arith.constant 5.000000e-01 : f32
    %517 = vector.broadcast %cst_276 : f32 to vector<8x128xf32>
    %518 = arith.addf %516, %517 : vector<8x128xf32>
    %519 = vector.extract_strided_slice %502 {offsets = [0, 256], sizes = [8, 128], strides = [1, 1]} : vector<8x512xf32> to vector<8x128xf32>
    %520 = math.tanh %519 : vector<8x128xf32>
    %521 = vector.extract_strided_slice %502 {offsets = [0, 384], sizes = [8, 128], strides = [1, 1]} : vector<8x512xf32> to vector<8x128xf32>
    %cst_277 = arith.constant 5.000000e-01 : f32
    %522 = vector.broadcast %cst_277 : f32 to vector<8x128xf32>
    %523 = arith.mulf %522, %521 : vector<8x128xf32>
    %524 = math.tanh %523 : vector<8x128xf32>
    %cst_278 = arith.constant 5.000000e-01 : f32
    %525 = vector.broadcast %cst_278 : f32 to vector<8x128xf32>
    %526 = arith.mulf %525, %524 : vector<8x128xf32>
    %cst_279 = arith.constant 5.000000e-01 : f32
    %527 = vector.broadcast %cst_279 : f32 to vector<8x128xf32>
    %528 = arith.addf %526, %527 : vector<8x128xf32>
    %529 = arith.mulf %518, %498 : vector<8x128xf32>
    %530 = arith.mulf %510, %520 : vector<8x128xf32>
    %531 = arith.addf %529, %530 : vector<8x128xf32>
    %532 = math.tanh %531 : vector<8x128xf32>
    %533 = arith.mulf %528, %532 : vector<8x128xf32>
    %c8_i32_280 = arith.constant 8 : i32
    %534 = arith.muli %492, %c8_i32_280 : i32
    %535 = tpu.assume_multiple %534, 8 : i32
    %536 = arith.index_cast %535 : i32 to index
    %c0_281 = arith.constant 0 : index
    %537 = vector.load %arg16[%536, %c0_281] : memref<64x512xf32, #tpu.memory_space<vmem>>, vector<8x512xf32>
    %c0_282 = arith.constant 0 : index
    %c0_283 = arith.constant 0 : index
    %538 = vector.load %arg13[%c0_282, %c0_283] : memref<8x128xf32, #tpu.memory_space<vmem>>, vector<8x128xf32>
    %c0_284 = arith.constant 0 : index
    %c0_285 = arith.constant 0 : index
    %539 = vector.load %arg14[%c0_284, %c0_285] : memref<8x128xf32, #tpu.memory_space<vmem>>, vector<8x128xf32>
    %540 = arith.truncf %538 : vector<8x128xf32> to vector<8x128xbf16>
    %c0_286 = arith.constant 0 : index
    %c0_287 = arith.constant 0 : index
    %541 = vector.load %arg6[%c0_286, %c0_287] : memref<128x512xbf16, #tpu.memory_space<vmem>>, vector<128x512xbf16>
    %cst_288 = arith.constant dense<0.000000e+00> : vector<8x512xf32>
    %542 = tpu.matmul %540, %541, %cst_288 {dimension_numbers = #tpu.dot_dimension_numbers<[1], [0], [0], [1], [0, 0, 1, 1], [], []>} : vector<8x128xbf16>, vector<128x512xbf16>, vector<8x512xf32> -> vector<8x512xf32>
    %543 = arith.addf %537, %542 : vector<8x512xf32>
    %544 = vector.extract_strided_slice %543 {offsets = [0, 0], sizes = [8, 128], strides = [1, 1]} : vector<8x512xf32> to vector<8x128xf32>
    %cst_289 = arith.constant 5.000000e-01 : f32
    %545 = vector.broadcast %cst_289 : f32 to vector<8x128xf32>
    %546 = arith.mulf %545, %544 : vector<8x128xf32>
    %547 = math.tanh %546 : vector<8x128xf32>
    %cst_290 = arith.constant 5.000000e-01 : f32
    %548 = vector.broadcast %cst_290 : f32 to vector<8x128xf32>
    %549 = arith.mulf %548, %547 : vector<8x128xf32>
    %cst_291 = arith.constant 5.000000e-01 : f32
    %550 = vector.broadcast %cst_291 : f32 to vector<8x128xf32>
    %551 = arith.addf %549, %550 : vector<8x128xf32>
    %552 = vector.extract_strided_slice %543 {offsets = [0, 128], sizes = [8, 128], strides = [1, 1]} : vector<8x512xf32> to vector<8x128xf32>
    %cst_292 = arith.constant 5.000000e-01 : f32
    %553 = vector.broadcast %cst_292 : f32 to vector<8x128xf32>
    %554 = arith.mulf %553, %552 : vector<8x128xf32>
    %555 = math.tanh %554 : vector<8x128xf32>
    %cst_293 = arith.constant 5.000000e-01 : f32
    %556 = vector.broadcast %cst_293 : f32 to vector<8x128xf32>
    %557 = arith.mulf %556, %555 : vector<8x128xf32>
    %cst_294 = arith.constant 5.000000e-01 : f32
    %558 = vector.broadcast %cst_294 : f32 to vector<8x128xf32>
    %559 = arith.addf %557, %558 : vector<8x128xf32>
    %560 = vector.extract_strided_slice %543 {offsets = [0, 256], sizes = [8, 128], strides = [1, 1]} : vector<8x512xf32> to vector<8x128xf32>
    %561 = math.tanh %560 : vector<8x128xf32>
    %562 = vector.extract_strided_slice %543 {offsets = [0, 384], sizes = [8, 128], strides = [1, 1]} : vector<8x512xf32> to vector<8x128xf32>
    %cst_295 = arith.constant 5.000000e-01 : f32
    %563 = vector.broadcast %cst_295 : f32 to vector<8x128xf32>
    %564 = arith.mulf %563, %562 : vector<8x128xf32>
    %565 = math.tanh %564 : vector<8x128xf32>
    %cst_296 = arith.constant 5.000000e-01 : f32
    %566 = vector.broadcast %cst_296 : f32 to vector<8x128xf32>
    %567 = arith.mulf %566, %565 : vector<8x128xf32>
    %cst_297 = arith.constant 5.000000e-01 : f32
    %568 = vector.broadcast %cst_297 : f32 to vector<8x128xf32>
    %569 = arith.addf %567, %568 : vector<8x128xf32>
    %570 = arith.mulf %559, %539 : vector<8x128xf32>
    %571 = arith.mulf %551, %561 : vector<8x128xf32>
    %572 = arith.addf %570, %571 : vector<8x128xf32>
    %573 = math.tanh %572 : vector<8x128xf32>
    %574 = arith.mulf %569, %573 : vector<8x128xf32>
    %575 = arith.index_cast %c5_i32 : i32 to index
    %c0_298 = arith.constant 0 : index
    %c0_299 = arith.constant 0 : index
    %576 = vector.load %arg9[%575, %c0_298, %c0_299] : memref<8x8x128xf32, #tpu.memory_space<vmem>>, vector<1x8x128xf32>
    %577 = vector.shape_cast %576 : vector<1x8x128xf32> to vector<8x128xf32>
    %578 = vector.shape_cast %533 : vector<8x128xf32> to vector<1x8x128xf32>
    tpu.vector_store %arg9[%575, %c0_298, %c0_299], %578 {strides = array<i32>} : memref<8x8x128xf32, #tpu.memory_space<vmem>>, vector<1x8x128xf32>,
    %579 = arith.index_cast %492 : i32 to index
    %c0_300 = arith.constant 0 : index
    %c0_301 = arith.constant 0 : index
    %580 = vector.load %arg10[%579, %c0_300, %c0_301] : memref<8x8x128xf32, #tpu.memory_space<vmem>>, vector<1x8x128xf32>
    %581 = vector.shape_cast %580 : vector<1x8x128xf32> to vector<8x128xf32>
    %582 = vector.shape_cast %574 : vector<8x128xf32> to vector<1x8x128xf32>
    tpu.vector_store %arg10[%579, %c0_300, %c0_301], %582 {strides = array<i32>} : memref<8x8x128xf32, #tpu.memory_space<vmem>>, vector<1x8x128xf32>,
    %c0_302 = arith.constant 0 : index
    %c0_303 = arith.constant 0 : index
    %583 = vector.load %arg11[%c0_302, %c0_303] : memref<8x128xf32, #tpu.memory_space<vmem>>, vector<8x128xf32>
    tpu.vector_store %arg11[%c0_302, %c0_303], %533 {strides = array<i32>} : memref<8x128xf32, #tpu.memory_space<vmem>>, vector<8x128xf32>,
    %c0_304 = arith.constant 0 : index
    %c0_305 = arith.constant 0 : index
    %584 = vector.load %arg12[%c0_304, %c0_305] : memref<8x128xf32, #tpu.memory_space<vmem>>, vector<8x128xf32>
    tpu.vector_store %arg12[%c0_304, %c0_305], %531 {strides = array<i32>} : memref<8x128xf32, #tpu.memory_space<vmem>>, vector<8x128xf32>,
    %c0_306 = arith.constant 0 : index
    %c0_307 = arith.constant 0 : index
    %585 = vector.load %arg13[%c0_306, %c0_307] : memref<8x128xf32, #tpu.memory_space<vmem>>, vector<8x128xf32>
    tpu.vector_store %arg13[%c0_306, %c0_307], %574 {strides = array<i32>} : memref<8x128xf32, #tpu.memory_space<vmem>>, vector<8x128xf32>,
    %c0_308 = arith.constant 0 : index
    %c0_309 = arith.constant 0 : index
    %586 = vector.load %arg14[%c0_308, %c0_309] : memref<8x128xf32, #tpu.memory_space<vmem>>, vector<8x128xf32>
    tpu.vector_store %arg14[%c0_308, %c0_309], %572 {strides = array<i32>} : memref<8x128xf32, #tpu.memory_space<vmem>>, vector<8x128xf32>,
    %c6_i32 = arith.constant 6 : i32
    %c7_i32_310 = arith.constant 7 : i32
    %587 = arith.subi %c7_i32_310, %c6_i32 : i32
    %c8_i32_311 = arith.constant 8 : i32
    %588 = arith.muli %c6_i32, %c8_i32_311 : i32
    %589 = tpu.assume_multiple %588, 8 : i32
    %590 = arith.index_cast %589 : i32 to index
    %c0_312 = arith.constant 0 : index
    %591 = vector.load %arg15[%590, %c0_312] : memref<64x512xf32, #tpu.memory_space<vmem>>, vector<8x512xf32>
    %c0_313 = arith.constant 0 : index
    %c0_314 = arith.constant 0 : index
    %592 = vector.load %arg11[%c0_313, %c0_314] : memref<8x128xf32, #tpu.memory_space<vmem>>, vector<8x128xf32>
    %c0_315 = arith.constant 0 : index
    %c0_316 = arith.constant 0 : index
    %593 = vector.load %arg12[%c0_315, %c0_316] : memref<8x128xf32, #tpu.memory_space<vmem>>, vector<8x128xf32>
    %594 = arith.truncf %592 : vector<8x128xf32> to vector<8x128xbf16>
    %c0_317 = arith.constant 0 : index
    %c0_318 = arith.constant 0 : index
    %595 = vector.load %arg5[%c0_317, %c0_318] : memref<128x512xbf16, #tpu.memory_space<vmem>>, vector<128x512xbf16>
    %cst_319 = arith.constant dense<0.000000e+00> : vector<8x512xf32>
    %596 = tpu.matmul %594, %595, %cst_319 {dimension_numbers = #tpu.dot_dimension_numbers<[1], [0], [0], [1], [0, 0, 1, 1], [], []>} : vector<8x128xbf16>, vector<128x512xbf16>, vector<8x512xf32> -> vector<8x512xf32>
    %597 = arith.addf %591, %596 : vector<8x512xf32>
    %598 = vector.extract_strided_slice %597 {offsets = [0, 0], sizes = [8, 128], strides = [1, 1]} : vector<8x512xf32> to vector<8x128xf32>
    %cst_320 = arith.constant 5.000000e-01 : f32
    %599 = vector.broadcast %cst_320 : f32 to vector<8x128xf32>
    %600 = arith.mulf %599, %598 : vector<8x128xf32>
    %601 = math.tanh %600 : vector<8x128xf32>
    %cst_321 = arith.constant 5.000000e-01 : f32
    %602 = vector.broadcast %cst_321 : f32 to vector<8x128xf32>
    %603 = arith.mulf %602, %601 : vector<8x128xf32>
    %cst_322 = arith.constant 5.000000e-01 : f32
    %604 = vector.broadcast %cst_322 : f32 to vector<8x128xf32>
    %605 = arith.addf %603, %604 : vector<8x128xf32>
    %606 = vector.extract_strided_slice %597 {offsets = [0, 128], sizes = [8, 128], strides = [1, 1]} : vector<8x512xf32> to vector<8x128xf32>
    %cst_323 = arith.constant 5.000000e-01 : f32
    %607 = vector.broadcast %cst_323 : f32 to vector<8x128xf32>
    %608 = arith.mulf %607, %606 : vector<8x128xf32>
    %609 = math.tanh %608 : vector<8x128xf32>
    %cst_324 = arith.constant 5.000000e-01 : f32
    %610 = vector.broadcast %cst_324 : f32 to vector<8x128xf32>
    %611 = arith.mulf %610, %609 : vector<8x128xf32>
    %cst_325 = arith.constant 5.000000e-01 : f32
    %612 = vector.broadcast %cst_325 : f32 to vector<8x128xf32>
    %613 = arith.addf %611, %612 : vector<8x128xf32>
    %614 = vector.extract_strided_slice %597 {offsets = [0, 256], sizes = [8, 128], strides = [1, 1]} : vector<8x512xf32> to vector<8x128xf32>
    %615 = math.tanh %614 : vector<8x128xf32>
    %616 = vector.extract_strided_slice %597 {offsets = [0, 384], sizes = [8, 128], strides = [1, 1]} : vector<8x512xf32> to vector<8x128xf32>
    %cst_326 = arith.constant 5.000000e-01 : f32
    %617 = vector.broadcast %cst_326 : f32 to vector<8x128xf32>
    %618 = arith.mulf %617, %616 : vector<8x128xf32>
    %619 = math.tanh %618 : vector<8x128xf32>
    %cst_327 = arith.constant 5.000000e-01 : f32
    %620 = vector.broadcast %cst_327 : f32 to vector<8x128xf32>
    %621 = arith.mulf %620, %619 : vector<8x128xf32>
    %cst_328 = arith.constant 5.000000e-01 : f32
    %622 = vector.broadcast %cst_328 : f32 to vector<8x128xf32>
    %623 = arith.addf %621, %622 : vector<8x128xf32>
    %624 = arith.mulf %613, %593 : vector<8x128xf32>
    %625 = arith.mulf %605, %615 : vector<8x128xf32>
    %626 = arith.addf %624, %625 : vector<8x128xf32>
    %627 = math.tanh %626 : vector<8x128xf32>
    %628 = arith.mulf %623, %627 : vector<8x128xf32>
    %c8_i32_329 = arith.constant 8 : i32
    %629 = arith.muli %587, %c8_i32_329 : i32
    %630 = tpu.assume_multiple %629, 8 : i32
    %631 = arith.index_cast %630 : i32 to index
    %c0_330 = arith.constant 0 : index
    %632 = vector.load %arg16[%631, %c0_330] : memref<64x512xf32, #tpu.memory_space<vmem>>, vector<8x512xf32>
    %c0_331 = arith.constant 0 : index
    %c0_332 = arith.constant 0 : index
    %633 = vector.load %arg13[%c0_331, %c0_332] : memref<8x128xf32, #tpu.memory_space<vmem>>, vector<8x128xf32>
    %c0_333 = arith.constant 0 : index
    %c0_334 = arith.constant 0 : index
    %634 = vector.load %arg14[%c0_333, %c0_334] : memref<8x128xf32, #tpu.memory_space<vmem>>, vector<8x128xf32>
    %635 = arith.truncf %633 : vector<8x128xf32> to vector<8x128xbf16>
    %c0_335 = arith.constant 0 : index
    %c0_336 = arith.constant 0 : index
    %636 = vector.load %arg6[%c0_335, %c0_336] : memref<128x512xbf16, #tpu.memory_space<vmem>>, vector<128x512xbf16>
    %cst_337 = arith.constant dense<0.000000e+00> : vector<8x512xf32>
    %637 = tpu.matmul %635, %636, %cst_337 {dimension_numbers = #tpu.dot_dimension_numbers<[1], [0], [0], [1], [0, 0, 1, 1], [], []>} : vector<8x128xbf16>, vector<128x512xbf16>, vector<8x512xf32> -> vector<8x512xf32>
    %638 = arith.addf %632, %637 : vector<8x512xf32>
    %639 = vector.extract_strided_slice %638 {offsets = [0, 0], sizes = [8, 128], strides = [1, 1]} : vector<8x512xf32> to vector<8x128xf32>
    %cst_338 = arith.constant 5.000000e-01 : f32
    %640 = vector.broadcast %cst_338 : f32 to vector<8x128xf32>
    %641 = arith.mulf %640, %639 : vector<8x128xf32>
    %642 = math.tanh %641 : vector<8x128xf32>
    %cst_339 = arith.constant 5.000000e-01 : f32
    %643 = vector.broadcast %cst_339 : f32 to vector<8x128xf32>
    %644 = arith.mulf %643, %642 : vector<8x128xf32>
    %cst_340 = arith.constant 5.000000e-01 : f32
    %645 = vector.broadcast %cst_340 : f32 to vector<8x128xf32>
    %646 = arith.addf %644, %645 : vector<8x128xf32>
    %647 = vector.extract_strided_slice %638 {offsets = [0, 128], sizes = [8, 128], strides = [1, 1]} : vector<8x512xf32> to vector<8x128xf32>
    %cst_341 = arith.constant 5.000000e-01 : f32
    %648 = vector.broadcast %cst_341 : f32 to vector<8x128xf32>
    %649 = arith.mulf %648, %647 : vector<8x128xf32>
    %650 = math.tanh %649 : vector<8x128xf32>
    %cst_342 = arith.constant 5.000000e-01 : f32
    %651 = vector.broadcast %cst_342 : f32 to vector<8x128xf32>
    %652 = arith.mulf %651, %650 : vector<8x128xf32>
    %cst_343 = arith.constant 5.000000e-01 : f32
    %653 = vector.broadcast %cst_343 : f32 to vector<8x128xf32>
    %654 = arith.addf %652, %653 : vector<8x128xf32>
    %655 = vector.extract_strided_slice %638 {offsets = [0, 256], sizes = [8, 128], strides = [1, 1]} : vector<8x512xf32> to vector<8x128xf32>
    %656 = math.tanh %655 : vector<8x128xf32>
    %657 = vector.extract_strided_slice %638 {offsets = [0, 384], sizes = [8, 128], strides = [1, 1]} : vector<8x512xf32> to vector<8x128xf32>
    %cst_344 = arith.constant 5.000000e-01 : f32
    %658 = vector.broadcast %cst_344 : f32 to vector<8x128xf32>
    %659 = arith.mulf %658, %657 : vector<8x128xf32>
    %660 = math.tanh %659 : vector<8x128xf32>
    %cst_345 = arith.constant 5.000000e-01 : f32
    %661 = vector.broadcast %cst_345 : f32 to vector<8x128xf32>
    %662 = arith.mulf %661, %660 : vector<8x128xf32>
    %cst_346 = arith.constant 5.000000e-01 : f32
    %663 = vector.broadcast %cst_346 : f32 to vector<8x128xf32>
    %664 = arith.addf %662, %663 : vector<8x128xf32>
    %665 = arith.mulf %654, %634 : vector<8x128xf32>
    %666 = arith.mulf %646, %656 : vector<8x128xf32>
    %667 = arith.addf %665, %666 : vector<8x128xf32>
    %668 = math.tanh %667 : vector<8x128xf32>
    %669 = arith.mulf %664, %668 : vector<8x128xf32>
    %670 = arith.index_cast %c6_i32 : i32 to index
    %c0_347 = arith.constant 0 : index
    %c0_348 = arith.constant 0 : index
    %671 = vector.load %arg9[%670, %c0_347, %c0_348] : memref<8x8x128xf32, #tpu.memory_space<vmem>>, vector<1x8x128xf32>
    %672 = vector.shape_cast %671 : vector<1x8x128xf32> to vector<8x128xf32>
    %673 = vector.shape_cast %628 : vector<8x128xf32> to vector<1x8x128xf32>
    tpu.vector_store %arg9[%670, %c0_347, %c0_348], %673 {strides = array<i32>} : memref<8x8x128xf32, #tpu.memory_space<vmem>>, vector<1x8x128xf32>,
    %674 = arith.index_cast %587 : i32 to index
    %c0_349 = arith.constant 0 : index
    %c0_350 = arith.constant 0 : index
    %675 = vector.load %arg10[%674, %c0_349, %c0_350] : memref<8x8x128xf32, #tpu.memory_space<vmem>>, vector<1x8x128xf32>
    %676 = vector.shape_cast %675 : vector<1x8x128xf32> to vector<8x128xf32>
    %677 = vector.shape_cast %669 : vector<8x128xf32> to vector<1x8x128xf32>
    tpu.vector_store %arg10[%674, %c0_349, %c0_350], %677 {strides = array<i32>} : memref<8x8x128xf32, #tpu.memory_space<vmem>>, vector<1x8x128xf32>,
    %c0_351 = arith.constant 0 : index
    %c0_352 = arith.constant 0 : index
    %678 = vector.load %arg11[%c0_351, %c0_352] : memref<8x128xf32, #tpu.memory_space<vmem>>, vector<8x128xf32>
    tpu.vector_store %arg11[%c0_351, %c0_352], %628 {strides = array<i32>} : memref<8x128xf32, #tpu.memory_space<vmem>>, vector<8x128xf32>,
    %c0_353 = arith.constant 0 : index
    %c0_354 = arith.constant 0 : index
    %679 = vector.load %arg12[%c0_353, %c0_354] : memref<8x128xf32, #tpu.memory_space<vmem>>, vector<8x128xf32>
    tpu.vector_store %arg12[%c0_353, %c0_354], %626 {strides = array<i32>} : memref<8x128xf32, #tpu.memory_space<vmem>>, vector<8x128xf32>,
    %c0_355 = arith.constant 0 : index
    %c0_356 = arith.constant 0 : index
    %680 = vector.load %arg13[%c0_355, %c0_356] : memref<8x128xf32, #tpu.memory_space<vmem>>, vector<8x128xf32>
    tpu.vector_store %arg13[%c0_355, %c0_356], %669 {strides = array<i32>} : memref<8x128xf32, #tpu.memory_space<vmem>>, vector<8x128xf32>,
    %c0_357 = arith.constant 0 : index
    %c0_358 = arith.constant 0 : index
    %681 = vector.load %arg14[%c0_357, %c0_358] : memref<8x128xf32, #tpu.memory_space<vmem>>, vector<8x128xf32>
    tpu.vector_store %arg14[%c0_357, %c0_358], %667 {strides = array<i32>} : memref<8x128xf32, #tpu.memory_space<vmem>>, vector<8x128xf32>,
    %c7_i32_359 = arith.constant 7 : i32
    %c7_i32_360 = arith.constant 7 : i32
    %682 = arith.subi %c7_i32_360, %c7_i32_359 : i32
    %c8_i32_361 = arith.constant 8 : i32
    %683 = arith.muli %c7_i32_359, %c8_i32_361 : i32
    %684 = tpu.assume_multiple %683, 8 : i32
    %685 = arith.index_cast %684 : i32 to index
    %c0_362 = arith.constant 0 : index
    %686 = vector.load %arg15[%685, %c0_362] : memref<64x512xf32, #tpu.memory_space<vmem>>, vector<8x512xf32>
    %c0_363 = arith.constant 0 : index
    %c0_364 = arith.constant 0 : index
    %687 = vector.load %arg11[%c0_363, %c0_364] : memref<8x128xf32, #tpu.memory_space<vmem>>, vector<8x128xf32>
    %c0_365 = arith.constant 0 : index
    %c0_366 = arith.constant 0 : index
    %688 = vector.load %arg12[%c0_365, %c0_366] : memref<8x128xf32, #tpu.memory_space<vmem>>, vector<8x128xf32>
    %689 = arith.truncf %687 : vector<8x128xf32> to vector<8x128xbf16>
    %c0_367 = arith.constant 0 : index
    %c0_368 = arith.constant 0 : index
    %690 = vector.load %arg5[%c0_367, %c0_368] : memref<128x512xbf16, #tpu.memory_space<vmem>>, vector<128x512xbf16>
    %cst_369 = arith.constant dense<0.000000e+00> : vector<8x512xf32>
    %691 = tpu.matmul %689, %690, %cst_369 {dimension_numbers = #tpu.dot_dimension_numbers<[1], [0], [0], [1], [0, 0, 1, 1], [], []>} : vector<8x128xbf16>, vector<128x512xbf16>, vector<8x512xf32> -> vector<8x512xf32>
    %692 = arith.addf %686, %691 : vector<8x512xf32>
    %693 = vector.extract_strided_slice %692 {offsets = [0, 0], sizes = [8, 128], strides = [1, 1]} : vector<8x512xf32> to vector<8x128xf32>
    %cst_370 = arith.constant 5.000000e-01 : f32
    %694 = vector.broadcast %cst_370 : f32 to vector<8x128xf32>
    %695 = arith.mulf %694, %693 : vector<8x128xf32>
    %696 = math.tanh %695 : vector<8x128xf32>
    %cst_371 = arith.constant 5.000000e-01 : f32
    %697 = vector.broadcast %cst_371 : f32 to vector<8x128xf32>
    %698 = arith.mulf %697, %696 : vector<8x128xf32>
    %cst_372 = arith.constant 5.000000e-01 : f32
    %699 = vector.broadcast %cst_372 : f32 to vector<8x128xf32>
    %700 = arith.addf %698, %699 : vector<8x128xf32>
    %701 = vector.extract_strided_slice %692 {offsets = [0, 128], sizes = [8, 128], strides = [1, 1]} : vector<8x512xf32> to vector<8x128xf32>
    %cst_373 = arith.constant 5.000000e-01 : f32
    %702 = vector.broadcast %cst_373 : f32 to vector<8x128xf32>
    %703 = arith.mulf %702, %701 : vector<8x128xf32>
    %704 = math.tanh %703 : vector<8x128xf32>
    %cst_374 = arith.constant 5.000000e-01 : f32
    %705 = vector.broadcast %cst_374 : f32 to vector<8x128xf32>
    %706 = arith.mulf %705, %704 : vector<8x128xf32>
    %cst_375 = arith.constant 5.000000e-01 : f32
    %707 = vector.broadcast %cst_375 : f32 to vector<8x128xf32>
    %708 = arith.addf %706, %707 : vector<8x128xf32>
    %709 = vector.extract_strided_slice %692 {offsets = [0, 256], sizes = [8, 128], strides = [1, 1]} : vector<8x512xf32> to vector<8x128xf32>
    %710 = math.tanh %709 : vector<8x128xf32>
    %711 = vector.extract_strided_slice %692 {offsets = [0, 384], sizes = [8, 128], strides = [1, 1]} : vector<8x512xf32> to vector<8x128xf32>
    %cst_376 = arith.constant 5.000000e-01 : f32
    %712 = vector.broadcast %cst_376 : f32 to vector<8x128xf32>
    %713 = arith.mulf %712, %711 : vector<8x128xf32>
    %714 = math.tanh %713 : vector<8x128xf32>
    %cst_377 = arith.constant 5.000000e-01 : f32
    %715 = vector.broadcast %cst_377 : f32 to vector<8x128xf32>
    %716 = arith.mulf %715, %714 : vector<8x128xf32>
    %cst_378 = arith.constant 5.000000e-01 : f32
    %717 = vector.broadcast %cst_378 : f32 to vector<8x128xf32>
    %718 = arith.addf %716, %717 : vector<8x128xf32>
    %719 = arith.mulf %708, %688 : vector<8x128xf32>
    %720 = arith.mulf %700, %710 : vector<8x128xf32>
    %721 = arith.addf %719, %720 : vector<8x128xf32>
    %722 = math.tanh %721 : vector<8x128xf32>
    %723 = arith.mulf %718, %722 : vector<8x128xf32>
    %c8_i32_379 = arith.constant 8 : i32
    %724 = arith.muli %682, %c8_i32_379 : i32
    %725 = tpu.assume_multiple %724, 8 : i32
    %726 = arith.index_cast %725 : i32 to index
    %c0_380 = arith.constant 0 : index
    %727 = vector.load %arg16[%726, %c0_380] : memref<64x512xf32, #tpu.memory_space<vmem>>, vector<8x512xf32>
    %c0_381 = arith.constant 0 : index
    %c0_382 = arith.constant 0 : index
    %728 = vector.load %arg13[%c0_381, %c0_382] : memref<8x128xf32, #tpu.memory_space<vmem>>, vector<8x128xf32>
    %c0_383 = arith.constant 0 : index
    %c0_384 = arith.constant 0 : index
    %729 = vector.load %arg14[%c0_383, %c0_384] : memref<8x128xf32, #tpu.memory_space<vmem>>, vector<8x128xf32>
    %730 = arith.truncf %728 : vector<8x128xf32> to vector<8x128xbf16>
    %c0_385 = arith.constant 0 : index
    %c0_386 = arith.constant 0 : index
    %731 = vector.load %arg6[%c0_385, %c0_386] : memref<128x512xbf16, #tpu.memory_space<vmem>>, vector<128x512xbf16>
    %cst_387 = arith.constant dense<0.000000e+00> : vector<8x512xf32>
    %732 = tpu.matmul %730, %731, %cst_387 {dimension_numbers = #tpu.dot_dimension_numbers<[1], [0], [0], [1], [0, 0, 1, 1], [], []>} : vector<8x128xbf16>, vector<128x512xbf16>, vector<8x512xf32> -> vector<8x512xf32>
    %733 = arith.addf %727, %732 : vector<8x512xf32>
    %734 = vector.extract_strided_slice %733 {offsets = [0, 0], sizes = [8, 128], strides = [1, 1]} : vector<8x512xf32> to vector<8x128xf32>
    %cst_388 = arith.constant 5.000000e-01 : f32
    %735 = vector.broadcast %cst_388 : f32 to vector<8x128xf32>
    %736 = arith.mulf %735, %734 : vector<8x128xf32>
    %737 = math.tanh %736 : vector<8x128xf32>
    %cst_389 = arith.constant 5.000000e-01 : f32
    %738 = vector.broadcast %cst_389 : f32 to vector<8x128xf32>
    %739 = arith.mulf %738, %737 : vector<8x128xf32>
    %cst_390 = arith.constant 5.000000e-01 : f32
    %740 = vector.broadcast %cst_390 : f32 to vector<8x128xf32>
    %741 = arith.addf %739, %740 : vector<8x128xf32>
    %742 = vector.extract_strided_slice %733 {offsets = [0, 128], sizes = [8, 128], strides = [1, 1]} : vector<8x512xf32> to vector<8x128xf32>
    %cst_391 = arith.constant 5.000000e-01 : f32
    %743 = vector.broadcast %cst_391 : f32 to vector<8x128xf32>
    %744 = arith.mulf %743, %742 : vector<8x128xf32>
    %745 = math.tanh %744 : vector<8x128xf32>
    %cst_392 = arith.constant 5.000000e-01 : f32
    %746 = vector.broadcast %cst_392 : f32 to vector<8x128xf32>
    %747 = arith.mulf %746, %745 : vector<8x128xf32>
    %cst_393 = arith.constant 5.000000e-01 : f32
    %748 = vector.broadcast %cst_393 : f32 to vector<8x128xf32>
    %749 = arith.addf %747, %748 : vector<8x128xf32>
    %750 = vector.extract_strided_slice %733 {offsets = [0, 256], sizes = [8, 128], strides = [1, 1]} : vector<8x512xf32> to vector<8x128xf32>
    %751 = math.tanh %750 : vector<8x128xf32>
    %752 = vector.extract_strided_slice %733 {offsets = [0, 384], sizes = [8, 128], strides = [1, 1]} : vector<8x512xf32> to vector<8x128xf32>
    %cst_394 = arith.constant 5.000000e-01 : f32
    %753 = vector.broadcast %cst_394 : f32 to vector<8x128xf32>
    %754 = arith.mulf %753, %752 : vector<8x128xf32>
    %755 = math.tanh %754 : vector<8x128xf32>
    %cst_395 = arith.constant 5.000000e-01 : f32
    %756 = vector.broadcast %cst_395 : f32 to vector<8x128xf32>
    %757 = arith.mulf %756, %755 : vector<8x128xf32>
    %cst_396 = arith.constant 5.000000e-01 : f32
    %758 = vector.broadcast %cst_396 : f32 to vector<8x128xf32>
    %759 = arith.addf %757, %758 : vector<8x128xf32>
    %760 = arith.mulf %749, %729 : vector<8x128xf32>
    %761 = arith.mulf %741, %751 : vector<8x128xf32>
    %762 = arith.addf %760, %761 : vector<8x128xf32>
    %763 = math.tanh %762 : vector<8x128xf32>
    %764 = arith.mulf %759, %763 : vector<8x128xf32>
    %765 = arith.index_cast %c7_i32_359 : i32 to index
    %c0_397 = arith.constant 0 : index
    %c0_398 = arith.constant 0 : index
    %766 = vector.load %arg9[%765, %c0_397, %c0_398] : memref<8x8x128xf32, #tpu.memory_space<vmem>>, vector<1x8x128xf32>
    %767 = vector.shape_cast %766 : vector<1x8x128xf32> to vector<8x128xf32>
    %768 = vector.shape_cast %723 : vector<8x128xf32> to vector<1x8x128xf32>
    tpu.vector_store %arg9[%765, %c0_397, %c0_398], %768 {strides = array<i32>} : memref<8x8x128xf32, #tpu.memory_space<vmem>>, vector<1x8x128xf32>,
    %769 = arith.index_cast %682 : i32 to index
    %c0_399 = arith.constant 0 : index
    %c0_400 = arith.constant 0 : index
    %770 = vector.load %arg10[%769, %c0_399, %c0_400] : memref<8x8x128xf32, #tpu.memory_space<vmem>>, vector<1x8x128xf32>
    %771 = vector.shape_cast %770 : vector<1x8x128xf32> to vector<8x128xf32>
    %772 = vector.shape_cast %764 : vector<8x128xf32> to vector<1x8x128xf32>
    tpu.vector_store %arg10[%769, %c0_399, %c0_400], %772 {strides = array<i32>} : memref<8x8x128xf32, #tpu.memory_space<vmem>>, vector<1x8x128xf32>,
    %c0_401 = arith.constant 0 : index
    %c0_402 = arith.constant 0 : index
    %773 = vector.load %arg11[%c0_401, %c0_402] : memref<8x128xf32, #tpu.memory_space<vmem>>, vector<8x128xf32>
    tpu.vector_store %arg11[%c0_401, %c0_402], %723 {strides = array<i32>} : memref<8x128xf32, #tpu.memory_space<vmem>>, vector<8x128xf32>,
    %c0_403 = arith.constant 0 : index
    %c0_404 = arith.constant 0 : index
    %774 = vector.load %arg12[%c0_403, %c0_404] : memref<8x128xf32, #tpu.memory_space<vmem>>, vector<8x128xf32>
    tpu.vector_store %arg12[%c0_403, %c0_404], %721 {strides = array<i32>} : memref<8x128xf32, #tpu.memory_space<vmem>>, vector<8x128xf32>,
    %c0_405 = arith.constant 0 : index
    %c0_406 = arith.constant 0 : index
    %775 = vector.load %arg13[%c0_405, %c0_406] : memref<8x128xf32, #tpu.memory_space<vmem>>, vector<8x128xf32>
    tpu.vector_store %arg13[%c0_405, %c0_406], %764 {strides = array<i32>} : memref<8x128xf32, #tpu.memory_space<vmem>>, vector<8x128xf32>,
    %c0_407 = arith.constant 0 : index
    %c0_408 = arith.constant 0 : index
    %776 = vector.load %arg14[%c0_407, %c0_408] : memref<8x128xf32, #tpu.memory_space<vmem>>, vector<8x128xf32>
    tpu.vector_store %arg14[%c0_407, %c0_408], %762 {strides = array<i32>} : memref<8x128xf32, #tpu.memory_space<vmem>>, vector<8x128xf32>,
    %c8_i32_409 = arith.constant 8 : i32
    return
  }
  func.func @transform_0(%arg0: i32) -> (i32, i32) {
    %c0_i32 = arith.constant 0 : i32
    %c0_i32_0 = arith.constant 0 : i32
    return %arg0, %c0_i32 : i32, i32
  }
  func.func @transform_1(%arg0: i32) -> (i32, i32) {
    %c0_i32 = arith.constant 0 : i32
    %0 = arith.subi %c0_i32, %arg0 : i32
    %c0_i32_0 = arith.constant 0 : i32
    %c0_i32_1 = arith.constant 0 : i32
    return %0, %c0_i32_0 : i32, i32
  }
  func.func @transform_2(%arg0: i32) -> (i32, i32) {
    %c0_i32 = arith.constant 0 : i32
    %c0_i32_0 = arith.constant 0 : i32
    %c0_i32_1 = arith.constant 0 : i32
    return %c0_i32, %c0_i32_0 : i32, i32
  }
  func.func @transform_3(%arg0: i32) -> (i32, i32) {
    %c0_i32 = arith.constant 0 : i32
    %c0_i32_0 = arith.constant 0 : i32
    %c0_i32_1 = arith.constant 0 : i32
    return %c0_i32, %c0_i32_0 : i32, i32
  }
  func.func @transform_4(%arg0: i32) -> (i32, i32) {
    %c0_i32 = arith.constant 0 : i32
    %c0_i32_0 = arith.constant 0 : i32
    %c0_i32_1 = arith.constant 0 : i32
    return %c0_i32, %c0_i32_0 : i32, i32
  }
  func.func @transform_5(%arg0: i32) -> (i32, i32) {
    %c0_i32 = arith.constant 0 : i32
    %c0_i32_0 = arith.constant 0 : i32
    %c0_i32_1 = arith.constant 0 : i32
    return %c0_i32, %c0_i32_0 : i32, i32
  }
  func.func @transform_6(%arg0: i32) -> (i32, i32) {
    %c0_i32 = arith.constant 0 : i32
    %c0_i32_0 = arith.constant 0 : i32
    %c0_i32_1 = arith.constant 0 : i32
    return %c0_i32, %c0_i32_0 : i32, i32
  }
  func.func @transform_7(%arg0: i32) -> (i32, i32) {
    %c0_i32 = arith.constant 0 : i32
    %c0_i32_0 = arith.constant 0 : i32
    %c0_i32_1 = arith.constant 0 : i32
    return %c0_i32, %c0_i32_0 : i32, i32
  }
  func.func @transform_8(%arg0: i32) -> (i32, i32, i32) {
    %c0_i32 = arith.constant 0 : i32
    %c0_i32_0 = arith.constant 0 : i32
    %c0_i32_1 = arith.constant 0 : i32
    return %arg0, %c0_i32, %c0_i32_0 : i32, i32, i32
  }
  func.func @transform_9(%arg0: i32) -> (i32, i32, i32) {
    %c0_i32 = arith.constant 0 : i32
    %0 = arith.subi %c0_i32, %arg0 : i32
    %c0_i32_0 = arith.constant 0 : i32
    %c0_i32_1 = arith.constant 0 : i32
    %c0_i32_2 = arith.constant 0 : i32
    return %0, %c0_i32_0, %c0_i32_1 : i32, i32, i32
  }
}

</mosaic_0001>

<bundles_post_ra>
// kernel: lstm_forward.1
= control target key start
LH: loop header
LB: loop body
LE: loop exit
PB: predicated region body
PF: predicated region fallthrough
CT: control target
= control target key end

     0   :  { %v9682_v1 = vmov 0   ;;  %s9672_s2 = inlined_call_operand.vmem [shape: bf16[128,512], index: 2, kind: input, shape index: {}]   ;;  %s9673_s0 = inlined_call_operand.vmem [shape: bf16[64,128], index: 0, kind: input, shape index: {}, may-alias: {0,1}]   ;;  %s9674_s3 = inlined_call_operand.vmem [shape: bf16[128,512], index: 3, kind: input, shape index: {}]   ;;  %s9675_s1 = inlined_call_operand.vmem [shape: bf16[64,128], index: 1, kind: input, shape index: {}, may-alias: {0,1}]   ;;  %s9676_s4 = inlined_call_operand.vmem [shape: bf16[128,512], index: 4, kind: input, shape index: {}]   ;;  %s9677_s5 = inlined_call_operand.vmem [shape: bf16[128,512], index: 5, kind: input, shape index: {}]   ;;  %s9678_s6 = inlined_call_operand.vmem [shape: f32[1,512], index: 6, kind: input, shape index: {}]   ;;  %s9679_s7 = inlined_call_operand.vmem [shape: f32[1,512], index: 7, kind: input, shape index: {}]   ;;  %s9680_s8 = inlined_call_operand.vmem [shape: f32[8,8,128], index: 8, kind: output, shape index: {0}]   ;;  %s9681_s9 = inlined_call_operand.vmem [shape: f32[8,8,128], index: 9, kind: output, shape index: {1}]  }
   0x1   :  { %v6524_v0 = vld [vmem:[%s9672_s2 + $0xe4] ss:$16 sps:$4 sm:$0xff]   ;;  %354 = vmatprep.mubr.bf16.mxu0 %v9682_v1  ;;  %427 = vmatprep.mubr.bf16.mxu1 %v9682_v1  ;;  %v6526_v2 = vld [vmem:[%s9672_s2 + $0xec] ss:$16 sps:$4 sm:$0xff]   ;;  %v6528_v3 = vld [vmem:[%s9672_s2 + $0xe0] ss:$16 sps:$4 sm:$0xff]  }
   0x2   :  { %322 = vmatprep.subr.bf16.mxu0 %v6524_v0  ;;  %v6529_v4 = vld [vmem:[%s9672_s2 + $0xe8] ss:$16 sps:$4 sm:$0xff]   ;;  %395 = vmatprep.subr.bf16.mxu1 %v6526_v2  ;;  %v6530_v5 = vld [vmem:[%s9672_s2 + $0xc4] ss:$16 sps:$4 sm:$0xff]   ;;  %v6532_v6 = vld [vmem:[%s9672_s2 + $0xcc] ss:$16 sps:$4 sm:$0xff]  }
   0x3   :  { %323 = vmatpush1.bf16.msra.mxu0 %v6528_v3  ;;  %396 = vmatpush1.bf16.msra.mxu1 %v6529_v4  ;;  %v6534_v7 = vld [vmem:[%s9672_s2 + $0xc0] ss:$16 sps:$4 sm:$0xff]   ;;  %v6535_v8 = vld [vmem:[%s9672_s2 + $0xc8] ss:$16 sps:$4 sm:$0xff]   ;;  %v6536_v9 = vld [vmem:[%s9672_s2 + $0xa4] ss:$16 sps:$4 sm:$0xff]  }
   0x4   :  { %324 = vmatprep.subr.bf16.mxu0 %v6530_v5  ;;  %397 = vmatprep.subr.bf16.mxu1 %v6532_v6  ;;  %v6538_v10 = vld [vmem:[%s9672_s2 + $0xac] ss:$16 sps:$4 sm:$0xff]   ;;  %v6540_v11 = vld [vmem:[%s9672_s2 + $0xa0] ss:$16 sps:$4 sm:$0xff]   ;;  %v6541_v12 = vld [vmem:[%s9672_s2 + $0xa8] ss:$16 sps:$4 sm:$0xff]  }
   0x5   :  { %v6542_v13 = vld [vmem:[%s9672_s2 + $0x84] ss:$16 sps:$4 sm:$0xff]   ;;  %v6544_v14 = vld [vmem:[%s9672_s2 + $0x8c] ss:$16 sps:$4 sm:$0xff]   ;;  %v6546_v15 = vld [vmem:[%s9672_s2 + $0x80] ss:$16 sps:$4 sm:$0xff]  }
   0x6   :  { %v6547_v16 = vld [vmem:[%s9672_s2 + $0x88] ss:$16 sps:$4 sm:$0xff]   ;;  %v6548_v17 = vld [vmem:[%s9672_s2 + $0x64] ss:$16 sps:$4 sm:$0xff]   ;;  %v6550_v18 = vld [vmem:[%s9672_s2 + $0x6c] ss:$16 sps:$4 sm:$0xff]  }
   0x7   :  { %325 = vmatpush1.bf16.msra.mxu0 %v6534_v7  ;;  %398 = vmatpush1.bf16.msra.mxu1 %v6535_v8  ;;  %v6552_v19 = vld [vmem:[%s9672_s2 + $0x60] ss:$16 sps:$4 sm:$0xff]   ;;  %v6553_v20 = vld [vmem:[%s9672_s2 + $0x68] ss:$16 sps:$4 sm:$0xff]   ;;  %v6554_v21 = vld [vmem:[%s9672_s2 + $0x44] ss:$16 sps:$4 sm:$0xff]  }
   0x8   :  { %326 = vmatprep.subr.bf16.mxu0 %v6536_v9  ;;  %399 = vmatprep.subr.bf16.mxu1 %v6538_v10  ;;  %v6556_v22 = vld [vmem:[%s9672_s2 + $0x4c] ss:$16 sps:$4 sm:$0xff]   ;;  %v6558_v23 = vld [vmem:[%s9672_s2 + $0x40] ss:$16 sps:$4 sm:$0xff]   ;;  %v6559_v24 = vld [vmem:[%s9672_s2 + $0x48] ss:$16 sps:$4 sm:$0xff]  }
   0x9   :  { %v6560_v25 = vld [vmem:[%s9672_s2 + $0x24] ss:$16 sps:$4 sm:$0xff]   ;;  %v6562_v26 = vld [vmem:[%s9672_s2 + $0x2c] ss:$16 sps:$4 sm:$0xff]   ;;  %v6564_v27 = vld [vmem:[%s9672_s2 + $0x20] ss:$16 sps:$4 sm:$0xff]  }
   0xa   :  { %v6565_v28 = vld [vmem:[%s9672_s2 + $0x28] ss:$16 sps:$4 sm:$0xff]   ;;  %v6566_v29 = vld [vmem:[%s9672_s2 + $0x4] ss:$16 sps:$4 sm:$0xff]   ;;  %v6568_v30 = vld [vmem:[%s9672_s2 + $0xc] ss:$16 sps:$4 sm:$0xff]  }
   0xb   :  { %327 = vmatpush1.bf16.msra.mxu0 %v6540_v11  ;;  %400 = vmatpush1.bf16.msra.mxu1 %v6541_v12  ;;  %v6570_v31 = vld [vmem:[%s9672_s2] ss:$16 sps:$4 sm:$0xff]   ;;  %v6571_v32 = vld [vmem:[%s9672_s2 + $0x8] ss:$16 sps:$4 sm:$0xff]   ;;  %v6575_v33 = vld [vmem:[%s9674_s3 + $0xe4] ss:$16 sps:$4 sm:$0xff]  }
   0xc   :  { %328 = vmatprep.subr.bf16.mxu0 %v6542_v13  ;;  %401 = vmatprep.subr.bf16.mxu1 %v6544_v14  ;;  %v6578_v34 = vld [vmem:[%s9674_s3 + $0xec] ss:$16 sps:$4 sm:$0xff]   ;;  %v6572_v35 = vld [vmem:[%s9673_s0] sm:$0xff]   ;;  %v6576_v37 = vld [vmem:[%s9674_s3 + $0xe8] ss:$16 sps:$4 sm:$0xff]  }
   0xd   :  { %v6573_v36 = vld [vmem:[%s9674_s3 + $0xe0] ss:$16 sps:$4 sm:$0xff]   ;;  %v6581_v38 = vld [vmem:[%s9674_s3 + $0xc4] ss:$16 sps:$4 sm:$0xff]   ;;  %v6584_v39 = vld [vmem:[%s9674_s3 + $0xcc] ss:$16 sps:$4 sm:$0xff]  }
   0xe   :  { %v6579_v40 = vld [vmem:[%s9674_s3 + $0xc0] ss:$16 sps:$4 sm:$0xff]   ;;  %v6582_v41 = vld [vmem:[%s9674_s3 + $0xc8] ss:$16 sps:$4 sm:$0xff]   ;;  %v6588_v42 = vld [vmem:[%s9674_s3 + $0xa4] ss:$16 sps:$4 sm:$0xff]  }
   0xf   :  { %329 = vmatpush1.bf16.msra.mxu0 %v6546_v15  ;;  %402 = vmatpush1.bf16.msra.mxu1 %v6547_v16  ;;  %v6591_v43 = vld [vmem:[%s9674_s3 + $0xac] ss:$16 sps:$4 sm:$0xff]   ;;  %v6586_v45 = vld [vmem:[%s9674_s3 + $0xa0] ss:$16 sps:$4 sm:$0xff]   ;;  %v6589_v46 = vld [vmem:[%s9674_s3 + $0xa8] ss:$16 sps:$4 sm:$0xff]  }
  0x10   :  { %330 = vmatprep.subr.bf16.mxu0 %v6548_v17  ;;  %403 = vmatprep.subr.bf16.mxu1 %v6550_v18  ;;  %v6585_v44 = vld [vmem:[%s9673_s0 + $0x8] sm:$0xff]   ;;  %v6594_v47 = vld [vmem:[%s9674_s3 + $0x84] ss:$16 sps:$4 sm:$0xff]   ;;  %v6592_v49 = vld [vmem:[%s9674_s3 + $0x80] ss:$16 sps:$4 sm:$0xff]  }
  0x11   :  { %v6597_v48 = vld [vmem:[%s9674_s3 + $0x8c] ss:$16 sps:$4 sm:$0xff]   ;;  %v6595_v50 = vld [vmem:[%s9674_s3 + $0x88] ss:$16 sps:$4 sm:$0xff]   ;;  %v6601_v51 = vld [vmem:[%s9674_s3 + $0x64] ss:$16 sps:$4 sm:$0xff]  }
  0x12   :  { %v6604_v52 = vld [vmem:[%s9674_s3 + $0x6c] ss:$16 sps:$4 sm:$0xff]   ;;  %v6598_v53 = vld [vmem:[%s9673_s0 + $0x10] sm:$0xff]   ;;  %v6602_v55 = vld [vmem:[%s9674_s3 + $0x68] ss:$16 sps:$4 sm:$0xff]  }
  0x13   :  { %331 = vmatpush1.bf16.msra.mxu0 %v6552_v19  ;;  %404 = vmatpush1.bf16.msra.mxu1 %v6553_v20  ;;  %v6599_v54 = vld [vmem:[%s9674_s3 + $0x60] ss:$16 sps:$4 sm:$0xff]   ;;  %v6607_v56 = vld [vmem:[%s9674_s3 + $0x44] ss:$16 sps:$4 sm:$0xff]   ;;  %v6610_v57 = vld [vmem:[%s9674_s3 + $0x4c] ss:$16 sps:$4 sm:$0xff]  }
  0x14   :  { %332 = vmatprep.subr.bf16.mxu0 %v6554_v21  ;;  %405 = vmatprep.subr.bf16.mxu1 %v6556_v22  ;;  %v6605_v58 = vld [vmem:[%s9674_s3 + $0x40] ss:$16 sps:$4 sm:$0xff]   ;;  %v6608_v59 = vld [vmem:[%s9674_s3 + $0x48] ss:$16 sps:$4 sm:$0xff]   ;;  %v6614_v60 = vld [vmem:[%s9674_s3 + $0x24] ss:$16 sps:$4 sm:$0xff]  }
  0x15   :  { %v6617_v61 = vld [vmem:[%s9674_s3 + $0x2c] ss:$16 sps:$4 sm:$0xff]   ;;  %v6612_v63 = vld [vmem:[%s9674_s3 + $0x20] ss:$16 sps:$4 sm:$0xff]   ;;  %v6615_v0 = vld [vmem:[%s9674_s3 + $0x28] ss:$16 sps:$4 sm:$0xff]  }
  0x16   :  { %v6611_v62 = vld [vmem:[%s9673_s0 + $0x18] sm:$0xff]   ;;  %v6620_v2 = vld [vmem:[%s9674_s3 + $0x4] ss:$16 sps:$4 sm:$0xff]   ;;  %v6618_v4 = vld [vmem:[%s9674_s3] ss:$16 sps:$4 sm:$0xff]  }
  0x17   :  { %333 = vmatpush1.bf16.msra.mxu0 %v6558_v23  ;;  %406 = vmatpush1.bf16.msra.mxu1 %v6559_v24  ;;  %v6623_v3 = vld [vmem:[%s9674_s3 + $0xc] ss:$16 sps:$4 sm:$0xff]   ;;  %v6621_v5 = vld [vmem:[%s9674_s3 + $0x8] ss:$16 sps:$4 sm:$0xff]   ;;  %v7439_v6 = vld [vmem:[%s9676_s4 + $0xe4] ss:$16 sps:$4 sm:$0xff]  }
  0x18   :  { %334 = vmatprep.subr.bf16.mxu0 %v6560_v25  ;;  %407 = vmatprep.subr.bf16.mxu1 %v6562_v26  ;;  %v7444_v7 = vld [vmem:[%s9676_s4 + $0xec] ss:$16 sps:$4 sm:$0xff]   ;;  %v6624_v8 = vld [vmem:[%s9675_s1] sm:$0xff]   ;;  %v7459_v10 = vld [vmem:[%s9676_s4 + $0xe8] ss:$16 sps:$4 sm:$0xff]  }
  0x19   :  { %v7454_v9 = vld [vmem:[%s9676_s4 + $0xe0] ss:$16 sps:$4 sm:$0xff]   ;;  %v7466_v11 = vld [vmem:[%s9676_s4 + $0xc4] ss:$16 sps:$4 sm:$0xff]   ;;  %v7471_v12 = vld [vmem:[%s9676_s4 + $0xcc] ss:$16 sps:$4 sm:$0xff]  }
  0x1a   :  { %v7476_v13 = vld [vmem:[%s9676_s4 + $0xc0] ss:$16 sps:$4 sm:$0xff]   ;;  %v7481_v14 = vld [vmem:[%s9676_s4 + $0xc8] ss:$16 sps:$4 sm:$0xff]   ;;  %v7488_v15 = vld [vmem:[%s9676_s4 + $0xa4] ss:$16 sps:$4 sm:$0xff]  }
  0x1b   :  { %335 = vmatpush1.bf16.msra.mxu0 %v6564_v27  ;;  %408 = vmatpush1.bf16.msra.mxu1 %v6565_v28  ;;  %v7495_v16 = vld [vmem:[%s9676_s4 + $0xac] ss:$16 sps:$4 sm:$0xff]   ;;  %v7505_v18 = vld [vmem:[%s9676_s4 + $0xa0] ss:$16 sps:$4 sm:$0xff]   ;;  %v7510_v19 = vld [vmem:[%s9676_s4 + $0xa8] ss:$16 sps:$4 sm:$0xff]  }
  0x1c   :  { %336 = vmatprep.subr.bf16.mxu0 %v6566_v29  ;;  %409 = vmatprep.subr.bf16.mxu1 %v6568_v30  ;;  %v6637_v17 = vld [vmem:[%s9675_s1 + $0x8] sm:$0xff]   ;;  %v7517_v20 = vld [vmem:[%s9676_s4 + $0x84] ss:$16 sps:$4 sm:$0xff]   ;;  %v7529_v22 = vld [vmem:[%s9676_s4 + $0x80] ss:$16 sps:$4 sm:$0xff]  }
  0x1d   :  { %v7524_v21 = vld [vmem:[%s9676_s4 + $0x8c] ss:$16 sps:$4 sm:$0xff]   ;;  %v7534_v23 = vld [vmem:[%s9676_s4 + $0x88] ss:$16 sps:$4 sm:$0xff]   ;;  %v7541_v24 = vld [vmem:[%s9676_s4 + $0x64] ss:$16 sps:$4 sm:$0xff]  }
  0x1e   :  { %v7548_v25 = vld [vmem:[%s9676_s4 + $0x6c] ss:$16 sps:$4 sm:$0xff]   ;;  %v6650_v26 = vld [vmem:[%s9675_s1 + $0x10] sm:$0xff]   ;;  %v7563_v28 = vld [vmem:[%s9676_s4 + $0x68] ss:$16 sps:$4 sm:$0xff]  }
  0x1f   :  { %337 = vmatpush1.bf16.msra.mxu0 %v6570_v31  ;;  %410 = vmatpush1.bf16.msra.mxu1 %v6571_v32  ;;  %v7558_v27 = vld [vmem:[%s9676_s4 + $0x60] ss:$16 sps:$4 sm:$0xff]   ;;  %v7570_v29 = vld [vmem:[%s9676_s4 + $0x44] ss:$16 sps:$4 sm:$0xff]   ;;  %v7577_v30 = vld [vmem:[%s9676_s4 + $0x4c] ss:$16 sps:$4 sm:$0xff]  }
  0x20   :  { %746 = vmatprep.subr.bf16.mxu0 %v6575_v33  ;;  %819 = vmatprep.subr.bf16.mxu1 %v6578_v34  ;;  %v7582_v31 = vld [vmem:[%s9676_s4 + $0x40] ss:$16 sps:$4 sm:$0xff]   ;;  %v7587_v32 = vld [vmem:[%s9676_s4 + $0x48] ss:$16 sps:$4 sm:$0xff]   ;;  %v7594_v33 = vld [vmem:[%s9676_s4 + $0x24] ss:$16 sps:$4 sm:$0xff]  }
  0x21   :  { %v7601_v34 = vld [vmem:[%s9676_s4 + $0x2c] ss:$16 sps:$4 sm:$0xff]  }
  0x22   :  { %355 = vmatmul.mubr.bf16.vlgmr.msra.gmra.mxu0 %v6572_v35  ;;  %428 = vmatmul.mubr.bf16.vlgmr.msra.gmra.mxu1 %v6572_v35  ;;  %v6663_v35 = vld [vmem:[%s9675_s1 + $0x18] sm:$0xff]  }
  0x23   :  { %747 = vmatpush1.bf16.msra.mxu0 %v6573_v36  ;;  %820 = vmatpush1.bf16.msra.mxu1 %v6576_v37  ;;  %v7611_v36 = vld [vmem:[%s9676_s4 + $0x20] ss:$16 sps:$4 sm:$0xff]   ;;  %v7616_v37 = vld [vmem:[%s9676_s4 + $0x28] ss:$16 sps:$4 sm:$0xff]  }
  0x24   :  { %748 = vmatprep.subr.bf16.mxu0 %v6581_v38  ;;  %821 = vmatprep.subr.bf16.mxu1 %v6584_v39  ;;  %v7623_v38 = vld [vmem:[%s9676_s4 + $0x4] ss:$16 sps:$4 sm:$0xff]   ;;  %v7630_v39 = vld [vmem:[%s9676_s4 + $0xc] ss:$16 sps:$4 sm:$0xff]  }
  0x25   :  { %364 = vmatprep.mubr.bf16.mxu0 %v9682_v1  ;;  %437 = vmatprep.mubr.bf16.mxu1 %v9682_v1 }
  0x27   :  { %749 = vmatpush1.bf16.msra.mxu0 %v6579_v40  ;;  %822 = vmatpush1.bf16.msra.mxu1 %v6582_v41  ;;  %v7635_v40 = vld [vmem:[%s9676_s4] ss:$16 sps:$4 sm:$0xff]   ;;  %v7642_v41 = vld [vmem:[%s9676_s4 + $0x8] ss:$16 sps:$4 sm:$0xff]  }
  0x28   :  { %750 = vmatprep.subr.bf16.mxu0 %v6588_v42  ;;  %823 = vmatprep.subr.bf16.mxu1 %v6591_v43  ;;  %v7649_v42 = vld [vmem:[%s9677_s5 + $0xe4] ss:$16 sps:$4 sm:$0xff]   ;;  %v7654_v43 = vld [vmem:[%s9677_s5 + $0xec] ss:$16 sps:$4 sm:$0xff]  }
  0x2a   :  { %365 = vmatmul.mubr.bf16.gmra.mxu0 %v6585_v44  ;;  %438 = vmatmul.mubr.bf16.gmra.mxu1 %v6585_v44  ;;  %v7661_v44 = vld [vmem:[%s9677_s5 + $0xe0] ss:$16 sps:$4 sm:$0xff]  }
  0x2b   :  { %751 = vmatpush1.bf16.msra.mxu0 %v6586_v45  ;;  %824 = vmatpush1.bf16.msra.mxu1 %v6589_v46  ;;  %v7666_v45 = vld [vmem:[%s9677_s5 + $0xe8] ss:$16 sps:$4 sm:$0xff]   ;;  %v7671_v46 = vld [vmem:[%s9677_s5 + $0xc4] ss:$16 sps:$4 sm:$0xff]  }
  0x2c   :  { %752 = vmatprep.subr.bf16.mxu0 %v6594_v47  ;;  %825 = vmatprep.subr.bf16.mxu1 %v6597_v48  ;;  %v7676_v47 = vld [vmem:[%s9677_s5 + $0xcc] ss:$16 sps:$4 sm:$0xff]   ;;  %v7685_v48 = vld [vmem:[%s9677_s5 + $0xc0] ss:$16 sps:$4 sm:$0xff]  }
  0x2d   :  { %374 = vmatprep.mubr.bf16.mxu0 %v9682_v1  ;;  %447 = vmatprep.mubr.bf16.mxu1 %v9682_v1 }
  0x2f   :  { %753 = vmatpush1.bf16.msra.mxu0 %v6592_v49  ;;  %826 = vmatpush1.bf16.msra.mxu1 %v6595_v50  ;;  %v7690_v49 = vld [vmem:[%s9677_s5 + $0xc8] ss:$16 sps:$4 sm:$0xff]   ;;  %v7173_v50 = vmov 0.0|0.0  }
  0x30   :  { %754 = vmatprep.subr.bf16.mxu0 %v6601_v51  ;;  %827 = vmatprep.subr.bf16.mxu1 %v6604_v52  ;;  %v7695_v51 = vld [vmem:[%s9677_s5 + $0xa4] ss:$16 sps:$4 sm:$0xff]   ;;  %v7700_v52 = vld [vmem:[%s9677_s5 + $0xac] ss:$16 sps:$4 sm:$0xff]  }
  0x32   :  { %375 = vmatmul.mubr.bf16.gmra.mxu0 %v6598_v53  ;;  %448 = vmatmul.mubr.bf16.gmra.mxu1 %v6598_v53  ;;  %v7709_v53 = vld [vmem:[%s9677_s5 + $0xa0] ss:$16 sps:$4 sm:$0xff]  }
  0x33   :  { %755 = vmatpush1.bf16.msra.mxu0 %v6599_v54  ;;  %828 = vmatpush1.bf16.msra.mxu1 %v6602_v55  ;;  %v7714_v54 = vld [vmem:[%s9677_s5 + $0xa8] ss:$16 sps:$4 sm:$0xff]   ;;  %v7721_v55 = vld [vmem:[%s9677_s5 + $0x84] ss:$16 sps:$4 sm:$0xff]  }
  0x34   :  { %756 = vmatprep.subr.bf16.mxu0 %v6607_v56  ;;  %829 = vmatprep.subr.bf16.mxu1 %v6610_v57  ;;  %v7726_v56 = vld [vmem:[%s9677_s5 + $0x8c] ss:$16 sps:$4 sm:$0xff]   ;;  %v7735_v57 = vld [vmem:[%s9677_s5 + $0x80] ss:$16 sps:$4 sm:$0xff]  }
  0x35   :  { %384 = vmatprep.mubr.bf16.mxu0 %v9682_v1  ;;  %457 = vmatprep.mubr.bf16.mxu1 %v9682_v1 }
  0x37   :  { %757 = vmatpush1.bf16.msra.mxu0 %v6605_v58  ;;  %830 = vmatpush1.bf16.msra.mxu1 %v6608_v59  ;;  %v7740_v58 = vld [vmem:[%s9677_s5 + $0x88] ss:$16 sps:$4 sm:$0xff]   ;;  %v7745_v59 = vld [vmem:[%s9677_s5 + $0x64] ss:$16 sps:$4 sm:$0xff]  }
  0x38   :  { %758 = vmatprep.subr.bf16.mxu0 %v6614_v60  ;;  %831 = vmatprep.subr.bf16.mxu1 %v6617_v61  ;;  %v7750_v60 = vld [vmem:[%s9677_s5 + $0x6c] ss:$16 sps:$4 sm:$0xff]   ;;  %v7759_v61 = vld [vmem:[%s9677_s5 + $0x60] ss:$16 sps:$4 sm:$0xff]  }
  0x3a   :  { %385 = vmatmul.mubr.bf16.gmra.mxu0 %v6611_v62  ;;  %458 = vmatmul.mubr.bf16.gmra.mxu1 %v6611_v62  ;;  %v7764_v62 = vld [vmem:[%s9677_s5 + $0x68] ss:$16 sps:$4 sm:$0xff]  }
  0x3b   :  { %759 = vmatpush1.bf16.msra.mxu0 %v6612_v63  ;;  %832 = vmatpush1.bf16.msra.mxu1 %v6615_v0  ;;  %v7769_v63 = vld [vmem:[%s9677_s5 + $0x44] ss:$16 sps:$4 sm:$0xff]   ;;  %v7774_v0 = vld [vmem:[%s9677_s5 + $0x4c] ss:$16 sps:$4 sm:$0xff]  }
  0x3c   :  { %760 = vmatprep.subr.bf16.mxu0 %v6620_v2  ;;  %833 = vmatprep.subr.bf16.mxu1 %v6623_v3  ;;  %9714 = vst [vmem:[#allocation8_spill] sm:$0xff] %v7774_v0  ;;  %v7783_v2 = vld [vmem:[%s9677_s5 + $0x40] ss:$16 sps:$4 sm:$0xff]   ;;  %v7788_v3 = vld [vmem:[%s9677_s5 + $0x48] ss:$16 sps:$4 sm:$0xff]  }
  0x3d   :  { %778 = vmatprep.mubr.bf16.mxu0 %v9682_v1  ;;  %851 = vmatprep.mubr.bf16.mxu1 %v9682_v1 }
  0x3f   :  { %761 = vmatpush1.bf16.msra.mxu0 %v6618_v4  ;;  %834 = vmatpush1.bf16.msra.mxu1 %v6621_v5  ;;  %v7793_v4 = vld [vmem:[%s9677_s5 + $0x24] ss:$16 sps:$4 sm:$0xff]   ;;  %v7798_v5 = vld [vmem:[%s9677_s5 + $0x2c] ss:$16 sps:$4 sm:$0xff]  }
  0x40   :  { %1126 = vmatprep.subr.bf16.mxu0 %v7439_v6  ;;  %1167 = vmatprep.subr.bf16.mxu1 %v7444_v7 }
  0x42   :  { %779 = vmatmul.mubr.bf16.vlgmr.msra.gmra.mxu0 %v6624_v8  ;;  %852 = vmatmul.mubr.bf16.vlgmr.msra.gmra.mxu1 %v6624_v8  ;;  %v7807_v8 = vld [vmem:[%s9677_s5 + $0x20] ss:$16 sps:$4 sm:$0xff]  }
  0x43   :  { %1127 = vmatpush1.bf16.msra.mxu0 %v7454_v9  ;;  %1168 = vmatpush1.bf16.msra.mxu1 %v7459_v10 }
  0x44   :  { %1128 = vmatprep.subr.bf16.mxu0 %v7466_v11  ;;  %1169 = vmatprep.subr.bf16.mxu1 %v7471_v12 }
  0x45   :  { %788 = vmatprep.mubr.bf16.mxu0 %v9682_v1  ;;  %861 = vmatprep.mubr.bf16.mxu1 %v9682_v1 }
  0x47   :  { %1129 = vmatpush1.bf16.msra.mxu0 %v7476_v13  ;;  %1170 = vmatpush1.bf16.msra.mxu1 %v7481_v14 }
  0x48   :  { %1130 = vmatprep.subr.bf16.mxu0 %v7488_v15  ;;  %1171 = vmatprep.subr.bf16.mxu1 %v7495_v16 }
  0x4a   :  { %789 = vmatmul.mubr.bf16.gmra.mxu0 %v6637_v17  ;;  %862 = vmatmul.mubr.bf16.gmra.mxu1 %v6637_v17  ;;  %v7812_v17 = vld [vmem:[%s9677_s5 + $0x28] ss:$16 sps:$4 sm:$0xff]  }
  0x4b   :  { %1131 = vmatpush1.bf16.msra.mxu0 %v7505_v18  ;;  %1172 = vmatpush1.bf16.msra.mxu1 %v7510_v19 }
  0x4c   :  { %1132 = vmatprep.subr.bf16.mxu0 %v7517_v20  ;;  %1173 = vmatprep.subr.bf16.mxu1 %v7524_v21 }
  0x4d   :  { %798 = vmatprep.mubr.bf16.mxu0 %v9682_v1  ;;  %871 = vmatprep.mubr.bf16.mxu1 %v9682_v1 }
  0x4f   :  { %1133 = vmatpush1.bf16.msra.mxu0 %v7529_v22  ;;  %1174 = vmatpush1.bf16.msra.mxu1 %v7534_v23 }
  0x50   :  { %1134 = vmatprep.subr.bf16.mxu0 %v7541_v24  ;;  %1175 = vmatprep.subr.bf16.mxu1 %v7548_v25 }
  0x52   :  { %799 = vmatmul.mubr.bf16.gmra.mxu0 %v6650_v26  ;;  %872 = vmatmul.mubr.bf16.gmra.mxu1 %v6650_v26  ;;  %v7817_v26 = vld [vmem:[%s9677_s5 + $0x4] ss:$16 sps:$4 sm:$0xff]  }
  0x53   :  { %1135 = vmatpush1.bf16.msra.mxu0 %v7558_v27  ;;  %1176 = vmatpush1.bf16.msra.mxu1 %v7563_v28  ;;  %9715 = vst [vmem:[#allocation9_spill] sm:$0xff] %v7817_v26 }
  0x54   :  { %1136 = vmatprep.subr.bf16.mxu0 %v7570_v29  ;;  %1177 = vmatprep.subr.bf16.mxu1 %v7577_v30 }
  0x55   :  { %808 = vmatprep.mubr.bf16.mxu0 %v9682_v1  ;;  %881 = vmatprep.mubr.bf16.mxu1 %v9682_v1 }
  0x57   :  { %1137 = vmatpush1.bf16.msra.mxu0 %v7582_v31  ;;  %1178 = vmatpush1.bf16.msra.mxu1 %v7587_v32 }
  0x58   :  { %1138 = vmatprep.subr.bf16.mxu0 %v7594_v33  ;;  %1179 = vmatprep.subr.bf16.mxu1 %v7601_v34 }
  0x5a   :  { %809 = vmatmul.mubr.bf16.gmra.mxu0 %v6663_v35  ;;  %882 = vmatmul.mubr.bf16.gmra.mxu1 %v6663_v35  ;;  %v7822_v35 = vld [vmem:[%s9677_s5 + $0xc] ss:$16 sps:$4 sm:$0xff]  }
  0x5b   :  { %1139 = vmatpush1.bf16.msra.mxu0 %v7611_v36  ;;  %1180 = vmatpush1.bf16.msra.mxu1 %v7616_v37 }
  0x5c   :  { %1140 = vmatprep.subr.bf16.mxu0 %v7623_v38  ;;  %1181 = vmatprep.subr.bf16.mxu1 %v7630_v39 }
  0x5d   :  { %1158 = vmatprep.mubr.bf16.mxu0 %v9682_v1  ;;  %1199 = vmatprep.mubr.bf16.mxu1 %v9682_v1 }
  0x5f   :  { %1141 = vmatpush1.bf16.msra.mxu0 %v7635_v40  ;;  %1182 = vmatpush1.bf16.msra.mxu1 %v7642_v41 }
  0x60   :  { %1432 = vmatprep.subr.bf16.mxu0 %v7649_v42  ;;  %1473 = vmatprep.subr.bf16.mxu1 %v7654_v43 }
  0x62   :  { %1159 = vmatmul.mubr.bf16.vlgmr.msra.gmra.mxu0 %v7173_v50  ;;  %1200 = vmatmul.mubr.bf16.vlgmr.msra.gmra.mxu1 %v7173_v50 }
  0x63   :  { %1433 = vmatpush1.bf16.msra.mxu0 %v7661_v44  ;;  %1474 = vmatpush1.bf16.msra.mxu1 %v7666_v45 }
  0x64   :  { %1434 = vmatprep.subr.bf16.mxu0 %v7671_v46  ;;  %1475 = vmatprep.subr.bf16.mxu1 %v7676_v47 }
  0x65   :  { %1464 = vmatprep.mubr.bf16.mxu0 %v9682_v1  ;;  %1505 = vmatprep.mubr.bf16.mxu1 %v9682_v1  ;;  %v7831_v1 = vld [vmem:[%s9677_s5] ss:$16 sps:$4 sm:$0xff]  }
  0x67   :  { %1435 = vmatpush1.bf16.msra.mxu0 %v7685_v48  ;;  %1476 = vmatpush1.bf16.msra.mxu1 %v7690_v49 }
  0x68   :  { %1436 = vmatprep.subr.bf16.mxu0 %v7695_v51  ;;  %1477 = vmatprep.subr.bf16.mxu1 %v7700_v52 }
  0x6b   :  { %1437 = vmatpush1.bf16.msra.mxu0 %v7709_v53  ;;  %1478 = vmatpush1.bf16.msra.mxu1 %v7714_v54 }
  0x6c   :  { %1438 = vmatprep.subr.bf16.mxu0 %v7721_v55  ;;  %1479 = vmatprep.subr.bf16.mxu1 %v7726_v56 }
  0x6f   :  { %1439 = vmatpush1.bf16.msra.mxu0 %v7735_v57  ;;  %1480 = vmatpush1.bf16.msra.mxu1 %v7740_v58 }
  0x70   :  { %1440 = vmatprep.subr.bf16.mxu0 %v7745_v59  ;;  %1481 = vmatprep.subr.bf16.mxu1 %v7750_v60 }
  0x73   :  { %1441 = vmatpush1.bf16.msra.mxu0 %v7759_v61  ;;  %1482 = vmatpush1.bf16.msra.mxu1 %v7764_v62 }
  0x74   :  { %1442 = vmatprep.subr.bf16.mxu0 %v7769_v63  ;;  %1483 = vmatprep.subr.bf16.mxu1 %v7774_v0  ;;  %v7836_v0 = vld [vmem:[%s9677_s5 + $0x8] ss:$16 sps:$4 sm:$0xff]  }
  0x77   :  { %1443 = vmatpush1.bf16.msra.mxu0 %v7783_v2  ;;  %1484 = vmatpush1.bf16.msra.mxu1 %v7788_v3 }
  0x78   :  { %1444 = vmatprep.subr.bf16.mxu0 %v7793_v4  ;;  %1485 = vmatprep.subr.bf16.mxu1 %v7798_v5 }
  0x7b   :  { %1445 = vmatpush1.bf16.msra.mxu0 %v7807_v8  ;;  %1486 = vmatpush1.bf16.msra.mxu1 %v7812_v17 }
  0x7c   :  { %1446 = vmatprep.subr.bf16.mxu0 %v7817_v26  ;;  %1487 = vmatprep.subr.bf16.mxu1 %v7822_v35  ;;  %v9716_v26 = vmov 0  }
  0x7f   :  { %1447 = vmatpush1.bf16.msra.mxu0 %v7831_v1  ;;  %1488 = vmatpush1.bf16.msra.mxu1 %v7836_v0 }
  0x80   :  { %1745 = vmatprep.subr.bf16.mxu0 %v7439_v6  ;;  %1786 = vmatprep.subr.bf16.mxu1 %v7444_v7  ;;  %v118_v6 = vlaneseq }
  0x82   :  { %1465 = vmatmul.mubr.bf16.vlgmr.msra.gmra.mxu0 %v7173_v50  ;;  %1506 = vmatmul.mubr.bf16.vlgmr.msra.gmra.mxu1 %v7173_v50  ;;  %v7880_v7 = vshrl.u32 %v118_v6, 7 }
  0x83   :  { %1746 = vmatpush1.bf16.msra.mxu0 %v7454_v9  ;;  %1787 = vmatpush1.bf16.msra.mxu1 %v7459_v10 }
  0x84   :  { %1747 = vmatprep.subr.bf16.mxu0 %v7466_v11  ;;  %1788 = vmatprep.subr.bf16.mxu1 %v7471_v12  ;;  %v9688_v9 = vsub.s32 2, %v7880_v7  ;;  %v9689_v10 = vsub.s32 0, %v7880_v7  ;;  %v9686_v11 = vsub.s32 3, %v7880_v7  ;;  %v116_v12 = vld [vmem:[%s9678_s6] sm:$0xf] }
  0x85   :  { %1777 = vmatprep.mubr.bf16.mxu0 %v9716_v26  ;;  %1818 = vmatprep.mubr.bf16.mxu1 %v9716_v26 }
  0x87   :  { %1748 = vmatpush1.bf16.msra.mxu0 %v7476_v13  ;;  %1789 = vmatpush1.bf16.msra.mxu1 %v7481_v14 }
  0x88   :  { %1749 = vmatprep.subr.bf16.mxu0 %v7488_v15  ;;  %1790 = vmatprep.subr.bf16.mxu1 %v7495_v16  ;;  %v7894_v15 = vrot.slane %v116_v12, %v9688_v9  ;;  %v9687_v16 = vsub.s32 1, %v7880_v7 }
  0x8b   :  { %1750 = vmatpush1.bf16.msra.mxu0 %v7505_v18  ;;  %1791 = vmatpush1.bf16.msra.mxu1 %v7510_v19 }
  0x8c   :  { %1751 = vmatprep.subr.bf16.mxu0 %v7517_v20  ;;  %1792 = vmatprep.subr.bf16.mxu1 %v7524_v21  ;;  %v7903_v20 = vrot.slane %v116_v12, %v9689_v10  ;;  %v7907_v21 = vrot.slane %v116_v12, %v9686_v11 }
  0x8f   :  { %1752 = vmatpush1.bf16.msra.mxu0 %v7529_v22  ;;  %1793 = vmatpush1.bf16.msra.mxu1 %v7534_v23 }
  0x90   :  { %1753 = vmatprep.subr.bf16.mxu0 %v7541_v24  ;;  %1794 = vmatprep.subr.bf16.mxu1 %v7548_v25  ;;  %v7911_v24 = vrot.slane %v116_v12, %v9687_v16 }
  0x93   :  { %1754 = vmatpush1.bf16.msra.mxu0 %v7558_v27  ;;  %1795 = vmatpush1.bf16.msra.mxu1 %v7563_v28 }
  0x94   :  { %1755 = vmatprep.subr.bf16.mxu0 %v7570_v29  ;;  %1796 = vmatprep.subr.bf16.mxu1 %v7577_v30 }
  0x97   :  { %1756 = vmatpush1.bf16.msra.mxu0 %v7582_v31  ;;  %1797 = vmatpush1.bf16.msra.mxu1 %v7587_v32 }
  0x98   :  { %1757 = vmatprep.subr.bf16.mxu0 %v7594_v33  ;;  %1798 = vmatprep.subr.bf16.mxu1 %v7601_v34 }
  0x9b   :  { %1758 = vmatpush1.bf16.msra.mxu0 %v7611_v36  ;;  %1799 = vmatpush1.bf16.msra.mxu1 %v7616_v37 }
  0x9c   :  { %1759 = vmatprep.subr.bf16.mxu0 %v7623_v38  ;;  %1800 = vmatprep.subr.bf16.mxu1 %v7630_v39 }
  0x9f   :  { %1760 = vmatpush1.bf16.msra.mxu0 %v7635_v40  ;;  %1801 = vmatpush1.bf16.msra.mxu1 %v7642_v41 }
  0xa0   :  { %2051 = vmatprep.subr.bf16.mxu0 %v7649_v42  ;;  %2092 = vmatprep.subr.bf16.mxu1 %v7654_v43 }
  0xe2   :  { %v7888_v13 = vpop.f32.mrf.mxu0  ;;  %v7890_v14 = vpop.f32.mrf.mxu1 }
  0xe4   :  { %v7897_v18 = vpop.f32.mrf.mxu0  ;;  %v7899_v19 = vpop.f32.mrf.mxu1 }
  0xe6   :  { %v360_v22 = vpop.f32.mrf.mxu0  ;;  %v433_v23 = vpop.f32.mrf.mxu1 }
  0xe7   :  { %v7914_v25 = vadd.f32 %v360_v22, %v7903_v20  ;;  %v7917_v27 = vadd.f32 %v433_v23, %v7894_v15 }
  0xe8   :  { %v362_v28 = vpop.f32.mrf.mxu0  ;;  %v435_v29 = vpop.f32.mrf.mxu1 }
  0xe9   :  { %v7920_v30 = vadd.f32 %v362_v28, %v7911_v24  ;;  %v7923_v31 = vadd.f32 %v435_v29, %v7907_v21 }
  0xea   :  { %v366_v32 = vpop.f32.mrf.mxu0  ;;  %v439_v33 = vpop.f32.mrf.mxu1 }
  0xeb   :  { %9717 = vst [vmem:[#allocation10_spill] sm:$0xff] %v7923_v31  ;;  %v7926_v34 = vadd.f32 %v366_v32, %v7903_v20  ;;  %v7929_v36 = vadd.f32 %v439_v33, %v7894_v15 }
  0xec   :  { %v368_v37 = vpop.f32.mrf.mxu0  ;;  %v441_v38 = vpop.f32.mrf.mxu1 }
  0xed   :  { %9718 = vst [vmem:[#allocation11_spill] sm:$0xff] %v7926_v34  ;;  %9719 = vst [vmem:[#allocation12_spill] sm:$0xff] %v7929_v36  ;;  %v7932_v39 = vadd.f32 %v368_v37, %v7911_v24  ;;  %v7935_v40 = vadd.f32 %v441_v38, %v7907_v21 }
  0xee   :  { %v370_v41 = vpop.f32.mrf.mxu0  ;;  %v443_v42 = vpop.f32.mrf.mxu1 }
  0xef   :  { %9720 = vst [vmem:[#allocation13_spill] sm:$0xff] %v7932_v39  ;;  %9721 = vst [vmem:[#allocation14_spill] sm:$0xff] %v7935_v40  ;;  %v7938_v43 = vadd.f32 %v370_v41, %v7903_v20  ;;  %v7941_v50 = vadd.f32 %v443_v42, %v7894_v15 }
  0xf0   :  { %v372_v6 = vpop.f32.mrf.mxu0  ;;  %v445_v12 = vpop.f32.mrf.mxu1 }
  0xf1   :  { %9722 = vst [vmem:[#allocation15_spill] sm:$0xff] %v7938_v43  ;;  %9723 = vst [vmem:[#allocation16_spill] sm:$0xff] %v7941_v50  ;;  %v7944_v22 = vadd.f32 %v372_v6, %v7911_v24  ;;  %v7947_v23 = vadd.f32 %v445_v12, %v7907_v21 }
  0xf2   :  { %v376_v28 = vpop.f32.mrf.mxu0  ;;  %v449_v29 = vpop.f32.mrf.mxu1 }
  0xf3   :  { %9724 = vst [vmem:[#allocation17_spill] sm:$0xff] %v7944_v22  ;;  %9725 = vst [vmem:[#allocation18_spill] sm:$0xff] %v7947_v23  ;;  %v7950_v32 = vadd.f32 %v376_v28, %v7903_v20  ;;  %v7953_v33 = vadd.f32 %v449_v29, %v7894_v15 }
  0xf4   :  { %v378_v37 = vpop.f32.mrf.mxu0  ;;  %v451_v38 = vpop.f32.mrf.mxu1 }
  0xf5   :  { %9726 = vst [vmem:[#allocation19_spill] sm:$0xff] %v7950_v32  ;;  %9727 = vst [vmem:[#allocation20_spill] sm:$0xff] %v7953_v33  ;;  %v7956_v41 = vadd.f32 %v378_v37, %v7911_v24  ;;  %v7959_v42 = vadd.f32 %v451_v38, %v7907_v21 }
  0xf6   :  { %v380_v6 = vpop.f32.mrf.mxu0  ;;  %v453_v11 = vpop.f32.mrf.mxu1 }
  0xf7   :  { %9728 = vst [vmem:[#allocation21_spill] sm:$0xff] %v7956_v41  ;;  %9729 = vst [vmem:[#allocation22_spill] sm:$0xff] %v7959_v42  ;;  %v7962_v12 = vadd.f32 %v380_v6, %v7903_v20  ;;  %v7965_v16 = vadd.f32 %v453_v11, %v7894_v15  ;;  %v540_v11 = vld [vmem:[%s9679_s7] sm:$0xf] }
  0xf8   :  { %v382_v28 = vpop.f32.mrf.mxu0  ;;  %v455_v9 = vpop.f32.mrf.mxu1 }
  0xf9   :  { %9730 = vst [vmem:[#allocation23_spill] sm:$0xff] %v7962_v12  ;;  %9731 = vst [vmem:[#allocation24_spill] sm:$0xff] %v7965_v16  ;;  %v7968_v29 = vadd.f32 %v382_v28, %v7911_v24  ;;  %v7971_v10 = vadd.f32 %v455_v9, %v7907_v21 }
  0xfa   :  { %v386_v37 = vpop.f32.mrf.mxu0  ;;  %v459_v33 = vpop.f32.mrf.mxu1 }
  0xfb   :  { %9732 = vst [vmem:[#allocation25_spill] sm:$0xff] %v7968_v29  ;;  %9733 = vst [vmem:[#allocation26_spill] sm:$0xff] %v7971_v10  ;;  %v7974_v38 = vadd.f32 %v386_v37, %v7903_v20  ;;  %v7977_v42 = vadd.f32 %v459_v33, %v7894_v15  ;;  %v9741_v29 = vsub.s32 2, %v7880_v7 }
  0xfc   :  { %v388_v6 = vpop.f32.mrf.mxu0  ;;  %v461_v12 = vpop.f32.mrf.mxu1 }
  0xfd   :  { %9734 = vst [vmem:[#allocation27_spill] sm:$0xff] %v7974_v38  ;;  %9735 = vst [vmem:[#allocation28_spill] sm:$0xff] %v7977_v42  ;;  %v7983_v28 = vadd.f32 %v388_v6, %v7911_v24  ;;  %v7986_v9 = vadd.f32 %v461_v12, %v7907_v21  ;;  %v9740_v42 = vsub.s32 0, %v7880_v7  ;;  %v8000_v41 = vrot.slane %v540_v11, %v9741_v29 }
  0xfe   :  { %v390_v10 = vpop.f32.mrf.mxu0  ;;  %v463_v16 = vpop.f32.mrf.mxu1 }
  0xff   :  { %9736 = vst [vmem:[#allocation29_spill] sm:$0xff] %v7983_v28  ;;  %9737 = vst [vmem:[#allocation30_spill] sm:$0xff] %v7986_v9  ;;  %v7989_v37 = vadd.f32 %v390_v10, %v7903_v20  ;;  %v7992_v33 = vadd.f32 %v463_v16, %v7894_v15  ;;  %v7996_v38 = vrot.slane %v540_v11, %v9740_v42  ;;  %v9744_v10 = vsub.s32 1, %v7880_v7 }
 0x100   :  { %v392_v6 = vpop.f32.mrf.mxu0  ;;  %v465_v28 = vpop.f32.mrf.mxu1 }
 0x101   :  { %9738 = vst [vmem:[#allocation31_spill] sm:$0xff] %v7989_v37  ;;  %9739 = vst [vmem:[#allocation32_spill] sm:$0xff] %v7992_v33  ;;  %v8003_v12 = vadd.f32 %v392_v6, %v7911_v24  ;;  %v8006_v9 = vadd.f32 %v465_v28, %v7907_v21  ;;  %v8010_v16 = vrot.slane %v540_v11, %v9744_v10  ;;  %v9745_v33 = vsub.s32 3, %v7880_v7 }
 0x102   :  { %v780_v37 = vpop.f32.mrf.mxu0  ;;  %v853_v32 = vpop.f32.mrf.mxu1 }
 0x103   :  { %9742 = vst [vmem:[#allocation33_spill] sm:$0xff] %v8003_v12  ;;  %9743 = vst [vmem:[#allocation34_spill] sm:$0xff] %v8006_v9  ;;  %v8014_v42 = vrot.slane %v540_v11, %v9745_v33  ;;  %v8017_v29 = vadd.f32 %v780_v37, %v7996_v38  ;;  %v8020_v23 = vadd.f32 %v853_v32, %v8000_v41 }
 0x104   :  { %v782_v6 = vpop.f32.mrf.mxu0  ;;  %v855_v12 = vpop.f32.mrf.mxu1 }
 0x105   :  { %9746 = vst [vmem:[#allocation35_spill] sm:$0xff] %v8017_v29  ;;  %9747 = vst [vmem:[#allocation36_spill] sm:$0xff] %v8020_v23  ;;  %v8023_v28 = vadd.f32 %v782_v6, %v8010_v16  ;;  %v8026_v10 = vadd.f32 %v855_v12, %v8014_v42 }
 0x106   :  { %v784_v9 = vpop.f32.mrf.mxu0  ;;  %v857_v7 = vpop.f32.mrf.mxu1 }
 0x107   :  { %9748 = vst [vmem:[#allocation37_spill] sm:$0xff] %v8023_v28  ;;  %9749 = vst [vmem:[#allocation38_spill] sm:$0xff] %v8026_v10  ;;  %v8029_v11 = vadd.f32 %v784_v9, %v7996_v38  ;;  %v8032_v33 = vadd.f32 %v857_v7, %v8000_v41 }
 0x108   :  { %v786_v37 = vpop.f32.mrf.mxu0  ;;  %v859_v29 = vpop.f32.mrf.mxu1 }
 0x109   :  { %9750 = vst [vmem:[#allocation39_spill] sm:$0xff] %v8029_v11  ;;  %9751 = vst [vmem:[#allocation40_spill] sm:$0xff] %v8032_v33  ;;  %v8035_v32 = vadd.f32 %v786_v37, %v8010_v16  ;;  %v8038_v23 = vadd.f32 %v859_v29, %v8014_v42 }
 0x10a   :  { %v790_v6 = vpop.f32.mrf.mxu0  ;;  %v863_v28 = vpop.f32.mrf.mxu1 }
 0x10b   :  { %9752 = vst [vmem:[#allocation41_spill] sm:$0xff] %v8035_v32  ;;  %9753 = vst [vmem:[#allocation42_spill] sm:$0xff] %v8038_v23  ;;  %v8041_v12 = vadd.f32 %v790_v6, %v7996_v38  ;;  %v8044_v10 = vadd.f32 %v863_v28, %v8000_v41 }
 0x10c   :  { %v792_v9 = vpop.f32.mrf.mxu0  ;;  %v865_v11 = vpop.f32.mrf.mxu1 }
 0x10d   :  { %9754 = vst [vmem:[#allocation43_spill] sm:$0xff] %v8041_v12  ;;  %9755 = vst [vmem:[#allocation44_spill] sm:$0xff] %v8044_v10  ;;  %v8047_v7 = vadd.f32 %v792_v9, %v8010_v16  ;;  %v8050_v33 = vadd.f32 %v865_v11, %v8014_v42 }
 0x10e   :  { %v794_v37 = vpop.f32.mrf.mxu0  ;;  %v867_v32 = vpop.f32.mrf.mxu1 }
 0x10f   :  { %9756 = vst [vmem:[#allocation45_spill] sm:$0xff] %v8047_v7  ;;  %9757 = vst [vmem:[#allocation46_spill] sm:$0xff] %v8050_v33  ;;  %v8053_v29 = vadd.f32 %v794_v37, %v7996_v38  ;;  %v8056_v23 = vadd.f32 %v867_v32, %v8000_v41 }
 0x110   :  { %v796_v6 = vpop.f32.mrf.mxu0  ;;  %v869_v12 = vpop.f32.mrf.mxu1 }
 0x111   :  { %9758 = vst [vmem:[#allocation47_spill] sm:$0xff] %v8053_v29  ;;  %9759 = vst [vmem:[#allocation48_spill] sm:$0xff] %v8056_v23  ;;  %v8059_v28 = vadd.f32 %v796_v6, %v8010_v16  ;;  %v8062_v10 = vadd.f32 %v869_v12, %v8014_v42 }
 0x112   :  { %v800_v9 = vpop.f32.mrf.mxu0  ;;  %v873_v7 = vpop.f32.mrf.mxu1 }
 0x113   :  { %9760 = vst [vmem:[#allocation49_spill] sm:$0xff] %v8059_v28  ;;  %9761 = vst [vmem:[#allocation50_spill] sm:$0xff] %v8062_v10  ;;  %v8065_v11 = vadd.f32 %v800_v9, %v7996_v38  ;;  %v8068_v33 = vadd.f32 %v873_v7, %v8000_v41 }
 0x114   :  { %v802_v37 = vpop.f32.mrf.mxu0  ;;  %v875_v29 = vpop.f32.mrf.mxu1 }
 0x115   :  { %9762 = vst [vmem:[#allocation51_spill] sm:$0xff] %v8065_v11  ;;  %9763 = vst [vmem:[#allocation52_spill] sm:$0xff] %v8068_v33  ;;  %v8071_v32 = vadd.f32 %v802_v37, %v8010_v16  ;;  %v8074_v23 = vadd.f32 %v875_v29, %v8014_v42 }
 0x116   :  { %v804_v6 = vpop.f32.mrf.mxu0  ;;  %v877_v28 = vpop.f32.mrf.mxu1 }
 0x117   :  { %9764 = vst [vmem:[#allocation53_spill] sm:$0xff] %v8071_v32  ;;  %9765 = vst [vmem:[#allocation54_spill] sm:$0xff] %v8074_v23  ;;  %v8077_v12 = vadd.f32 %v804_v6, %v7996_v38  ;;  %v8080_v10 = vadd.f32 %v877_v28, %v8000_v41 }
 0x118   :  { %v806_v9 = vpop.f32.mrf.mxu0  ;;  %v879_v11 = vpop.f32.mrf.mxu1 }
 0x119   :  { %9766 = vst [vmem:[#allocation55_spill] sm:$0xff] %v8077_v12  ;;  %9767 = vst [vmem:[#allocation56_spill] sm:$0xff] %v8080_v10  ;;  %v8083_v7 = vadd.f32 %v806_v9, %v8010_v16  ;;  %v8086_v33 = vadd.f32 %v879_v11, %v8014_v42  ;;  %v357_v10 = vadd.f32 %v7888_v13, %v7903_v20 }
 0x11a   :  { %v810_v37 = vpop.f32.mrf.mxu0  ;;  %v883_v32 = vpop.f32.mrf.mxu1 }
 0x11b   :  { %9768 = vst [vmem:[#allocation57_spill] sm:$0xff] %v8083_v7  ;;  %9769 = vst [vmem:[#allocation58_spill] sm:$0xff] %v8086_v33  ;;  %v8089_v29 = vadd.f32 %v810_v37, %v7996_v38  ;;  %v8092_v23 = vadd.f32 %v883_v32, %v8000_v41  ;;  %v359_v32 = vadd.f32 %v7897_v18, %v7911_v24 }
 0x11c   :  { %v812_v6 = vpop.f32.mrf.mxu0  ;;  %v885_v50 = vpop.f32.mrf.mxu1  ;;  %v432_v18 = vadd.f32 %v7899_v19, %v7907_v21 }
 0x11d   :  { %9770 = vst [vmem:[#allocation59_spill] sm:$0xff] %v8089_v29  ;;  %9771 = vst [vmem:[#allocation60_spill] sm:$0xff] %v8092_v23  ;;  %v8095_v28 = vadd.f32 %v812_v6, %v8010_v16  ;;  %v8098_v22 = vadd.f32 %v885_v50, %v8014_v42  ;;  %v430_v6 = vadd.f32 %v7890_v14, %v7894_v15 }
 0x11e   :  { %v814_v9 = vpop.f32.mrf.mxu0  ;;  %v887_v43 = vpop.f32.mrf.mxu1 }
 0x11f   :  { %9772 = vst [vmem:[#allocation61_spill] sm:$0xff] %v8095_v28  ;;  %9773 = vst [vmem:[#allocation62_spill] sm:$0xff] %v8098_v22 }
 0x120   :  { %v816_v11 = vpop.f32.mrf.mxu0  ;;  %v889_v33 = vpop.f32.mrf.mxu1 }
 0x121   :  { %v817_v21 = vadd.f32 %v816_v11, %v8010_v16  ;;  %v890_v16 = vadd.f32 %v889_v33, %v8014_v42 }
 0x122   :  { %v1160_v37 = vpop.f32.mrf.mxu0  ;;  %v1201_v7 = vpop.f32.mrf.mxu1 }
 0x123   :  { %v1208_v12 = vadd.f32 %v1160_v37, %v357_v10  ;;  %v1210_v23 = vadd.f32 %v1201_v7, %v430_v6 }
 0x124   :  { %v1162_v40 = vpop.f32.mrf.mxu0  ;;  %v1203_v36 = vpop.f32.mrf.mxu1 }
 0x125   :  { %v1212_v50 = vmul.f32 0.5, %v1208_v12  ;;  %v1209_v39 = vadd.f32 %v1162_v40, %v359_v32  ;;  %v1211_v20 = vadd.f32 %v1203_v36, %v432_v18  ;;  %v888_v18 = vadd.f32 %v887_v43, %v8000_v41 }
 0x126   :  { %v1164_v34 = vpop.f32.mrf.mxu0  ;;  %v1205_v22 = vpop.f32.mrf.mxu1 }
 0x127   :  { %7012 = vtanh.f32 %v1212_v50  ;;  %v1216_v28 = vmul.f32 0.5, %v1209_v39  ;;  %v1221_v24 = vmul.f32 0.5, %v1211_v20 }
 0x128   :  { %v1165_v29 = vpop.f32.mrf.mxu0  ;;  %v1206_v13 = vpop.f32.mrf.mxu1 }
 0x129   :  { %7014 = vtanh.f32 %v1216_v28 }
 0x12a   :  { %7016 = vtanh.f32 %v1210_v23  ;;  %v815_v23 = vadd.f32 %v814_v9, %v7996_v38 }
 0x12b   :  { %7018 = vtanh.f32 %v1221_v24 }
 0x134   :  { %v7013_v10 = vpop.eup %7012 }
 0x135   :  { %v1214_v37 = vmul.f32 0.5, %v7013_v10 }
 0x136   :  { %v7015_v31 = vpop.eup %7014 }
 0x137   :  { %v1215_v14 = vadd.f32 0.5, %v1214_v37  ;;  %v1218_v15 = vmul.f32 0.5, %v7015_v31  ;;  %v7017_v34 = vpop.eup %7016 }
 0x138   :  { %v7019_v29 = vpop.eup %7018 }
 0x139   :  { %v1219_v40 = vadd.f32 0.5, %v1218_v15  ;;  %v1226_v22 = vmul.f32 %v7017_v34, %v1215_v14  ;;  %v1223_v20 = vmul.f32 0.5, %v7019_v29  ;;  %v8286_v29 = vld [vmem:[%s9676_s4 + $0x4c] ss:$16 sps:$4 sm:$0xff]  }
 0x13b   :  { %v1225_v12 = vmul.f32 0.0, %v1219_v40  ;;  %v1224_v9 = vadd.f32 0.5, %v1223_v20  ;;  %v8334_v20 = vld [vmem:[%s9676_s4 + $0xc] ss:$16 sps:$4 sm:$0xff]  }
 0x13d   :  { %v8108_v39 = vadd.f32 %v1226_v22, %v1225_v12  ;;  %v8248_v12 = vld [vmem:[%s9676_s4 + $0x88] ss:$16 sps:$4 sm:$0xff]  }
 0x13f   :  { %7020 = vtanh.f32 %v8108_v39 }
 0x142   :  { %v1466_v7 = vpop.f32.mrf.mxu0  ;;  %v1507_v19 = vpop.f32.mrf.mxu1 }
 0x143   :  { %v1514_v36 = vadd.f32 %v1466_v7, %v815_v23  ;;  %v1516_v38 = vadd.f32 %v1507_v19, %v888_v18  ;;  %v8257_v23 = vld [vmem:[%s9676_s4 + $0x64] ss:$16 sps:$4 sm:$0xff]   ;;  %v8262_v7 = vld [vmem:[%s9676_s4 + $0x6c] ss:$16 sps:$4 sm:$0xff]   ;;  %v8267_v19 = vld [vmem:[%s9676_s4 + $0x60] ss:$16 sps:$4 sm:$0xff]  }
 0x144   :  { %v1468_v28 = vpop.f32.mrf.mxu0  ;;  %v1509_v32 = vpop.f32.mrf.mxu1  ;;  %v8329_v18 = vld [vmem:[%s9676_s4 + $0x4] ss:$16 sps:$4 sm:$0xff]  }
 0x145   :  { %v1518_v31 = vmul.f32 0.5, %v1514_v36  ;;  %v1515_v6 = vadd.f32 %v1468_v28, %v817_v21  ;;  %v1517_v15 = vadd.f32 %v1509_v32, %v890_v16  ;;  %v8272_v21 = vld [vmem:[%s9676_s4 + $0x68] ss:$16 sps:$4 sm:$0xff]   ;;  %v8281_v36 = vld [vmem:[%s9676_s4 + $0x44] ss:$16 sps:$4 sm:$0xff]  }
 0x146   :  { %v1470_v50 = vpop.f32.mrf.mxu0  ;;  %v1511_v13 = vpop.f32.mrf.mxu1  ;;  %v8291_v28 = vld [vmem:[%s9676_s4 + $0x40] ss:$16 sps:$4 sm:$0xff]   ;;  %v8296_v32 = vld [vmem:[%s9676_s4 + $0x48] ss:$16 sps:$4 sm:$0xff]  }
 0x147   :  { %7022 = vtanh.f32 %v1518_v31  ;;  %v1522_v24 = vmul.f32 0.5, %v1515_v6  ;;  %v1527_v43 = vmul.f32 0.5, %v1517_v15  ;;  %v8305_v31 = vld [vmem:[%s9676_s4 + $0x24] ss:$16 sps:$4 sm:$0xff]   ;;  %v8310_v6 = vld [vmem:[%s9676_s4 + $0x2c] ss:$16 sps:$4 sm:$0xff]  }
 0x148   :  { %v1471_v10 = vpop.f32.mrf.mxu0  ;;  %v1512_v37 = vpop.f32.mrf.mxu1  ;;  %v8315_v50 = vld [vmem:[%s9676_s4 + $0x20] ss:$16 sps:$4 sm:$0xff]   ;;  %v8320_v13 = vld [vmem:[%s9676_s4 + $0x28] ss:$16 sps:$4 sm:$0xff]  }
 0x149   :  { %7024 = vtanh.f32 %v1522_v24  ;;  %v8339_v24 = vld [vmem:[%s9676_s4] ss:$16 sps:$4 sm:$0xff]   ;;  %v8344_v10 = vld [vmem:[%s9676_s4 + $0x8] ss:$16 sps:$4 sm:$0xff]   ;;  %v8353_v37 = vld [vmem:[%s9677_s5 + $0xe4] ss:$16 sps:$4 sm:$0xff]  }
 0x14a   :  { %7026 = vtanh.f32 %v1516_v38  ;;  %v8358_v38 = vld [vmem:[%s9677_s5 + $0xec] ss:$16 sps:$4 sm:$0xff]  }
 0x14b   :  { %7028 = vtanh.f32 %v1527_v43 }
 0x14c   :  { %v7021_v14 = vpop.eup %7020 }
 0x14d   :  { %v1229_v11 = vmul.f32 %v7021_v14, %v1224_v9 }
 0x14f   :  { %1536 = vst [vmem:[%s9680_s8] sm:$0xff] %v1229_v11  ;;  %v1552_v34 = vpack.c.bf16 %v1229_v11, %v1229_v11 }
 0x151   :  { %1778 = vmatmul.mubr.bf16.vlgmr.msra.gmra.mxu0 %v1552_v34  ;;  %1819 = vmatmul.mubr.bf16.vlgmr.msra.gmra.mxu1 %v1552_v34 }
 0x152   :  { %2052 = vmatpush1.bf16.msra.mxu0 %v7661_v44  ;;  %2093 = vmatpush1.bf16.msra.mxu1 %v7666_v45 }
 0x153   :  { %2053 = vmatprep.subr.bf16.mxu0 %v7671_v46  ;;  %2094 = vmatprep.subr.bf16.mxu1 %v7676_v47 }
 0x154   :  { %v7023_v41 = vpop.eup %7022  ;;  %2083 = vmatprep.mubr.bf16.mxu0 %v9716_v26  ;;  %2124 = vmatprep.mubr.bf16.mxu1 %v9716_v26 }
 0x155   :  { %v1520_v42 = vmul.f32 0.5, %v7023_v41 }
 0x156   :  { %v7025_v33 = vpop.eup %7024  ;;  %2054 = vmatpush1.bf16.msra.mxu0 %v7685_v48  ;;  %2095 = vmatpush1.bf16.msra.mxu1 %v7690_v49  ;;  %v9774_v49 = vld [vmem:[#allocation8_spill] sm:$0xff] }
 0x157   :  { %v1521_v40 = vadd.f32 0.5, %v1520_v42  ;;  %v1524_v44 = vmul.f32 0.5, %v7025_v33  ;;  %2055 = vmatprep.subr.bf16.mxu0 %v7695_v51  ;;  %2096 = vmatprep.subr.bf16.mxu1 %v7700_v52  ;;  %v7027_v46 = vpop.eup %7026 }
 0x158   :  { %v7029_v51 = vpop.eup %7028 }
 0x159   :  { %v1525_v45 = vadd.f32 0.5, %v1524_v44  ;;  %v1532_v22 = vmul.f32 %v7027_v46, %v1521_v40  ;;  %v1529_v52 = vmul.f32 0.5, %v7029_v51  ;;  %v9776_v46 = vld [vmem:[#allocation10_spill] sm:$0xff] }
 0x15a   :  { %2056 = vmatpush1.bf16.msra.mxu0 %v7709_v53  ;;  %2097 = vmatpush1.bf16.msra.mxu1 %v7714_v54  ;;  %v9775_v54 = vld [vmem:[#allocation9_spill] sm:$0xff] }
 0x15b   :  { %v1531_v47 = vmul.f32 0.0, %v1525_v45  ;;  %2057 = vmatprep.subr.bf16.mxu0 %v7721_v55  ;;  %2098 = vmatprep.subr.bf16.mxu1 %v7726_v56  ;;  %v1530_v53 = vadd.f32 0.5, %v1529_v52 }
 0x15d   :  { %v8132_v48 = vadd.f32 %v1532_v22, %v1531_v47 }
 0x15e   :  { %2058 = vmatpush1.bf16.msra.mxu0 %v7735_v57  ;;  %2099 = vmatpush1.bf16.msra.mxu1 %v7740_v58  ;;  %v8161_v58 = vld [vmem:[%s9676_s4 + $0xe4] ss:$16 sps:$4 sm:$0xff]  }
 0x15f   :  { %7030 = vtanh.f32 %v8132_v48  ;;  %2059 = vmatprep.subr.bf16.mxu0 %v7745_v59  ;;  %2100 = vmatprep.subr.bf16.mxu1 %v7750_v60  ;;  %v8171_v59 = vld [vmem:[%s9676_s4 + $0xe0] ss:$16 sps:$4 sm:$0xff]   ;;  %v8176_v60 = vld [vmem:[%s9676_s4 + $0xe8] ss:$16 sps:$4 sm:$0xff]  }
 0x162   :  { %2060 = vmatpush1.bf16.msra.mxu0 %v7759_v61  ;;  %2101 = vmatpush1.bf16.msra.mxu1 %v7764_v62  ;;  %v8185_v61 = vld [vmem:[%s9676_s4 + $0xc4] ss:$16 sps:$4 sm:$0xff]   ;;  %v8190_v62 = vld [vmem:[%s9676_s4 + $0xcc] ss:$16 sps:$4 sm:$0xff]  }
 0x163   :  { %2061 = vmatprep.subr.bf16.mxu0 %v7769_v63  ;;  %2102 = vmatprep.subr.bf16.mxu1 %v9774_v49  ;;  %v8195_v63 = vld [vmem:[%s9676_s4 + $0xc0] ss:$16 sps:$4 sm:$0xff]  }
 0x166   :  { %2062 = vmatpush1.bf16.msra.mxu0 %v7783_v2  ;;  %2103 = vmatpush1.bf16.msra.mxu1 %v7788_v3  ;;  %v8209_v2 = vld [vmem:[%s9676_s4 + $0xa4] ss:$16 sps:$4 sm:$0xff]   ;;  %v8214_v3 = vld [vmem:[%s9676_s4 + $0xac] ss:$16 sps:$4 sm:$0xff]  }
 0x167   :  { %2063 = vmatprep.subr.bf16.mxu0 %v7793_v4  ;;  %2104 = vmatprep.subr.bf16.mxu1 %v7798_v5  ;;  %v8219_v4 = vld [vmem:[%s9676_s4 + $0xa0] ss:$16 sps:$4 sm:$0xff]   ;;  %v8224_v5 = vld [vmem:[%s9676_s4 + $0xa8] ss:$16 sps:$4 sm:$0xff]  }
 0x16a   :  { %2064 = vmatpush1.bf16.msra.mxu0 %v7807_v8  ;;  %2105 = vmatpush1.bf16.msra.mxu1 %v7812_v17  ;;  %v8233_v8 = vld [vmem:[%s9676_s4 + $0x84] ss:$16 sps:$4 sm:$0xff]   ;;  %v8238_v17 = vld [vmem:[%s9676_s4 + $0x8c] ss:$16 sps:$4 sm:$0xff]  }
 0x16b   :  { %2065 = vmatprep.subr.bf16.mxu0 %v9775_v54  ;;  %2106 = vmatprep.subr.bf16.mxu1 %v7822_v35  ;;  %v8243_v35 = vld [vmem:[%s9676_s4 + $0x80] ss:$16 sps:$4 sm:$0xff]  }
 0x16c   :  { %v7031_v55 = vpop.eup %7030 }
 0x16d   :  { %v1535_v56 = vmul.f32 %v7031_v55, %v1530_v53 }
 0x16e   :  { %2066 = vmatpush1.bf16.msra.mxu0 %v7831_v1  ;;  %2107 = vmatpush1.bf16.msra.mxu1 %v7836_v0  ;;  %v8166_v1 = vld [vmem:[%s9676_s4 + $0xec] ss:$16 sps:$4 sm:$0xff]   ;;  %v8200_v0 = vld [vmem:[%s9676_s4 + $0xc8] ss:$16 sps:$4 sm:$0xff]  }
 0x16f   :  { %6060 = vst [vmem:[%s9681_s9 + $0x38] sm:$0xff] %v1535_v56  ;;  %v1858_v57 = vpack.c.bf16 %v1535_v56, %v1535_v56  ;;  %2365 = vmatprep.subr.bf16.mxu0 %v8161_v58  ;;  %2406 = vmatprep.subr.bf16.mxu1 %v8166_v1 }
 0x171   :  { %2084 = vmatmul.mubr.bf16.vlgmr.msra.gmra.mxu0 %v1858_v57  ;;  %2125 = vmatmul.mubr.bf16.vlgmr.msra.gmra.mxu1 %v1858_v57 }
 0x172   :  { %2397 = vmatprep.mubr.bf16.mxu0 %v9716_v26  ;;  %2438 = vmatprep.mubr.bf16.mxu1 %v9716_v26 }
 0x173   :  { %2366 = vmatpush1.bf16.msra.mxu0 %v8171_v59  ;;  %2407 = vmatpush1.bf16.msra.mxu1 %v8176_v60 }
 0x174   :  { %2367 = vmatprep.subr.bf16.mxu0 %v8185_v61  ;;  %2408 = vmatprep.subr.bf16.mxu1 %v8190_v62 }
 0x177   :  { %2368 = vmatpush1.bf16.msra.mxu0 %v8195_v63  ;;  %2409 = vmatpush1.bf16.msra.mxu1 %v8200_v0 }
 0x178   :  { %2369 = vmatprep.subr.bf16.mxu0 %v8209_v2  ;;  %2410 = vmatprep.subr.bf16.mxu1 %v8214_v3 }
 0x17b   :  { %2370 = vmatpush1.bf16.msra.mxu0 %v8219_v4  ;;  %2411 = vmatpush1.bf16.msra.mxu1 %v8224_v5 }
 0x17c   :  { %2371 = vmatprep.subr.bf16.mxu0 %v8233_v8  ;;  %2412 = vmatprep.subr.bf16.mxu1 %v8238_v17 }
 0x17f   :  { %2372 = vmatpush1.bf16.msra.mxu0 %v8243_v35  ;;  %2413 = vmatpush1.bf16.msra.mxu1 %v8248_v12 }
 0x180   :  { %2373 = vmatprep.subr.bf16.mxu0 %v8257_v23  ;;  %2414 = vmatprep.subr.bf16.mxu1 %v8262_v7 }
 0x183   :  { %2374 = vmatpush1.bf16.msra.mxu0 %v8267_v19  ;;  %2415 = vmatpush1.bf16.msra.mxu1 %v8272_v21 }
 0x184   :  { %2375 = vmatprep.subr.bf16.mxu0 %v8281_v36  ;;  %2416 = vmatprep.subr.bf16.mxu1 %v8286_v29 }
 0x187   :  { %2376 = vmatpush1.bf16.msra.mxu0 %v8291_v28  ;;  %2417 = vmatpush1.bf16.msra.mxu1 %v8296_v32 }
 0x188   :  { %2377 = vmatprep.subr.bf16.mxu0 %v8305_v31  ;;  %2418 = vmatprep.subr.bf16.mxu1 %v8310_v6 }
 0x18b   :  { %2378 = vmatpush1.bf16.msra.mxu0 %v8315_v50  ;;  %2419 = vmatpush1.bf16.msra.mxu1 %v8320_v13 }
 0x18c   :  { %2379 = vmatprep.subr.bf16.mxu0 %v8329_v18  ;;  %2420 = vmatprep.subr.bf16.mxu1 %v8334_v20 }
 0x18f   :  { %2380 = vmatpush1.bf16.msra.mxu0 %v8339_v24  ;;  %2421 = vmatpush1.bf16.msra.mxu1 %v8344_v10 }
 0x190   :  { %2671 = vmatprep.subr.bf16.mxu0 %v8353_v37  ;;  %2712 = vmatprep.subr.bf16.mxu1 %v8358_v38 }
 0x211   :  { %v1779_v9 = vpop.f32.mrf.mxu0  ;;  %v1820_v14 = vpop.f32.mrf.mxu1 }
 0x212   :  { %v1827_v16 = vadd.f32 %v1779_v9, %v7914_v25  ;;  %v1829_v33 = vadd.f32 %v1820_v14, %v7917_v27  ;;  %v9777_v14 = vld [vmem:[#allocation59_spill] sm:$0xff] }
 0x213   :  { %v1781_v11 = vpop.f32.mrf.mxu0  ;;  %v1822_v15 = vpop.f32.mrf.mxu1 }
 0x214   :  { %v1831_v34 = vmul.f32 0.5, %v1827_v16  ;;  %v1828_v43 = vadd.f32 %v1781_v11, %v7920_v30  ;;  %v1830_v47 = vadd.f32 %v1822_v15, %v9776_v46 }
 0x215   :  { %v1783_v41 = vpop.f32.mrf.mxu0  ;;  %v1824_v42 = vpop.f32.mrf.mxu1 }
 0x216   :  { %7032 = vtanh.f32 %v1831_v34  ;;  %v1835_v40 = vmul.f32 0.5, %v1828_v43  ;;  %v1840_v22 = vmul.f32 0.5, %v1830_v47  ;;  %v9778_v41 = vld [vmem:[#allocation61_spill] sm:$0xff] }
 0x217   :  { %v1784_v44 = vpop.f32.mrf.mxu0  ;;  %v1825_v45 = vpop.f32.mrf.mxu1 }
 0x218   :  { %7034 = vtanh.f32 %v1835_v40  ;;  %v9779_v45 = vld [vmem:[#allocation60_spill] sm:$0xff] }
 0x219   :  { %7036 = vtanh.f32 %v1829_v33 }
 0x21a   :  { %7038 = vtanh.f32 %v1840_v22 }
 0x223   :  { %v7033_v49 = vpop.eup %7032 }
 0x224   :  { %v1833_v25 = vmul.f32 0.5, %v7033_v49 }
 0x225   :  { %v7035_v51 = vpop.eup %7034 }
 0x226   :  { %v1834_v52 = vadd.f32 0.5, %v1833_v25  ;;  %v1837_v53 = vmul.f32 0.5, %v7035_v51  ;;  %v7037_v30 = vpop.eup %7036 }
 0x227   :  { %v7039_v11 = vpop.eup %7038 }
 0x228   :  { %v1838_v54 = vadd.f32 0.5, %v1837_v53  ;;  %v1845_v55 = vmul.f32 %v7037_v30, %v1834_v52  ;;  %v1842_v44 = vmul.f32 0.5, %v7039_v11  ;;  %v8376_v52 = vld [vmem:[%s9677_s5 + $0xe0] ss:$16 sps:$4 sm:$0xff]   ;;  %v8381_v53 = vld [vmem:[%s9677_s5 + $0xe8] ss:$16 sps:$4 sm:$0xff]  }
 0x229   :  { %v9780_v30 = vld [vmem:[#allocation62_spill] sm:$0xff] }
 0x22a   :  { %v1844_v56 = vmul.f32 %v1838_v54, %v8108_v39  ;;  %v1843_v49 = vadd.f32 0.5, %v1842_v44  ;;  %v8414_v11 = vld [vmem:[%s9677_s5 + $0xa4] ss:$16 sps:$4 sm:$0xff]  }
 0x22c   :  { %v8367_v27 = vadd.f32 %v1845_v55, %v1844_v56  ;;  %v8390_v56 = vld [vmem:[%s9677_s5 + $0xc4] ss:$16 sps:$4 sm:$0xff]  }
 0x22e   :  { %7040 = vtanh.f32 %v8367_v27 }
 0x231   :  { %v2085_v57 = vpop.f32.mrf.mxu0  ;;  %v2126_v9 = vpop.f32.mrf.mxu1 }
 0x232   :  { %v2133_v16 = vadd.f32 %v2085_v57, %v9777_v14  ;;  %v2135_v39 = vadd.f32 %v2126_v9, %v9779_v45  ;;  %v8395_v57 = vld [vmem:[%s9677_s5 + $0xcc] ss:$16 sps:$4 sm:$0xff]   ;;  %v8402_v9 = vld [vmem:[%s9677_s5 + $0xc0] ss:$16 sps:$4 sm:$0xff]   ;;  %v8407_v14 = vld [vmem:[%s9677_s5 + $0xc8] ss:$16 sps:$4 sm:$0xff]  }
 0x233   :  { %v2087_v15 = vpop.f32.mrf.mxu0  ;;  %v2128_v34 = vpop.f32.mrf.mxu1  ;;  %v8440_v45 = vld [vmem:[%s9677_s5 + $0x84] ss:$16 sps:$4 sm:$0xff]  }
 0x234   :  { %v2137_v43 = vmul.f32 0.5, %v2133_v16  ;;  %v2134_v42 = vadd.f32 %v2087_v15, %v9778_v41  ;;  %v2136_v54 = vadd.f32 %v2128_v34, %v9780_v30  ;;  %v8419_v15 = vld [vmem:[%s9677_s5 + $0xac] ss:$16 sps:$4 sm:$0xff]   ;;  %v8465_v30 = vld [vmem:[%s9677_s5 + $0x64] ss:$16 sps:$4 sm:$0xff]  }
 0x235   :  { %v2089_v33 = vpop.f32.mrf.mxu0  ;;  %v2130_v40 = vpop.f32.mrf.mxu1 }
 0x236   :  { %7042 = vtanh.f32 %v2137_v43  ;;  %v2141_v46 = vmul.f32 0.5, %v2134_v42  ;;  %v2146_v16 = vmul.f32 0.5, %v2136_v54  ;;  %v8428_v42 = vld [vmem:[%s9677_s5 + $0xa0] ss:$16 sps:$4 sm:$0xff]   ;;  %v8433_v33 = vld [vmem:[%s9677_s5 + $0xa8] ss:$16 sps:$4 sm:$0xff]  }
 0x237   :  { %v2090_v47 = vpop.f32.mrf.mxu0  ;;  %v2131_v22 = vpop.f32.mrf.mxu1  ;;  %v8470_v54 = vld [vmem:[%s9677_s5 + $0x6c] ss:$16 sps:$4 sm:$0xff]  }
 0x238   :  { %7044 = vtanh.f32 %v2141_v46 }
 0x239   :  { %7046 = vtanh.f32 %v2135_v39  ;;  %v8445_v39 = vld [vmem:[%s9677_s5 + $0x8c] ss:$16 sps:$4 sm:$0xff]  }
 0x23a   :  { %7048 = vtanh.f32 %v2146_v16  ;;  %v8484_v16 = vld [vmem:[%s9677_s5 + $0x68] ss:$16 sps:$4 sm:$0xff]  }
 0x23b   :  { %v7041_v25 = vpop.eup %7040  ;;  %9781 = vst [vmem:[#allocation8_spill] sm:$0xff] %v8484_v16 }
 0x23c   :  { %v1848_v51 = vmul.f32 %v7041_v25, %v1843_v49  ;;  %v8452_v49 = vld [vmem:[%s9677_s5 + $0x80] ss:$16 sps:$4 sm:$0xff]   ;;  %v8457_v25 = vld [vmem:[%s9677_s5 + $0x88] ss:$16 sps:$4 sm:$0xff]  }
 0x23e   :  { %6125 = vst [vmem:[%s9680_s8 + $0x8] sm:$0xff] %v1848_v51  ;;  %v2172_v55 = vpack.c.bf16 %v1848_v51, %v1848_v51 }
 0x240   :  { %2398 = vmatmul.mubr.bf16.vlgmr.msra.gmra.mxu0 %v2172_v55  ;;  %2439 = vmatmul.mubr.bf16.vlgmr.msra.gmra.mxu1 %v2172_v55 }
 0x241   :  { %2672 = vmatpush1.bf16.msra.mxu0 %v8376_v52  ;;  %2713 = vmatpush1.bf16.msra.mxu1 %v8381_v53 }
 0x242   :  { %2673 = vmatprep.subr.bf16.mxu0 %v8390_v56  ;;  %2714 = vmatprep.subr.bf16.mxu1 %v8395_v57 }
 0x243   :  { %v7043_v34 = vpop.eup %7042  ;;  %2703 = vmatprep.mubr.bf16.mxu0 %v9716_v26  ;;  %2744 = vmatprep.mubr.bf16.mxu1 %v9716_v26 }
 0x244   :  { %v2139_v43 = vmul.f32 0.5, %v7043_v34  ;;  %v8492_v34 = vld [vmem:[%s9677_s5 + $0x44] ss:$16 sps:$4 sm:$0xff]  }
 0x245   :  { %v7045_v41 = vpop.eup %7044  ;;  %2674 = vmatpush1.bf16.msra.mxu0 %v8402_v9  ;;  %2715 = vmatpush1.bf16.msra.mxu1 %v8407_v14  ;;  %9782 = vst [vmem:[#allocation9_spill] sm:$0xff] %v8492_v34 }
 0x246   :  { %v2140_v40 = vadd.f32 0.5, %v2139_v43  ;;  %v2143_v44 = vmul.f32 0.5, %v7045_v41  ;;  %2675 = vmatprep.subr.bf16.mxu0 %v8414_v11  ;;  %2716 = vmatprep.subr.bf16.mxu1 %v8419_v15  ;;  %v7047_v46 = vpop.eup %7046  ;;  %v8497_v43 = vld [vmem:[%s9677_s5 + $0x4c] ss:$16 sps:$4 sm:$0xff]   ;;  %v8504_v41 = vld [vmem:[%s9677_s5 + $0x40] ss:$16 sps:$4 sm:$0xff]  }
 0x247   :  { %9783 = vst [vmem:[#allocation10_spill] sm:$0xff] %v8497_v43  ;;  %9784 = vst [vmem:[#allocation59_spill] sm:$0xff] %v8504_v41 }
 0x248   :  { %v2144_v47 = vadd.f32 0.5, %v2143_v44  ;;  %v2151_v22 = vmul.f32 %v7047_v46, %v2140_v40  ;;  %v8509_v40 = vld [vmem:[%s9677_s5 + $0x48] ss:$16 sps:$4 sm:$0xff]   ;;  %v8516_v44 = vld [vmem:[%s9677_s5 + $0x24] ss:$16 sps:$4 sm:$0xff]  }
 0x249   :  { %2676 = vmatpush1.bf16.msra.mxu0 %v8428_v42  ;;  %2717 = vmatpush1.bf16.msra.mxu1 %v8433_v33  ;;  %9785 = vst [vmem:[#allocation61_spill] sm:$0xff] %v8509_v40  ;;  %9786 = vst [vmem:[#allocation60_spill] sm:$0xff] %v8516_v44  ;;  %v8521_v46 = vld [vmem:[%s9677_s5 + $0x2c] ss:$16 sps:$4 sm:$0xff]  }
 0x24a   :  { %v2150_v51 = vmul.f32 %v2144_v47, %v8132_v48  ;;  %2677 = vmatprep.subr.bf16.mxu0 %v8440_v45  ;;  %2718 = vmatprep.subr.bf16.mxu1 %v8445_v39  ;;  %v8479_v48 = vld [vmem:[%s9677_s5 + $0x60] ss:$16 sps:$4 sm:$0xff]   ;;  %9787 = vst [vmem:[#allocation62_spill] sm:$0xff] %v8521_v46  ;;  %v7049_v47 = vpop.eup %7048 }
 0x24c   :  { %v8472_v55 = vadd.f32 %v2151_v22, %v2150_v51  ;;  %v8528_v22 = vld [vmem:[%s9677_s5 + $0x20] ss:$16 sps:$4 sm:$0xff]   ;;  %v8533_v51 = vld [vmem:[%s9677_s5 + $0x28] ss:$16 sps:$4 sm:$0xff]  }
 0x24d   :  { %2678 = vmatpush1.bf16.msra.mxu0 %v8452_v49  ;;  %2719 = vmatpush1.bf16.msra.mxu1 %v8457_v25  ;;  %9788 = vst [vmem:[#allocation63_spill] sm:$0xff] %v8533_v51 }
 0x24e   :  { %7050 = vtanh.f32 %v8472_v55  ;;  %2679 = vmatprep.subr.bf16.mxu0 %v8465_v30  ;;  %2720 = vmatprep.subr.bf16.mxu1 %v8470_v54 }
 0x251   :  { %2680 = vmatpush1.bf16.msra.mxu0 %v8479_v48  ;;  %2721 = vmatpush1.bf16.msra.mxu1 %v8484_v16 }
 0x252   :  { %2681 = vmatprep.subr.bf16.mxu0 %v8492_v34  ;;  %2722 = vmatprep.subr.bf16.mxu1 %v8497_v43  ;;  %v2148_v43 = vmul.f32 0.5, %v7049_v47  ;;  %v8552_v47 = vld [vmem:[%s9677_s5] ss:$16 sps:$4 sm:$0xff]  }
 0x255   :  { %2682 = vmatpush1.bf16.msra.mxu0 %v8504_v41  ;;  %2723 = vmatpush1.bf16.msra.mxu1 %v8509_v40  ;;  %v8540_v41 = vld [vmem:[%s9677_s5 + $0x4] ss:$16 sps:$4 sm:$0xff]   ;;  %v8545_v40 = vld [vmem:[%s9677_s5 + $0xc] ss:$16 sps:$4 sm:$0xff]  }
 0x256   :  { %2683 = vmatprep.subr.bf16.mxu0 %v8516_v44  ;;  %2724 = vmatprep.subr.bf16.mxu1 %v8521_v46  ;;  %v8557_v46 = vld [vmem:[%s9677_s5 + $0x8] ss:$16 sps:$4 sm:$0xff]   ;;  %v2149_v44 = vadd.f32 0.5, %v2148_v43 }
 0x259   :  { %2684 = vmatpush1.bf16.msra.mxu0 %v8528_v22  ;;  %2725 = vmatpush1.bf16.msra.mxu1 %v8533_v51 }
 0x25a   :  { %2685 = vmatprep.subr.bf16.mxu0 %v8540_v41  ;;  %2726 = vmatprep.subr.bf16.mxu1 %v8545_v40 }
 0x25b   :  { %v7051_v34 = vpop.eup %7050 }
 0x25c   :  { %v2154_v16 = vmul.f32 %v7051_v34, %v2149_v44  ;;  %v9794_v44 = vld [vmem:[#allocation57_spill] sm:$0xff] }
 0x25d   :  { %2686 = vmatpush1.bf16.msra.mxu0 %v8552_v47  ;;  %2727 = vmatpush1.bf16.msra.mxu1 %v8557_v46 }
 0x25e   :  { %6126 = vst [vmem:[%s9681_s9 + $0x30] sm:$0xff] %v2154_v16  ;;  %v2478_v51 = vpack.c.bf16 %v2154_v16, %v2154_v16  ;;  %2985 = vmatprep.subr.bf16.mxu0 %v8161_v58  ;;  %3026 = vmatprep.subr.bf16.mxu1 %v8166_v1 }
 0x260   :  { %2704 = vmatmul.mubr.bf16.vlgmr.msra.gmra.mxu0 %v2478_v51  ;;  %2745 = vmatmul.mubr.bf16.vlgmr.msra.gmra.mxu1 %v2478_v51 }
 0x261   :  { %2986 = vmatpush1.bf16.msra.mxu0 %v8171_v59  ;;  %3027 = vmatpush1.bf16.msra.mxu1 %v8176_v60  ;;  %v9789_v59 = vld [vmem:[#allocation11_spill] sm:$0xff] }
 0x262   :  { %2987 = vmatprep.subr.bf16.mxu0 %v8185_v61  ;;  %3028 = vmatprep.subr.bf16.mxu1 %v8190_v62 }
 0x263   :  { %3017 = vmatprep.mubr.bf16.mxu0 %v9716_v26  ;;  %3058 = vmatprep.mubr.bf16.mxu1 %v9716_v26 }
 0x265   :  { %2988 = vmatpush1.bf16.msra.mxu0 %v8195_v63  ;;  %3029 = vmatpush1.bf16.msra.mxu1 %v8200_v0  ;;  %v9790_v0 = vld [vmem:[#allocation13_spill] sm:$0xff] }
 0x266   :  { %2989 = vmatprep.subr.bf16.mxu0 %v8209_v2  ;;  %3030 = vmatprep.subr.bf16.mxu1 %v8214_v3 }
 0x269   :  { %2990 = vmatpush1.bf16.msra.mxu0 %v8219_v4  ;;  %3031 = vmatpush1.bf16.msra.mxu1 %v8224_v5  ;;  %v9791_v5 = vld [vmem:[#allocation12_spill] sm:$0xff] }
 0x26a   :  { %2991 = vmatprep.subr.bf16.mxu0 %v8233_v8  ;;  %3032 = vmatprep.subr.bf16.mxu1 %v8238_v17 }
 0x26d   :  { %2992 = vmatpush1.bf16.msra.mxu0 %v8243_v35  ;;  %3033 = vmatpush1.bf16.msra.mxu1 %v8248_v12 }
 0x26e   :  { %2993 = vmatprep.subr.bf16.mxu0 %v8257_v23  ;;  %3034 = vmatprep.subr.bf16.mxu1 %v8262_v7  ;;  %v9792_v23 = vld [vmem:[#allocation14_spill] sm:$0xff] }
 0x271   :  { %2994 = vmatpush1.bf16.msra.mxu0 %v8267_v19  ;;  %3035 = vmatpush1.bf16.msra.mxu1 %v8272_v21 }
 0x272   :  { %2995 = vmatprep.subr.bf16.mxu0 %v8281_v36  ;;  %3036 = vmatprep.subr.bf16.mxu1 %v8286_v29 }
 0x275   :  { %2996 = vmatpush1.bf16.msra.mxu0 %v8291_v28  ;;  %3037 = vmatpush1.bf16.msra.mxu1 %v8296_v32 }
 0x276   :  { %2997 = vmatprep.subr.bf16.mxu0 %v8305_v31  ;;  %3038 = vmatprep.subr.bf16.mxu1 %v8310_v6 }
 0x279   :  { %2998 = vmatpush1.bf16.msra.mxu0 %v8315_v50  ;;  %3039 = vmatpush1.bf16.msra.mxu1 %v8320_v13 }
 0x27a   :  { %2999 = vmatprep.subr.bf16.mxu0 %v8329_v18  ;;  %3040 = vmatprep.subr.bf16.mxu1 %v8334_v20 }
 0x27d   :  { %3000 = vmatpush1.bf16.msra.mxu0 %v8339_v24  ;;  %3041 = vmatpush1.bf16.msra.mxu1 %v8344_v10  ;;  %v9793_v10 = vld [vmem:[#allocation55_spill] sm:$0xff] }
 0x27e   :  { %3291 = vmatprep.subr.bf16.mxu0 %v8353_v37  ;;  %3332 = vmatprep.subr.bf16.mxu1 %v8358_v38 }
 0x300   :  { %v2399_v58 = vpop.f32.mrf.mxu0  ;;  %v2440_v1 = vpop.f32.mrf.mxu1 }
 0x301   :  { %v2447_v60 = vadd.f32 %v2399_v58, %v9789_v59  ;;  %v2449_v8 = vadd.f32 %v2440_v1, %v9791_v5 }
 0x302   :  { %v2401_v61 = vpop.f32.mrf.mxu0  ;;  %v2442_v62 = vpop.f32.mrf.mxu1 }
 0x303   :  { %v2451_v63 = vmul.f32 0.5, %v2447_v60  ;;  %v2448_v2 = vadd.f32 %v2401_v61, %v9790_v0  ;;  %v2450_v7 = vadd.f32 %v2442_v62, %v9792_v23  ;;  %v9795_v60 = vld [vmem:[#allocation56_spill] sm:$0xff] }
 0x304   :  { %v2403_v3 = vpop.f32.mrf.mxu0  ;;  %v2444_v4 = vpop.f32.mrf.mxu1 }
 0x305   :  { %7052 = vtanh.f32 %v2451_v63  ;;  %v2455_v17 = vmul.f32 0.5, %v2448_v2  ;;  %v2460_v19 = vmul.f32 0.5, %v2450_v7  ;;  %v9796_v4 = vld [vmem:[#allocation58_spill] sm:$0xff] }
 0x306   :  { %v2404_v35 = vpop.f32.mrf.mxu0  ;;  %v2445_v12 = vpop.f32.mrf.mxu1 }
 0x307   :  { %7054 = vtanh.f32 %v2455_v17 }
 0x308   :  { %7056 = vtanh.f32 %v2449_v8 }
 0x309   :  { %7058 = vtanh.f32 %v2460_v19 }
 0x312   :  { %v7053_v21 = vpop.eup %7052 }
 0x313   :  { %v2453_v36 = vmul.f32 0.5, %v7053_v21 }
 0x314   :  { %v7055_v29 = vpop.eup %7054 }
 0x315   :  { %v2454_v28 = vadd.f32 0.5, %v2453_v36  ;;  %v2457_v32 = vmul.f32 0.5, %v7055_v29  ;;  %v7057_v31 = vpop.eup %7056  ;;  %v8690_v36 = vld [vmem:[%s9676_s4 + $0xcc] ss:$16 sps:$4 sm:$0xff]   ;;  %v8695_v29 = vld [vmem:[%s9676_s4 + $0xc0] ss:$16 sps:$4 sm:$0xff]  }
 0x316   :  { %v7059_v38 = vpop.eup %7058 }
 0x317   :  { %v2458_v6 = vadd.f32 0.5, %v2457_v32  ;;  %v2465_v50 = vmul.f32 %v7057_v31, %v2454_v28  ;;  %v2462_v59 = vmul.f32 0.5, %v7059_v38  ;;  %v8700_v28 = vld [vmem:[%s9676_s4 + $0xc8] ss:$16 sps:$4 sm:$0xff]   ;;  %v8709_v32 = vld [vmem:[%s9676_s4 + $0xa4] ss:$16 sps:$4 sm:$0xff]  }
 0x318   :  { %v8714_v31 = vld [vmem:[%s9676_s4 + $0xac] ss:$16 sps:$4 sm:$0xff]  }
 0x319   :  { %v2464_v13 = vmul.f32 %v2458_v6, %v8367_v27  ;;  %v2463_v0 = vadd.f32 0.5, %v2462_v59  ;;  %v8719_v6 = vld [vmem:[%s9676_s4 + $0xa0] ss:$16 sps:$4 sm:$0xff]   ;;  %v8762_v38 = vld [vmem:[%s9676_s4 + $0x6c] ss:$16 sps:$4 sm:$0xff]  }
 0x31a   :  { %v8810_v59 = vld [vmem:[%s9676_s4 + $0x2c] ss:$16 sps:$4 sm:$0xff]  }
 0x31b   :  { %v8607_v18 = vadd.f32 %v2465_v50, %v2464_v13  ;;  %v8724_v50 = vld [vmem:[%s9676_s4 + $0xa8] ss:$16 sps:$4 sm:$0xff]   ;;  %v8733_v13 = vld [vmem:[%s9676_s4 + $0x84] ss:$16 sps:$4 sm:$0xff]  }
 0x31d   :  { %7060 = vtanh.f32 %v8607_v18 }
 0x320   :  { %v2705_v20 = vpop.f32.mrf.mxu0  ;;  %v2746_v24 = vpop.f32.mrf.mxu1 }
 0x321   :  { %v2753_v37 = vadd.f32 %v2705_v20, %v9793_v10  ;;  %v2755_v27 = vadd.f32 %v2746_v24, %v9795_v60  ;;  %v8738_v20 = vld [vmem:[%s9676_s4 + $0x8c] ss:$16 sps:$4 sm:$0xff]   ;;  %v8743_v24 = vld [vmem:[%s9676_s4 + $0x80] ss:$16 sps:$4 sm:$0xff]   ;;  %v8748_v10 = vld [vmem:[%s9676_s4 + $0x88] ss:$16 sps:$4 sm:$0xff]  }
 0x322   :  { %v2707_v16 = vpop.f32.mrf.mxu0  ;;  %v2748_v34 = vpop.f32.mrf.mxu1  ;;  %v8815_v60 = vld [vmem:[%s9676_s4 + $0x20] ss:$16 sps:$4 sm:$0xff]  }
 0x323   :  { %v2757_v43 = vmul.f32 0.5, %v2753_v37  ;;  %v2754_v51 = vadd.f32 %v2707_v16, %v9794_v44  ;;  %v2756_v5 = vadd.f32 %v2748_v34, %v9796_v4  ;;  %v8757_v37 = vld [vmem:[%s9676_s4 + $0x64] ss:$16 sps:$4 sm:$0xff]   ;;  %v8767_v16 = vld [vmem:[%s9676_s4 + $0x60] ss:$16 sps:$4 sm:$0xff]  }
 0x324   :  { %v2709_v58 = vpop.f32.mrf.mxu0  ;;  %v2750_v1 = vpop.f32.mrf.mxu1  ;;  %v8772_v34 = vld [vmem:[%s9676_s4 + $0x68] ss:$16 sps:$4 sm:$0xff]   ;;  %v8786_v44 = vld [vmem:[%s9676_s4 + $0x4c] ss:$16 sps:$4 sm:$0xff]  }
 0x325   :  { %7062 = vtanh.f32 %v2757_v43  ;;  %v2761_v61 = vmul.f32 0.5, %v2754_v51  ;;  %v2766_v17 = vmul.f32 0.5, %v2756_v5  ;;  %v8781_v43 = vld [vmem:[%s9676_s4 + $0x44] ss:$16 sps:$4 sm:$0xff]   ;;  %v8791_v51 = vld [vmem:[%s9676_s4 + $0x40] ss:$16 sps:$4 sm:$0xff]  }
 0x326   :  { %v2710_v62 = vpop.f32.mrf.mxu0  ;;  %v2751_v63 = vpop.f32.mrf.mxu1  ;;  %v8796_v58 = vld [vmem:[%s9676_s4 + $0x48] ss:$16 sps:$4 sm:$0xff]   ;;  %v8805_v1 = vld [vmem:[%s9676_s4 + $0x24] ss:$16 sps:$4 sm:$0xff]  }
 0x327   :  { %7064 = vtanh.f32 %v2761_v61  ;;  %v8829_v61 = vld [vmem:[%s9676_s4 + $0x4] ss:$16 sps:$4 sm:$0xff]   ;;  %v8834_v62 = vld [vmem:[%s9676_s4 + $0xc] ss:$16 sps:$4 sm:$0xff]   ;;  %v8839_v63 = vld [vmem:[%s9676_s4] ss:$16 sps:$4 sm:$0xff]  }
 0x328   :  { %7066 = vtanh.f32 %v2755_v27  ;;  %v8820_v27 = vld [vmem:[%s9676_s4 + $0x28] ss:$16 sps:$4 sm:$0xff]  }
 0x329   :  { %7068 = vtanh.f32 %v2766_v17 }
 0x32a   :  { %v7061_v2 = vpop.eup %7060 }
 0x32b   :  { %v2468_v3 = vmul.f32 %v7061_v2, %v2463_v0  ;;  %v8844_v0 = vld [vmem:[%s9676_s4 + $0x8] ss:$16 sps:$4 sm:$0xff]   ;;  %v8853_v2 = vld [vmem:[%s9677_s5 + $0xe4] ss:$16 sps:$4 sm:$0xff]  }
 0x32d   :  { %6191 = vst [vmem:[%s9680_s8 + $0x10] sm:$0xff] %v2468_v3  ;;  %v2792_v8 = vpack.c.bf16 %v2468_v3, %v2468_v3  ;;  %v8858_v3 = vld [vmem:[%s9677_s5 + $0xec] ss:$16 sps:$4 sm:$0xff]  }
 0x32f   :  { %3018 = vmatmul.mubr.bf16.vlgmr.msra.gmra.mxu0 %v2792_v8  ;;  %3059 = vmatmul.mubr.bf16.vlgmr.msra.gmra.mxu1 %v2792_v8  ;;  %v9805_v8 = vld [vmem:[#allocation15_spill] sm:$0xff] }
 0x330   :  { %3292 = vmatpush1.bf16.msra.mxu0 %v8376_v52  ;;  %3333 = vmatpush1.bf16.msra.mxu1 %v8381_v53 }
 0x331   :  { %3293 = vmatprep.subr.bf16.mxu0 %v8390_v56  ;;  %3334 = vmatprep.subr.bf16.mxu1 %v8395_v57 }
 0x332   :  { %v7063_v35 = vpop.eup %7062  ;;  %3323 = vmatprep.mubr.bf16.mxu0 %v9716_v26  ;;  %3364 = vmatprep.mubr.bf16.mxu1 %v9716_v26 }
 0x333   :  { %v2759_v12 = vmul.f32 0.5, %v7063_v35 }
 0x334   :  { %v7065_v23 = vpop.eup %7064  ;;  %3294 = vmatpush1.bf16.msra.mxu0 %v8402_v9  ;;  %3335 = vmatpush1.bf16.msra.mxu1 %v8407_v14  ;;  %v9797_v14 = vld [vmem:[#allocation8_spill] sm:$0xff] }
 0x335   :  { %v2760_v7 = vadd.f32 0.5, %v2759_v12  ;;  %v2763_v52 = vmul.f32 0.5, %v7065_v23  ;;  %3295 = vmatprep.subr.bf16.mxu0 %v8414_v11  ;;  %3336 = vmatprep.subr.bf16.mxu1 %v8419_v15  ;;  %v7067_v53 = vpop.eup %7066  ;;  %v9798_v11 = vld [vmem:[#allocation9_spill] sm:$0xff]  ;;  %v9799_v15 = vld [vmem:[#allocation10_spill] sm:$0xff] }
 0x337   :  { %v2764_v56 = vadd.f32 0.5, %v2763_v52  ;;  %v2771_v57 = vmul.f32 %v7067_v53, %v2760_v7  ;;  %v9806_v7 = vld [vmem:[#allocation17_spill] sm:$0xff] }
 0x338   :  { %3296 = vmatpush1.bf16.msra.mxu0 %v8428_v42  ;;  %3337 = vmatpush1.bf16.msra.mxu1 %v8433_v33  ;;  %v7069_v42 = vpop.eup %7068  ;;  %v9800_v33 = vld [vmem:[#allocation59_spill] sm:$0xff] }
 0x339   :  { %v2770_v19 = vmul.f32 %v2764_v56, %v8472_v55  ;;  %3297 = vmatprep.subr.bf16.mxu0 %v8440_v45  ;;  %3338 = vmatprep.subr.bf16.mxu1 %v8445_v39  ;;  %v9801_v45 = vld [vmem:[#allocation61_spill] sm:$0xff]  ;;  %v2768_v39 = vmul.f32 0.5, %v7069_v42  ;;  %v9808_v42 = vld [vmem:[#allocation18_spill] sm:$0xff] }
 0x33b   :  { %v8632_v9 = vadd.f32 %v2771_v57, %v2770_v19  ;;  %v9807_v57 = vld [vmem:[#allocation16_spill] sm:$0xff] }
 0x33c   :  { %3298 = vmatpush1.bf16.msra.mxu0 %v8452_v49  ;;  %3339 = vmatpush1.bf16.msra.mxu1 %v8457_v25  ;;  %v9802_v49 = vld [vmem:[#allocation60_spill] sm:$0xff]  ;;  %v9803_v25 = vld [vmem:[#allocation62_spill] sm:$0xff] }
 0x33d   :  { %7070 = vtanh.f32 %v8632_v9  ;;  %3299 = vmatprep.subr.bf16.mxu0 %v8465_v30  ;;  %3340 = vmatprep.subr.bf16.mxu1 %v8470_v54  ;;  %v9804_v30 = vld [vmem:[#allocation63_spill] sm:$0xff]  ;;  %v2769_v54 = vadd.f32 0.5, %v2768_v39 }
 0x340   :  { %3300 = vmatpush1.bf16.msra.mxu0 %v8479_v48  ;;  %3341 = vmatpush1.bf16.msra.mxu1 %v9797_v14 }
 0x341   :  { %3301 = vmatprep.subr.bf16.mxu0 %v9798_v11  ;;  %3342 = vmatprep.subr.bf16.mxu1 %v9799_v15 }
 0x344   :  { %3302 = vmatpush1.bf16.msra.mxu0 %v9800_v33  ;;  %3343 = vmatpush1.bf16.msra.mxu1 %v9801_v45 }
 0x345   :  { %3303 = vmatprep.subr.bf16.mxu0 %v9802_v49  ;;  %3344 = vmatprep.subr.bf16.mxu1 %v9803_v25 }
 0x348   :  { %3304 = vmatpush1.bf16.msra.mxu0 %v8528_v22  ;;  %3345 = vmatpush1.bf16.msra.mxu1 %v9804_v30  ;;  %v8676_v22 = vld [vmem:[%s9676_s4 + $0xe8] ss:$16 sps:$4 sm:$0xff]  }
 0x349   :  { %3305 = vmatprep.subr.bf16.mxu0 %v8540_v41  ;;  %3346 = vmatprep.subr.bf16.mxu1 %v8545_v40  ;;  %v8661_v41 = vld [vmem:[%s9676_s4 + $0xe4] ss:$16 sps:$4 sm:$0xff]   ;;  %v8666_v40 = vld [vmem:[%s9676_s4 + $0xec] ss:$16 sps:$4 sm:$0xff]  }
 0x34a   :  { %v7071_v55 = vpop.eup %7070 }
 0x34b   :  { %v2774_v48 = vmul.f32 %v7071_v55, %v2769_v54 }
 0x34c   :  { %3306 = vmatpush1.bf16.msra.mxu0 %v8552_v47  ;;  %3347 = vmatpush1.bf16.msra.mxu1 %v8557_v46  ;;  %v8671_v46 = vld [vmem:[%s9676_s4 + $0xe0] ss:$16 sps:$4 sm:$0xff]   ;;  %v8685_v47 = vld [vmem:[%s9676_s4 + $0xc4] ss:$16 sps:$4 sm:$0xff]  }
 0x34d   :  { %6192 = vst [vmem:[%s9681_s9 + $0x28] sm:$0xff] %v2774_v48  ;;  %v3098_v21 = vpack.c.bf16 %v2774_v48, %v2774_v48  ;;  %3604 = vmatprep.subr.bf16.mxu0 %v8661_v41  ;;  %3645 = vmatprep.subr.bf16.mxu1 %v8666_v40 }
 0x34f   :  { %3324 = vmatmul.mubr.bf16.vlgmr.msra.gmra.mxu0 %v3098_v21  ;;  %3365 = vmatmul.mubr.bf16.vlgmr.msra.gmra.mxu1 %v3098_v21 }
 0x350   :  { %3636 = vmatprep.mubr.bf16.mxu0 %v9716_v26  ;;  %3677 = vmatprep.mubr.bf16.mxu1 %v9716_v26 }
 0x351   :  { %3605 = vmatpush1.bf16.msra.mxu0 %v8671_v46  ;;  %3646 = vmatpush1.bf16.msra.mxu1 %v8676_v22 }
 0x352   :  { %3606 = vmatprep.subr.bf16.mxu0 %v8685_v47  ;;  %3647 = vmatprep.subr.bf16.mxu1 %v8690_v36 }
 0x355   :  { %3607 = vmatpush1.bf16.msra.mxu0 %v8695_v29  ;;  %3648 = vmatpush1.bf16.msra.mxu1 %v8700_v28 }
 0x356   :  { %3608 = vmatprep.subr.bf16.mxu0 %v8709_v32  ;;  %3649 = vmatprep.subr.bf16.mxu1 %v8714_v31 }
 0x359   :  { %3609 = vmatpush1.bf16.msra.mxu0 %v8719_v6  ;;  %3650 = vmatpush1.bf16.msra.mxu1 %v8724_v50 }
 0x35a   :  { %3610 = vmatprep.subr.bf16.mxu0 %v8733_v13  ;;  %3651 = vmatprep.subr.bf16.mxu1 %v8738_v20 }
 0x35d   :  { %3611 = vmatpush1.bf16.msra.mxu0 %v8743_v24  ;;  %3652 = vmatpush1.bf16.msra.mxu1 %v8748_v10 }
 0x35e   :  { %3612 = vmatprep.subr.bf16.mxu0 %v8757_v37  ;;  %3653 = vmatprep.subr.bf16.mxu1 %v8762_v38 }
 0x361   :  { %3613 = vmatpush1.bf16.msra.mxu0 %v8767_v16  ;;  %3654 = vmatpush1.bf16.msra.mxu1 %v8772_v34 }
 0x362   :  { %3614 = vmatprep.subr.bf16.mxu0 %v8781_v43  ;;  %3655 = vmatprep.subr.bf16.mxu1 %v8786_v44 }
 0x365   :  { %3615 = vmatpush1.bf16.msra.mxu0 %v8791_v51  ;;  %3656 = vmatpush1.bf16.msra.mxu1 %v8796_v58 }
 0x366   :  { %3616 = vmatprep.subr.bf16.mxu0 %v8805_v1  ;;  %3657 = vmatprep.subr.bf16.mxu1 %v8810_v59 }
 0x369   :  { %3617 = vmatpush1.bf16.msra.mxu0 %v8815_v60  ;;  %3658 = vmatpush1.bf16.msra.mxu1 %v8820_v27 }
 0x36a   :  { %3618 = vmatprep.subr.bf16.mxu0 %v8829_v61  ;;  %3659 = vmatprep.subr.bf16.mxu1 %v8834_v62 }
 0x36d   :  { %3619 = vmatpush1.bf16.msra.mxu0 %v8839_v63  ;;  %3660 = vmatpush1.bf16.msra.mxu1 %v8844_v0 }
 0x36e   :  { %3909 = vmatprep.subr.bf16.mxu0 %v8853_v2  ;;  %3950 = vmatprep.subr.bf16.mxu1 %v8858_v3 }
 0x3ef   :  { %v3019_v4 = vpop.f32.mrf.mxu0  ;;  %v3060_v5 = vpop.f32.mrf.mxu1 }
 0x3f0   :  { %v3067_v17 = vadd.f32 %v3019_v4, %v9805_v8  ;;  %v3069_v19 = vadd.f32 %v3060_v5, %v9807_v57 }
 0x3f1   :  { %v3021_v35 = vpop.f32.mrf.mxu0  ;;  %v3062_v12 = vpop.f32.mrf.mxu1 }
 0x3f2   :  { %v3071_v23 = vmul.f32 0.5, %v3067_v17  ;;  %v3068_v52 = vadd.f32 %v3021_v35, %v9806_v7  ;;  %v3070_v33 = vadd.f32 %v3062_v12, %v9808_v42  ;;  %v9809_v35 = vld [vmem:[#allocation51_spill] sm:$0xff] }
 0x3f3   :  { %v3023_v53 = vpop.f32.mrf.mxu0  ;;  %v3064_v56 = vpop.f32.mrf.mxu1 }
 0x3f4   :  { %7072 = vtanh.f32 %v3071_v23  ;;  %v3075_v14 = vmul.f32 0.5, %v3068_v52  ;;  %v3080_v45 = vmul.f32 0.5, %v3070_v33  ;;  %v9810_v56 = vld [vmem:[#allocation53_spill] sm:$0xff] }
 0x3f5   :  { %v3024_v11 = vpop.f32.mrf.mxu0  ;;  %v3065_v15 = vpop.f32.mrf.mxu1 }
 0x3f6   :  { %7074 = vtanh.f32 %v3075_v14  ;;  %v9811_v15 = vld [vmem:[#allocation52_spill] sm:$0xff] }
 0x3f7   :  { %7076 = vtanh.f32 %v3069_v19 }
 0x3f8   :  { %7078 = vtanh.f32 %v3080_v45 }
 0x401   :  { %v7073_v39 = vpop.eup %7072 }
 0x402   :  { %v3073_v49 = vmul.f32 0.5, %v7073_v39 }
 0x403   :  { %v7075_v25 = vpop.eup %7074 }
 0x404   :  { %v3074_v30 = vadd.f32 0.5, %v3073_v49  ;;  %v3077_v54 = vmul.f32 0.5, %v7075_v25  ;;  %v7077_v55 = vpop.eup %7076 }
 0x405   :  { %v7079_v23 = vpop.eup %7078 }
 0x406   :  { %v3078_v48 = vadd.f32 0.5, %v3077_v54  ;;  %v3085_v21 = vmul.f32 %v7077_v55, %v3074_v30  ;;  %v3082_v11 = vmul.f32 0.5, %v7079_v23  ;;  %v8876_v30 = vld [vmem:[%s9677_s5 + $0xe0] ss:$16 sps:$4 sm:$0xff]   ;;  %v8881_v54 = vld [vmem:[%s9677_s5 + $0xe8] ss:$16 sps:$4 sm:$0xff]  }
 0x407   :  { %v9812_v55 = vld [vmem:[#allocation54_spill] sm:$0xff] }
 0x408   :  { %v3084_v4 = vmul.f32 %v3078_v48, %v8607_v18  ;;  %v3083_v39 = vadd.f32 0.5, %v3082_v11  ;;  %v8914_v23 = vld [vmem:[%s9677_s5 + $0xa4] ss:$16 sps:$4 sm:$0xff]  }
 0x40a   :  { %v8867_v5 = vadd.f32 %v3085_v21, %v3084_v4  ;;  %v8890_v4 = vld [vmem:[%s9677_s5 + $0xc4] ss:$16 sps:$4 sm:$0xff]  }
 0x40c   :  { %7080 = vtanh.f32 %v8867_v5 }
 0x40f   :  { %v3325_v8 = vpop.f32.mrf.mxu0  ;;  %v3366_v17 = vpop.f32.mrf.mxu1 }
 0x410   :  { %v3373_v12 = vadd.f32 %v3325_v8, %v9809_v35  ;;  %v3375_v18 = vadd.f32 %v3366_v17, %v9811_v15  ;;  %v8895_v8 = vld [vmem:[%s9677_s5 + $0xcc] ss:$16 sps:$4 sm:$0xff]   ;;  %v8902_v17 = vld [vmem:[%s9677_s5 + $0xc0] ss:$16 sps:$4 sm:$0xff]   ;;  %v8907_v35 = vld [vmem:[%s9677_s5 + $0xc8] ss:$16 sps:$4 sm:$0xff]  }
 0x411   :  { %v3327_v7 = vpop.f32.mrf.mxu0  ;;  %v3368_v52 = vpop.f32.mrf.mxu1  ;;  %v8940_v15 = vld [vmem:[%s9677_s5 + $0x84] ss:$16 sps:$4 sm:$0xff]  }
 0x412   :  { %v3377_v53 = vmul.f32 0.5, %v3373_v12  ;;  %v3374_v57 = vadd.f32 %v3327_v7, %v9810_v56  ;;  %v3376_v48 = vadd.f32 %v3368_v52, %v9812_v55  ;;  %v8919_v7 = vld [vmem:[%s9677_s5 + $0xac] ss:$16 sps:$4 sm:$0xff]   ;;  %v8965_v55 = vld [vmem:[%s9677_s5 + $0x64] ss:$16 sps:$4 sm:$0xff]  }
 0x413   :  { %v3329_v19 = vpop.f32.mrf.mxu0  ;;  %v3370_v14 = vpop.f32.mrf.mxu1 }
 0x414   :  { %7082 = vtanh.f32 %v3377_v53  ;;  %v3381_v42 = vmul.f32 0.5, %v3374_v57  ;;  %v3386_v12 = vmul.f32 0.5, %v3376_v48  ;;  %v8928_v57 = vld [vmem:[%s9677_s5 + $0xa0] ss:$16 sps:$4 sm:$0xff]   ;;  %v8933_v19 = vld [vmem:[%s9677_s5 + $0xa8] ss:$16 sps:$4 sm:$0xff]  }
 0x415   :  { %v3330_v33 = vpop.f32.mrf.mxu0  ;;  %v3371_v45 = vpop.f32.mrf.mxu1  ;;  %v8970_v48 = vld [vmem:[%s9677_s5 + $0x6c] ss:$16 sps:$4 sm:$0xff]  }
 0x416   :  { %7084 = vtanh.f32 %v3381_v42 }
 0x417   :  { %7086 = vtanh.f32 %v3375_v18  ;;  %v8945_v18 = vld [vmem:[%s9677_s5 + $0x8c] ss:$16 sps:$4 sm:$0xff]  }
 0x418   :  { %7088 = vtanh.f32 %v3386_v12  ;;  %v8984_v12 = vld [vmem:[%s9677_s5 + $0x68] ss:$16 sps:$4 sm:$0xff]  }
 0x419   :  { %v7081_v49 = vpop.eup %7080  ;;  %9813 = vst [vmem:[#allocation11_spill] sm:$0xff] %v8984_v12 }
 0x41a   :  { %v3088_v25 = vmul.f32 %v7081_v49, %v3083_v39  ;;  %v8952_v39 = vld [vmem:[%s9677_s5 + $0x80] ss:$16 sps:$4 sm:$0xff]   ;;  %v8957_v49 = vld [vmem:[%s9677_s5 + $0x88] ss:$16 sps:$4 sm:$0xff]  }
 0x41c   :  { %6257 = vst [vmem:[%s9680_s8 + $0x18] sm:$0xff] %v3088_v25  ;;  %v3411_v21 = vpack.c.bf16 %v3088_v25, %v3088_v25 }
 0x41e   :  { %3637 = vmatmul.mubr.bf16.vlgmr.msra.gmra.mxu0 %v3411_v21  ;;  %3678 = vmatmul.mubr.bf16.vlgmr.msra.gmra.mxu1 %v3411_v21 }
 0x41f   :  { %3910 = vmatpush1.bf16.msra.mxu0 %v8876_v30  ;;  %3951 = vmatpush1.bf16.msra.mxu1 %v8881_v54 }
 0x420   :  { %3911 = vmatprep.subr.bf16.mxu0 %v8890_v4  ;;  %3952 = vmatprep.subr.bf16.mxu1 %v8895_v8 }
 0x421   :  { %v7083_v52 = vpop.eup %7082  ;;  %3941 = vmatprep.mubr.bf16.mxu0 %v9716_v26  ;;  %3982 = vmatprep.mubr.bf16.mxu1 %v9716_v26 }
 0x422   :  { %v3379_v53 = vmul.f32 0.5, %v7083_v52  ;;  %v8992_v52 = vld [vmem:[%s9677_s5 + $0x44] ss:$16 sps:$4 sm:$0xff]  }
 0x423   :  { %v7085_v56 = vpop.eup %7084  ;;  %3912 = vmatpush1.bf16.msra.mxu0 %v8902_v17  ;;  %3953 = vmatpush1.bf16.msra.mxu1 %v8907_v35  ;;  %9814 = vst [vmem:[#allocation13_spill] sm:$0xff] %v8992_v52 }
 0x424   :  { %v3380_v14 = vadd.f32 0.5, %v3379_v53  ;;  %v3383_v11 = vmul.f32 0.5, %v7085_v56  ;;  %3913 = vmatprep.subr.bf16.mxu0 %v8914_v23  ;;  %3954 = vmatprep.subr.bf16.mxu1 %v8919_v7  ;;  %v7087_v42 = vpop.eup %7086  ;;  %v8997_v53 = vld [vmem:[%s9677_s5 + $0x4c] ss:$16 sps:$4 sm:$0xff]   ;;  %v9004_v56 = vld [vmem:[%s9677_s5 + $0x40] ss:$16 sps:$4 sm:$0xff]  }
 0x425   :  { %9815 = vst [vmem:[#allocation12_spill] sm:$0xff] %v8997_v53  ;;  %9816 = vst [vmem:[#allocation14_spill] sm:$0xff] %v9004_v56 }
 0x426   :  { %v3384_v33 = vadd.f32 0.5, %v3383_v11  ;;  %v3391_v45 = vmul.f32 %v7087_v42, %v3380_v14  ;;  %v9009_v14 = vld [vmem:[%s9677_s5 + $0x48] ss:$16 sps:$4 sm:$0xff]   ;;  %v9016_v11 = vld [vmem:[%s9677_s5 + $0x24] ss:$16 sps:$4 sm:$0xff]  }
 0x427   :  { %3914 = vmatpush1.bf16.msra.mxu0 %v8928_v57  ;;  %3955 = vmatpush1.bf16.msra.mxu1 %v8933_v19  ;;  %9817 = vst [vmem:[#allocation55_spill] sm:$0xff] %v9009_v14  ;;  %9818 = vst [vmem:[#allocation57_spill] sm:$0xff] %v9016_v11  ;;  %v9021_v42 = vld [vmem:[%s9677_s5 + $0x2c] ss:$16 sps:$4 sm:$0xff]  }
 0x428   :  { %v3390_v25 = vmul.f32 %v3384_v33, %v8632_v9  ;;  %3915 = vmatprep.subr.bf16.mxu0 %v8940_v15  ;;  %3956 = vmatprep.subr.bf16.mxu1 %v8945_v18  ;;  %v8979_v9 = vld [vmem:[%s9677_s5 + $0x60] ss:$16 sps:$4 sm:$0xff]   ;;  %9819 = vst [vmem:[#allocation56_spill] sm:$0xff] %v9021_v42  ;;  %v7089_v33 = vpop.eup %7088 }
 0x42a   :  { %v8972_v21 = vadd.f32 %v3391_v45, %v3390_v25  ;;  %v9028_v45 = vld [vmem:[%s9677_s5 + $0x20] ss:$16 sps:$4 sm:$0xff]   ;;  %v9033_v25 = vld [vmem:[%s9677_s5 + $0x28] ss:$16 sps:$4 sm:$0xff]  }
 0x42b   :  { %3916 = vmatpush1.bf16.msra.mxu0 %v8952_v39  ;;  %3957 = vmatpush1.bf16.msra.mxu1 %v8957_v49  ;;  %9820 = vst [vmem:[#allocation58_spill] sm:$0xff] %v9033_v25 }
 0x42c   :  { %7090 = vtanh.f32 %v8972_v21  ;;  %3917 = vmatprep.subr.bf16.mxu0 %v8965_v55  ;;  %3958 = vmatprep.subr.bf16.mxu1 %v8970_v48 }
 0x42f   :  { %3918 = vmatpush1.bf16.msra.mxu0 %v8979_v9  ;;  %3959 = vmatpush1.bf16.msra.mxu1 %v8984_v12 }
 0x430   :  { %3919 = vmatprep.subr.bf16.mxu0 %v8992_v52  ;;  %3960 = vmatprep.subr.bf16.mxu1 %v8997_v53  ;;  %v3388_v53 = vmul.f32 0.5, %v7089_v33  ;;  %v9052_v33 = vld [vmem:[%s9677_s5] ss:$16 sps:$4 sm:$0xff]  }
 0x433   :  { %3920 = vmatpush1.bf16.msra.mxu0 %v9004_v56  ;;  %3961 = vmatpush1.bf16.msra.mxu1 %v9009_v14  ;;  %v9040_v56 = vld [vmem:[%s9677_s5 + $0x4] ss:$16 sps:$4 sm:$0xff]   ;;  %v9045_v14 = vld [vmem:[%s9677_s5 + $0xc] ss:$16 sps:$4 sm:$0xff]  }
 0x434   :  { %3921 = vmatprep.subr.bf16.mxu0 %v9016_v11  ;;  %3962 = vmatprep.subr.bf16.mxu1 %v9021_v42  ;;  %v9057_v42 = vld [vmem:[%s9677_s5 + $0x8] ss:$16 sps:$4 sm:$0xff]   ;;  %v3389_v11 = vadd.f32 0.5, %v3388_v53 }
 0x437   :  { %3922 = vmatpush1.bf16.msra.mxu0 %v9028_v45  ;;  %3963 = vmatpush1.bf16.msra.mxu1 %v9033_v25 }
 0x438   :  { %3923 = vmatprep.subr.bf16.mxu0 %v9040_v56  ;;  %3964 = vmatprep.subr.bf16.mxu1 %v9045_v14 }
 0x439   :  { %v7091_v52 = vpop.eup %7090 }
 0x43a   :  { %v3394_v12 = vmul.f32 %v7091_v52, %v3389_v11  ;;  %v9826_v11 = vld [vmem:[#allocation49_spill] sm:$0xff] }
 0x43b   :  { %3924 = vmatpush1.bf16.msra.mxu0 %v9052_v33  ;;  %3965 = vmatpush1.bf16.msra.mxu1 %v9057_v42 }
 0x43c   :  { %6258 = vst [vmem:[%s9681_s9 + $0x20] sm:$0xff] %v3394_v12  ;;  %v3716_v25 = vpack.c.bf16 %v3394_v12, %v3394_v12  ;;  %4222 = vmatprep.subr.bf16.mxu0 %v8661_v41  ;;  %4263 = vmatprep.subr.bf16.mxu1 %v8666_v40 }
 0x43e   :  { %3942 = vmatmul.mubr.bf16.vlgmr.msra.gmra.mxu0 %v3716_v25  ;;  %3983 = vmatmul.mubr.bf16.vlgmr.msra.gmra.mxu1 %v3716_v25 }
 0x43f   :  { %4223 = vmatpush1.bf16.msra.mxu0 %v8671_v46  ;;  %4264 = vmatpush1.bf16.msra.mxu1 %v8676_v22  ;;  %v9821_v46 = vld [vmem:[#allocation19_spill] sm:$0xff] }
 0x440   :  { %4224 = vmatprep.subr.bf16.mxu0 %v8685_v47  ;;  %4265 = vmatprep.subr.bf16.mxu1 %v8690_v36 }
 0x441   :  { %4254 = vmatprep.mubr.bf16.mxu0 %v9716_v26  ;;  %4295 = vmatprep.mubr.bf16.mxu1 %v9716_v26 }
 0x443   :  { %4225 = vmatpush1.bf16.msra.mxu0 %v8695_v29  ;;  %4266 = vmatpush1.bf16.msra.mxu1 %v8700_v28  ;;  %v9822_v28 = vld [vmem:[#allocation21_spill] sm:$0xff] }
 0x444   :  { %4226 = vmatprep.subr.bf16.mxu0 %v8709_v32  ;;  %4267 = vmatprep.subr.bf16.mxu1 %v8714_v31 }
 0x447   :  { %4227 = vmatpush1.bf16.msra.mxu0 %v8719_v6  ;;  %4268 = vmatpush1.bf16.msra.mxu1 %v8724_v50  ;;  %v9823_v50 = vld [vmem:[#allocation20_spill] sm:$0xff] }
 0x448   :  { %4228 = vmatprep.subr.bf16.mxu0 %v8733_v13  ;;  %4269 = vmatprep.subr.bf16.mxu1 %v8738_v20 }
 0x44b   :  { %4229 = vmatpush1.bf16.msra.mxu0 %v8743_v24  ;;  %4270 = vmatpush1.bf16.msra.mxu1 %v8748_v10 }
 0x44c   :  { %4230 = vmatprep.subr.bf16.mxu0 %v8757_v37  ;;  %4271 = vmatprep.subr.bf16.mxu1 %v8762_v38  ;;  %v9824_v37 = vld [vmem:[#allocation22_spill] sm:$0xff] }
 0x44f   :  { %4231 = vmatpush1.bf16.msra.mxu0 %v8767_v16  ;;  %4272 = vmatpush1.bf16.msra.mxu1 %v8772_v34 }
 0x450   :  { %4232 = vmatprep.subr.bf16.mxu0 %v8781_v43  ;;  %4273 = vmatprep.subr.bf16.mxu1 %v8786_v44 }
 0x453   :  { %4233 = vmatpush1.bf16.msra.mxu0 %v8791_v51  ;;  %4274 = vmatpush1.bf16.msra.mxu1 %v8796_v58 }
 0x454   :  { %4234 = vmatprep.subr.bf16.mxu0 %v8805_v1  ;;  %4275 = vmatprep.subr.bf16.mxu1 %v8810_v59 }
 0x457   :  { %4235 = vmatpush1.bf16.msra.mxu0 %v8815_v60  ;;  %4276 = vmatpush1.bf16.msra.mxu1 %v8820_v27 }
 0x458   :  { %4236 = vmatprep.subr.bf16.mxu0 %v8829_v61  ;;  %4277 = vmatprep.subr.bf16.mxu1 %v8834_v62 }
 0x45b   :  { %4237 = vmatpush1.bf16.msra.mxu0 %v8839_v63  ;;  %4278 = vmatpush1.bf16.msra.mxu1 %v8844_v0  ;;  %v9825_v0 = vld [vmem:[#allocation47_spill] sm:$0xff] }
 0x45c   :  { %4527 = vmatprep.subr.bf16.mxu0 %v8853_v2  ;;  %4568 = vmatprep.subr.bf16.mxu1 %v8858_v3 }
 0x4de   :  { %v3638_v41 = vpop.f32.mrf.mxu0  ;;  %v3679_v40 = vpop.f32.mrf.mxu1 }
 0x4df   :  { %v3686_v22 = vadd.f32 %v3638_v41, %v9821_v46  ;;  %v3688_v13 = vadd.f32 %v3679_v40, %v9823_v50 }
 0x4e0   :  { %v3640_v47 = vpop.f32.mrf.mxu0  ;;  %v3681_v36 = vpop.f32.mrf.mxu1 }
 0x4e1   :  { %v3690_v29 = vmul.f32 0.5, %v3686_v22  ;;  %v3687_v32 = vadd.f32 %v3640_v47, %v9822_v28  ;;  %v3689_v38 = vadd.f32 %v3681_v36, %v9824_v37  ;;  %v9827_v22 = vld [vmem:[#allocation48_spill] sm:$0xff] }
 0x4e2   :  { %v3642_v31 = vpop.f32.mrf.mxu0  ;;  %v3683_v6 = vpop.f32.mrf.mxu1 }
 0x4e3   :  { %7092 = vtanh.f32 %v3690_v29  ;;  %v3694_v20 = vmul.f32 0.5, %v3687_v32  ;;  %v3699_v16 = vmul.f32 0.5, %v3689_v38  ;;  %v9828_v6 = vld [vmem:[#allocation50_spill] sm:$0xff] }
 0x4e4   :  { %v3643_v24 = vpop.f32.mrf.mxu0  ;;  %v3684_v10 = vpop.f32.mrf.mxu1 }
 0x4e5   :  { %7094 = vtanh.f32 %v3694_v20 }
 0x4e6   :  { %7096 = vtanh.f32 %v3688_v13 }
 0x4e7   :  { %7098 = vtanh.f32 %v3699_v16 }
 0x4f0   :  { %v7093_v34 = vpop.eup %7092 }
 0x4f1   :  { %v3692_v43 = vmul.f32 0.5, %v7093_v34 }
 0x4f2   :  { %v7095_v44 = vpop.eup %7094 }
 0x4f3   :  { %v3693_v51 = vadd.f32 0.5, %v3692_v43  ;;  %v3696_v58 = vmul.f32 0.5, %v7095_v44  ;;  %v7097_v1 = vpop.eup %7096  ;;  %v9190_v43 = vld [vmem:[%s9676_s4 + $0xcc] ss:$16 sps:$4 sm:$0xff]   ;;  %v9195_v44 = vld [vmem:[%s9676_s4 + $0xc0] ss:$16 sps:$4 sm:$0xff]  }
 0x4f4   :  { %v7099_v3 = vpop.eup %7098 }
 0x4f5   :  { %v3697_v59 = vadd.f32 0.5, %v3696_v58  ;;  %v3704_v60 = vmul.f32 %v7097_v1, %v3693_v51  ;;  %v3701_v46 = vmul.f32 0.5, %v7099_v3  ;;  %v9200_v51 = vld [vmem:[%s9676_s4 + $0xc8] ss:$16 sps:$4 sm:$0xff]   ;;  %v9209_v58 = vld [vmem:[%s9676_s4 + $0xa4] ss:$16 sps:$4 sm:$0xff]  }
 0x4f6   :  { %v9214_v1 = vld [vmem:[%s9676_s4 + $0xac] ss:$16 sps:$4 sm:$0xff]  }
 0x4f7   :  { %v3703_v27 = vmul.f32 %v3697_v59, %v8867_v5  ;;  %v3702_v28 = vadd.f32 0.5, %v3701_v46  ;;  %v9219_v59 = vld [vmem:[%s9676_s4 + $0xa0] ss:$16 sps:$4 sm:$0xff]   ;;  %v9262_v3 = vld [vmem:[%s9676_s4 + $0x6c] ss:$16 sps:$4 sm:$0xff]  }
 0x4f8   :  { %v9310_v46 = vld [vmem:[%s9676_s4 + $0x2c] ss:$16 sps:$4 sm:$0xff]  }
 0x4f9   :  { %v9107_v61 = vadd.f32 %v3704_v60, %v3703_v27  ;;  %v9224_v60 = vld [vmem:[%s9676_s4 + $0xa8] ss:$16 sps:$4 sm:$0xff]   ;;  %v9233_v27 = vld [vmem:[%s9676_s4 + $0x84] ss:$16 sps:$4 sm:$0xff]  }
 0x4fb   :  { %7100 = vtanh.f32 %v9107_v61 }
 0x4fe   :  { %v3943_v62 = vpop.f32.mrf.mxu0  ;;  %v3984_v63 = vpop.f32.mrf.mxu1 }
 0x4ff   :  { %v3991_v2 = vadd.f32 %v3943_v62, %v9825_v0  ;;  %v3993_v5 = vadd.f32 %v3984_v63, %v9827_v22  ;;  %v9238_v62 = vld [vmem:[%s9676_s4 + $0x8c] ss:$16 sps:$4 sm:$0xff]   ;;  %v9243_v63 = vld [vmem:[%s9676_s4 + $0x80] ss:$16 sps:$4 sm:$0xff]   ;;  %v9248_v0 = vld [vmem:[%s9676_s4 + $0x88] ss:$16 sps:$4 sm:$0xff]  }
 0x500   :  { %v3945_v12 = vpop.f32.mrf.mxu0  ;;  %v3986_v52 = vpop.f32.mrf.mxu1  ;;  %v9315_v22 = vld [vmem:[%s9676_s4 + $0x20] ss:$16 sps:$4 sm:$0xff]  }
 0x501   :  { %v3995_v53 = vmul.f32 0.5, %v3991_v2  ;;  %v3992_v25 = vadd.f32 %v3945_v12, %v9826_v11  ;;  %v3994_v50 = vadd.f32 %v3986_v52, %v9828_v6  ;;  %v9257_v2 = vld [vmem:[%s9676_s4 + $0x64] ss:$16 sps:$4 sm:$0xff]   ;;  %v9267_v12 = vld [vmem:[%s9676_s4 + $0x60] ss:$16 sps:$4 sm:$0xff]  }
 0x502   :  { %v3947_v41 = vpop.f32.mrf.mxu0  ;;  %v3988_v40 = vpop.f32.mrf.mxu1  ;;  %v9272_v52 = vld [vmem:[%s9676_s4 + $0x68] ss:$16 sps:$4 sm:$0xff]   ;;  %v9286_v11 = vld [vmem:[%s9676_s4 + $0x4c] ss:$16 sps:$4 sm:$0xff]  }
 0x503   :  { %7102 = vtanh.f32 %v3995_v53  ;;  %v3999_v47 = vmul.f32 0.5, %v3992_v25  ;;  %v4004_v20 = vmul.f32 0.5, %v3994_v50  ;;  %v9281_v53 = vld [vmem:[%s9676_s4 + $0x44] ss:$16 sps:$4 sm:$0xff]   ;;  %v9291_v25 = vld [vmem:[%s9676_s4 + $0x40] ss:$16 sps:$4 sm:$0xff]  }
 0x504   :  { %v3948_v36 = vpop.f32.mrf.mxu0  ;;  %v3989_v29 = vpop.f32.mrf.mxu1  ;;  %v9296_v41 = vld [vmem:[%s9676_s4 + $0x48] ss:$16 sps:$4 sm:$0xff]   ;;  %v9305_v40 = vld [vmem:[%s9676_s4 + $0x24] ss:$16 sps:$4 sm:$0xff]  }
 0x505   :  { %7104 = vtanh.f32 %v3999_v47  ;;  %v9329_v47 = vld [vmem:[%s9676_s4 + $0x4] ss:$16 sps:$4 sm:$0xff]   ;;  %v9334_v36 = vld [vmem:[%s9676_s4 + $0xc] ss:$16 sps:$4 sm:$0xff]   ;;  %v9339_v29 = vld [vmem:[%s9676_s4] ss:$16 sps:$4 sm:$0xff]  }
 0x506   :  { %7106 = vtanh.f32 %v3993_v5  ;;  %v9320_v5 = vld [vmem:[%s9676_s4 + $0x28] ss:$16 sps:$4 sm:$0xff]  }
 0x507   :  { %7108 = vtanh.f32 %v4004_v20 }
 0x508   :  { %v7101_v32 = vpop.eup %7100 }
 0x509   :  { %v3707_v31 = vmul.f32 %v7101_v32, %v3702_v28  ;;  %v9344_v28 = vld [vmem:[%s9676_s4 + $0x8] ss:$16 sps:$4 sm:$0xff]   ;;  %v9353_v32 = vld [vmem:[%s9677_s5 + $0xe4] ss:$16 sps:$4 sm:$0xff]  }
 0x50b   :  { %6323 = vst [vmem:[%s9680_s8 + $0x20] sm:$0xff] %v3707_v31  ;;  %v4029_v13 = vpack.c.bf16 %v3707_v31, %v3707_v31  ;;  %v9358_v31 = vld [vmem:[%s9677_s5 + $0xec] ss:$16 sps:$4 sm:$0xff]  }
 0x50d   :  { %4255 = vmatmul.mubr.bf16.vlgmr.msra.gmra.mxu0 %v4029_v13  ;;  %4296 = vmatmul.mubr.bf16.vlgmr.msra.gmra.mxu1 %v4029_v13  ;;  %v9837_v13 = vld [vmem:[#allocation23_spill] sm:$0xff] }
 0x50e   :  { %4528 = vmatpush1.bf16.msra.mxu0 %v8876_v30  ;;  %4569 = vmatpush1.bf16.msra.mxu1 %v8881_v54 }
 0x50f   :  { %4529 = vmatprep.subr.bf16.mxu0 %v8890_v4  ;;  %4570 = vmatprep.subr.bf16.mxu1 %v8895_v8 }
 0x510   :  { %v7103_v24 = vpop.eup %7102  ;;  %4559 = vmatprep.mubr.bf16.mxu0 %v9716_v26  ;;  %4600 = vmatprep.mubr.bf16.mxu1 %v9716_v26 }
 0x511   :  { %v3997_v10 = vmul.f32 0.5, %v7103_v24 }
 0x512   :  { %v7105_v37 = vpop.eup %7104  ;;  %4530 = vmatpush1.bf16.msra.mxu0 %v8902_v17  ;;  %4571 = vmatpush1.bf16.msra.mxu1 %v8907_v35  ;;  %v9829_v35 = vld [vmem:[#allocation11_spill] sm:$0xff] }
 0x513   :  { %v3998_v38 = vadd.f32 0.5, %v3997_v10  ;;  %v4001_v30 = vmul.f32 0.5, %v7105_v37  ;;  %4531 = vmatprep.subr.bf16.mxu0 %v8914_v23  ;;  %4572 = vmatprep.subr.bf16.mxu1 %v8919_v7  ;;  %v7107_v54 = vpop.eup %7106  ;;  %v9830_v23 = vld [vmem:[#allocation13_spill] sm:$0xff]  ;;  %v9831_v7 = vld [vmem:[#allocation12_spill] sm:$0xff] }
 0x515   :  { %v4002_v4 = vadd.f32 0.5, %v4001_v30  ;;  %v4009_v8 = vmul.f32 %v7107_v54, %v3998_v38  ;;  %v9838_v38 = vld [vmem:[#allocation25_spill] sm:$0xff] }
 0x516   :  { %4532 = vmatpush1.bf16.msra.mxu0 %v8928_v57  ;;  %4573 = vmatpush1.bf16.msra.mxu1 %v8933_v19  ;;  %v7109_v57 = vpop.eup %7108  ;;  %v9832_v19 = vld [vmem:[#allocation14_spill] sm:$0xff] }
 0x517   :  { %v4008_v16 = vmul.f32 %v4002_v4, %v8972_v21  ;;  %4533 = vmatprep.subr.bf16.mxu0 %v8940_v15  ;;  %4574 = vmatprep.subr.bf16.mxu1 %v8945_v18  ;;  %v9833_v15 = vld [vmem:[#allocation55_spill] sm:$0xff]  ;;  %v4006_v18 = vmul.f32 0.5, %v7109_v57  ;;  %v9840_v57 = vld [vmem:[#allocation26_spill] sm:$0xff] }
 0x519   :  { %v9132_v17 = vadd.f32 %v4009_v8, %v4008_v16  ;;  %v9839_v8 = vld [vmem:[#allocation24_spill] sm:$0xff] }
 0x51a   :  { %4534 = vmatpush1.bf16.msra.mxu0 %v8952_v39  ;;  %4575 = vmatpush1.bf16.msra.mxu1 %v8957_v49  ;;  %v9834_v39 = vld [vmem:[#allocation57_spill] sm:$0xff]  ;;  %v9835_v49 = vld [vmem:[#allocation56_spill] sm:$0xff] }
 0x51b   :  { %7110 = vtanh.f32 %v9132_v17  ;;  %4535 = vmatprep.subr.bf16.mxu0 %v8965_v55  ;;  %4576 = vmatprep.subr.bf16.mxu1 %v8970_v48  ;;  %v9836_v55 = vld [vmem:[#allocation58_spill] sm:$0xff]  ;;  %v4007_v48 = vadd.f32 0.5, %v4006_v18 }
 0x51e   :  { %4536 = vmatpush1.bf16.msra.mxu0 %v8979_v9  ;;  %4577 = vmatpush1.bf16.msra.mxu1 %v9829_v35 }
 0x51f   :  { %4537 = vmatprep.subr.bf16.mxu0 %v9830_v23  ;;  %4578 = vmatprep.subr.bf16.mxu1 %v9831_v7 }
 0x522   :  { %4538 = vmatpush1.bf16.msra.mxu0 %v9832_v19  ;;  %4579 = vmatpush1.bf16.msra.mxu1 %v9833_v15 }
 0x523   :  { %4539 = vmatprep.subr.bf16.mxu0 %v9834_v39  ;;  %4580 = vmatprep.subr.bf16.mxu1 %v9835_v49 }
 0x526   :  { %4540 = vmatpush1.bf16.msra.mxu0 %v9028_v45  ;;  %4581 = vmatpush1.bf16.msra.mxu1 %v9836_v55  ;;  %v9176_v45 = vld [vmem:[%s9676_s4 + $0xe8] ss:$16 sps:$4 sm:$0xff]  }
 0x527   :  { %4541 = vmatprep.subr.bf16.mxu0 %v9040_v56  ;;  %4582 = vmatprep.subr.bf16.mxu1 %v9045_v14  ;;  %v9161_v56 = vld [vmem:[%s9676_s4 + $0xe4] ss:$16 sps:$4 sm:$0xff]   ;;  %v9166_v14 = vld [vmem:[%s9676_s4 + $0xec] ss:$16 sps:$4 sm:$0xff]  }
 0x528   :  { %v7111_v21 = vpop.eup %7110 }
 0x529   :  { %v4012_v9 = vmul.f32 %v7111_v21, %v4007_v48 }
 0x52a   :  { %4542 = vmatpush1.bf16.msra.mxu0 %v9052_v33  ;;  %4583 = vmatpush1.bf16.msra.mxu1 %v9057_v42  ;;  %v9171_v42 = vld [vmem:[%s9676_s4 + $0xe0] ss:$16 sps:$4 sm:$0xff]   ;;  %v9185_v33 = vld [vmem:[%s9676_s4 + $0xc4] ss:$16 sps:$4 sm:$0xff]  }
 0x52b   :  { %6324 = vst [vmem:[%s9681_s9 + $0x18] sm:$0xff] %v4012_v9  ;;  %v4334_v34 = vpack.c.bf16 %v4012_v9, %v4012_v9  ;;  %4840 = vmatprep.subr.bf16.mxu0 %v9161_v56  ;;  %4881 = vmatprep.subr.bf16.mxu1 %v9166_v14 }
 0x52d   :  { %4560 = vmatmul.mubr.bf16.vlgmr.msra.gmra.mxu0 %v4334_v34  ;;  %4601 = vmatmul.mubr.bf16.vlgmr.msra.gmra.mxu1 %v4334_v34 }
 0x52e   :  { %4872 = vmatprep.mubr.bf16.mxu0 %v9716_v26  ;;  %4913 = vmatprep.mubr.bf16.mxu1 %v9716_v26 }
 0x52f   :  { %4841 = vmatpush1.bf16.msra.mxu0 %v9171_v42  ;;  %4882 = vmatpush1.bf16.msra.mxu1 %v9176_v45 }
 0x530   :  { %4842 = vmatprep.subr.bf16.mxu0 %v9185_v33  ;;  %4883 = vmatprep.subr.bf16.mxu1 %v9190_v43 }
 0x533   :  { %4843 = vmatpush1.bf16.msra.mxu0 %v9195_v44  ;;  %4884 = vmatpush1.bf16.msra.mxu1 %v9200_v51 }
 0x534   :  { %4844 = vmatprep.subr.bf16.mxu0 %v9209_v58  ;;  %4885 = vmatprep.subr.bf16.mxu1 %v9214_v1 }
 0x537   :  { %4845 = vmatpush1.bf16.msra.mxu0 %v9219_v59  ;;  %4886 = vmatpush1.bf16.msra.mxu1 %v9224_v60 }
 0x538   :  { %4846 = vmatprep.subr.bf16.mxu0 %v9233_v27  ;;  %4887 = vmatprep.subr.bf16.mxu1 %v9238_v62 }
 0x53b   :  { %4847 = vmatpush1.bf16.msra.mxu0 %v9243_v63  ;;  %4888 = vmatpush1.bf16.msra.mxu1 %v9248_v0 }
 0x53c   :  { %4848 = vmatprep.subr.bf16.mxu0 %v9257_v2  ;;  %4889 = vmatprep.subr.bf16.mxu1 %v9262_v3 }
 0x53f   :  { %4849 = vmatpush1.bf16.msra.mxu0 %v9267_v12  ;;  %4890 = vmatpush1.bf16.msra.mxu1 %v9272_v52 }
 0x540   :  { %4850 = vmatprep.subr.bf16.mxu0 %v9281_v53  ;;  %4891 = vmatprep.subr.bf16.mxu1 %v9286_v11 }
 0x543   :  { %4851 = vmatpush1.bf16.msra.mxu0 %v9291_v25  ;;  %4892 = vmatpush1.bf16.msra.mxu1 %v9296_v41 }
 0x544   :  { %4852 = vmatprep.subr.bf16.mxu0 %v9305_v40  ;;  %4893 = vmatprep.subr.bf16.mxu1 %v9310_v46 }
 0x547   :  { %4853 = vmatpush1.bf16.msra.mxu0 %v9315_v22  ;;  %4894 = vmatpush1.bf16.msra.mxu1 %v9320_v5 }
 0x548   :  { %4854 = vmatprep.subr.bf16.mxu0 %v9329_v47  ;;  %4895 = vmatprep.subr.bf16.mxu1 %v9334_v36 }
 0x54b   :  { %4855 = vmatpush1.bf16.msra.mxu0 %v9339_v29  ;;  %4896 = vmatpush1.bf16.msra.mxu1 %v9344_v28 }
 0x54c   :  { %5145 = vmatprep.subr.bf16.mxu0 %v9353_v32  ;;  %5186 = vmatprep.subr.bf16.mxu1 %v9358_v31 }
 0x5cd   :  { %v4256_v6 = vpop.f32.mrf.mxu0  ;;  %v4297_v50 = vpop.f32.mrf.mxu1 }
 0x5ce   :  { %v4304_v20 = vadd.f32 %v4256_v6, %v9837_v13  ;;  %v4306_v16 = vadd.f32 %v4297_v50, %v9839_v8 }
 0x5cf   :  { %v4258_v24 = vpop.f32.mrf.mxu0  ;;  %v4299_v10 = vpop.f32.mrf.mxu1 }
 0x5d0   :  { %v4308_v37 = vmul.f32 0.5, %v4304_v20  ;;  %v4305_v30 = vadd.f32 %v4258_v24, %v9838_v38  ;;  %v4307_v19 = vadd.f32 %v4299_v10, %v9840_v57  ;;  %v9841_v24 = vld [vmem:[#allocation43_spill] sm:$0xff] }
 0x5d1   :  { %v4260_v54 = vpop.f32.mrf.mxu0  ;;  %v4301_v4 = vpop.f32.mrf.mxu1 }
 0x5d2   :  { %7112 = vtanh.f32 %v4308_v37  ;;  %v4312_v35 = vmul.f32 0.5, %v4305_v30  ;;  %v4317_v15 = vmul.f32 0.5, %v4307_v19  ;;  %v9842_v4 = vld [vmem:[#allocation45_spill] sm:$0xff] }
 0x5d3   :  { %v4261_v23 = vpop.f32.mrf.mxu0  ;;  %v4302_v7 = vpop.f32.mrf.mxu1 }
 0x5d4   :  { %7114 = vtanh.f32 %v4312_v35  ;;  %v9843_v7 = vld [vmem:[#allocation44_spill] sm:$0xff] }
 0x5d5   :  { %7116 = vtanh.f32 %v4306_v16 }
 0x5d6   :  { %7118 = vtanh.f32 %v4317_v15 }
 0x5df   :  { %v7113_v18 = vpop.eup %7112 }
 0x5e0   :  { %v4310_v39 = vmul.f32 0.5, %v7113_v18 }
 0x5e1   :  { %v7115_v49 = vpop.eup %7114 }
 0x5e2   :  { %v4311_v55 = vadd.f32 0.5, %v4310_v39  ;;  %v4314_v48 = vmul.f32 0.5, %v7115_v49  ;;  %v7117_v21 = vpop.eup %7116 }
 0x5e3   :  { %v7119_v37 = vpop.eup %7118 }
 0x5e4   :  { %v4315_v9 = vadd.f32 0.5, %v4314_v48  ;;  %v4322_v34 = vmul.f32 %v7117_v21, %v4311_v55  ;;  %v4319_v23 = vmul.f32 0.5, %v7119_v37  ;;  %v9376_v55 = vld [vmem:[%s9677_s5 + $0xe0] ss:$16 sps:$4 sm:$0xff]   ;;  %v9381_v48 = vld [vmem:[%s9677_s5 + $0xe8] ss:$16 sps:$4 sm:$0xff]  }
 0x5e5   :  { %v9844_v21 = vld [vmem:[#allocation46_spill] sm:$0xff] }
 0x5e6   :  { %v4321_v6 = vmul.f32 %v4315_v9, %v9107_v61  ;;  %v4320_v18 = vadd.f32 0.5, %v4319_v23  ;;  %v9414_v37 = vld [vmem:[%s9677_s5 + $0xa4] ss:$16 sps:$4 sm:$0xff]  }
 0x5e8   :  { %v9367_v50 = vadd.f32 %v4322_v34, %v4321_v6  ;;  %v9390_v6 = vld [vmem:[%s9677_s5 + $0xc4] ss:$16 sps:$4 sm:$0xff]  }
 0x5ea   :  { %7120 = vtanh.f32 %v9367_v50 }
 0x5ed   :  { %v4561_v13 = vpop.f32.mrf.mxu0  ;;  %v4602_v20 = vpop.f32.mrf.mxu1 }
 0x5ee   :  { %v4609_v10 = vadd.f32 %v4561_v13, %v9841_v24  ;;  %v4611_v61 = vadd.f32 %v4602_v20, %v9843_v7  ;;  %v9395_v13 = vld [vmem:[%s9677_s5 + $0xcc] ss:$16 sps:$4 sm:$0xff]   ;;  %v9402_v20 = vld [vmem:[%s9677_s5 + $0xc0] ss:$16 sps:$4 sm:$0xff]   ;;  %v9407_v24 = vld [vmem:[%s9677_s5 + $0xc8] ss:$16 sps:$4 sm:$0xff]  }
 0x5ef   :  { %v4563_v38 = vpop.f32.mrf.mxu0  ;;  %v4604_v30 = vpop.f32.mrf.mxu1  ;;  %v9440_v7 = vld [vmem:[%s9677_s5 + $0x84] ss:$16 sps:$4 sm:$0xff]  }
 0x5f0   :  { %v4613_v54 = vmul.f32 0.5, %v4609_v10  ;;  %v4610_v8 = vadd.f32 %v4563_v38, %v9842_v4  ;;  %v4612_v9 = vadd.f32 %v4604_v30, %v9844_v21  ;;  %v9419_v38 = vld [vmem:[%s9677_s5 + $0xac] ss:$16 sps:$4 sm:$0xff]   ;;  %v9465_v21 = vld [vmem:[%s9677_s5 + $0x64] ss:$16 sps:$4 sm:$0xff]  }
 0x5f1   :  { %v4565_v16 = vpop.f32.mrf.mxu0  ;;  %v4606_v35 = vpop.f32.mrf.mxu1 }
 0x5f2   :  { %7122 = vtanh.f32 %v4613_v54  ;;  %v4617_v57 = vmul.f32 0.5, %v4610_v8  ;;  %v4622_v10 = vmul.f32 0.5, %v4612_v9  ;;  %v9428_v8 = vld [vmem:[%s9677_s5 + $0xa0] ss:$16 sps:$4 sm:$0xff]   ;;  %v9433_v16 = vld [vmem:[%s9677_s5 + $0xa8] ss:$16 sps:$4 sm:$0xff]  }
 0x5f3   :  { %v4566_v19 = vpop.f32.mrf.mxu0  ;;  %v4607_v15 = vpop.f32.mrf.mxu1  ;;  %v9470_v9 = vld [vmem:[%s9677_s5 + $0x6c] ss:$16 sps:$4 sm:$0xff]  }
 0x5f4   :  { %7124 = vtanh.f32 %v4617_v57 }
 0x5f5   :  { %7126 = vtanh.f32 %v4611_v61  ;;  %v9445_v61 = vld [vmem:[%s9677_s5 + $0x8c] ss:$16 sps:$4 sm:$0xff]  }
 0x5f6   :  { %7128 = vtanh.f32 %v4622_v10  ;;  %v9484_v10 = vld [vmem:[%s9677_s5 + $0x68] ss:$16 sps:$4 sm:$0xff]  }
 0x5f7   :  { %v7121_v39 = vpop.eup %7120  ;;  %9845 = vst [vmem:[#allocation8_spill] sm:$0xff] %v9484_v10 }
 0x5f8   :  { %v4325_v49 = vmul.f32 %v7121_v39, %v4320_v18  ;;  %v9452_v18 = vld [vmem:[%s9677_s5 + $0x80] ss:$16 sps:$4 sm:$0xff]   ;;  %v9457_v39 = vld [vmem:[%s9677_s5 + $0x88] ss:$16 sps:$4 sm:$0xff]  }
 0x5fa   :  { %6389 = vst [vmem:[%s9680_s8 + $0x28] sm:$0xff] %v4325_v49  ;;  %v4647_v34 = vpack.c.bf16 %v4325_v49, %v4325_v49 }
 0x5fc   :  { %4873 = vmatmul.mubr.bf16.vlgmr.msra.gmra.mxu0 %v4647_v34  ;;  %4914 = vmatmul.mubr.bf16.vlgmr.msra.gmra.mxu1 %v4647_v34 }
 0x5fd   :  { %5146 = vmatpush1.bf16.msra.mxu0 %v9376_v55  ;;  %5187 = vmatpush1.bf16.msra.mxu1 %v9381_v48 }
 0x5fe   :  { %5147 = vmatprep.subr.bf16.mxu0 %v9390_v6  ;;  %5188 = vmatprep.subr.bf16.mxu1 %v9395_v13 }
 0x5ff   :  { %v7123_v30 = vpop.eup %7122  ;;  %5177 = vmatprep.mubr.bf16.mxu0 %v9716_v26  ;;  %5218 = vmatprep.mubr.bf16.mxu1 %v9716_v26 }
 0x600   :  { %v4615_v54 = vmul.f32 0.5, %v7123_v30  ;;  %v9492_v30 = vld [vmem:[%s9677_s5 + $0x44] ss:$16 sps:$4 sm:$0xff]  }
 0x601   :  { %v7125_v4 = vpop.eup %7124  ;;  %5148 = vmatpush1.bf16.msra.mxu0 %v9402_v20  ;;  %5189 = vmatpush1.bf16.msra.mxu1 %v9407_v24  ;;  %9846 = vst [vmem:[#allocation9_spill] sm:$0xff] %v9492_v30 }
 0x602   :  { %v4616_v35 = vadd.f32 0.5, %v4615_v54  ;;  %v4619_v23 = vmul.f32 0.5, %v7125_v4  ;;  %5149 = vmatprep.subr.bf16.mxu0 %v9414_v37  ;;  %5190 = vmatprep.subr.bf16.mxu1 %v9419_v38  ;;  %v7127_v57 = vpop.eup %7126  ;;  %v9497_v54 = vld [vmem:[%s9677_s5 + $0x4c] ss:$16 sps:$4 sm:$0xff]   ;;  %v9504_v4 = vld [vmem:[%s9677_s5 + $0x40] ss:$16 sps:$4 sm:$0xff]  }
 0x603   :  { %9847 = vst [vmem:[#allocation10_spill] sm:$0xff] %v9497_v54  ;;  %9848 = vst [vmem:[#allocation59_spill] sm:$0xff] %v9504_v4 }
 0x604   :  { %v4620_v19 = vadd.f32 0.5, %v4619_v23  ;;  %v4627_v15 = vmul.f32 %v7127_v57, %v4616_v35  ;;  %v9509_v35 = vld [vmem:[%s9677_s5 + $0x48] ss:$16 sps:$4 sm:$0xff]   ;;  %v9516_v23 = vld [vmem:[%s9677_s5 + $0x24] ss:$16 sps:$4 sm:$0xff]  }
 0x605   :  { %5150 = vmatpush1.bf16.msra.mxu0 %v9428_v8  ;;  %5191 = vmatpush1.bf16.msra.mxu1 %v9433_v16  ;;  %9849 = vst [vmem:[#allocation61_spill] sm:$0xff] %v9509_v35  ;;  %9850 = vst [vmem:[#allocation60_spill] sm:$0xff] %v9516_v23  ;;  %v9521_v57 = vld [vmem:[%s9677_s5 + $0x2c] ss:$16 sps:$4 sm:$0xff]  }
 0x606   :  { %v4626_v49 = vmul.f32 %v4620_v19, %v9132_v17  ;;  %5151 = vmatprep.subr.bf16.mxu0 %v9440_v7  ;;  %5192 = vmatprep.subr.bf16.mxu1 %v9445_v61  ;;  %v9479_v17 = vld [vmem:[%s9677_s5 + $0x60] ss:$16 sps:$4 sm:$0xff]   ;;  %9851 = vst [vmem:[#allocation62_spill] sm:$0xff] %v9521_v57  ;;  %v7129_v19 = vpop.eup %7128 }
 0x608   :  { %v9472_v34 = vadd.f32 %v4627_v15, %v4626_v49  ;;  %v9528_v15 = vld [vmem:[%s9677_s5 + $0x20] ss:$16 sps:$4 sm:$0xff]   ;;  %v9533_v49 = vld [vmem:[%s9677_s5 + $0x28] ss:$16 sps:$4 sm:$0xff]  }
 0x609   :  { %5152 = vmatpush1.bf16.msra.mxu0 %v9452_v18  ;;  %5193 = vmatpush1.bf16.msra.mxu1 %v9457_v39  ;;  %9852 = vst [vmem:[#allocation63_spill] sm:$0xff] %v9533_v49 }
 0x60a   :  { %7130 = vtanh.f32 %v9472_v34  ;;  %5153 = vmatprep.subr.bf16.mxu0 %v9465_v21  ;;  %5194 = vmatprep.subr.bf16.mxu1 %v9470_v9 }
 0x60d   :  { %5154 = vmatpush1.bf16.msra.mxu0 %v9479_v17  ;;  %5195 = vmatpush1.bf16.msra.mxu1 %v9484_v10 }
 0x60e   :  { %5155 = vmatprep.subr.bf16.mxu0 %v9492_v30  ;;  %5196 = vmatprep.subr.bf16.mxu1 %v9497_v54  ;;  %v4624_v54 = vmul.f32 0.5, %v7129_v19  ;;  %v9552_v19 = vld [vmem:[%s9677_s5] ss:$16 sps:$4 sm:$0xff]  }
 0x611   :  { %5156 = vmatpush1.bf16.msra.mxu0 %v9504_v4  ;;  %5197 = vmatpush1.bf16.msra.mxu1 %v9509_v35  ;;  %v9540_v4 = vld [vmem:[%s9677_s5 + $0x4] ss:$16 sps:$4 sm:$0xff]   ;;  %v9545_v35 = vld [vmem:[%s9677_s5 + $0xc] ss:$16 sps:$4 sm:$0xff]  }
 0x612   :  { %5157 = vmatprep.subr.bf16.mxu0 %v9516_v23  ;;  %5198 = vmatprep.subr.bf16.mxu1 %v9521_v57  ;;  %v9557_v57 = vld [vmem:[%s9677_s5 + $0x8] ss:$16 sps:$4 sm:$0xff]   ;;  %v4625_v23 = vadd.f32 0.5, %v4624_v54 }
 0x615   :  { %5158 = vmatpush1.bf16.msra.mxu0 %v9528_v15  ;;  %5199 = vmatpush1.bf16.msra.mxu1 %v9533_v49 }
 0x616   :  { %5159 = vmatprep.subr.bf16.mxu0 %v9540_v4  ;;  %5200 = vmatprep.subr.bf16.mxu1 %v9545_v35 }
 0x617   :  { %v7131_v30 = vpop.eup %7130 }
 0x618   :  { %v4630_v10 = vmul.f32 %v7131_v30, %v4625_v23  ;;  %v9858_v23 = vld [vmem:[#allocation41_spill] sm:$0xff] }
 0x619   :  { %5160 = vmatpush1.bf16.msra.mxu0 %v9552_v19  ;;  %5201 = vmatpush1.bf16.msra.mxu1 %v9557_v57 }
 0x61a   :  { %6390 = vst [vmem:[%s9681_s9 + $0x10] sm:$0xff] %v4630_v10  ;;  %v4952_v49 = vpack.c.bf16 %v4630_v10, %v4630_v10  ;;  %5458 = vmatprep.subr.bf16.mxu0 %v9161_v56  ;;  %5499 = vmatprep.subr.bf16.mxu1 %v9166_v14 }
 0x61c   :  { %5178 = vmatmul.mubr.bf16.vlgmr.msra.gmra.mxu0 %v4952_v49  ;;  %5219 = vmatmul.mubr.bf16.vlgmr.msra.gmra.mxu1 %v4952_v49 }
 0x61d   :  { %5459 = vmatpush1.bf16.msra.mxu0 %v9171_v42  ;;  %5500 = vmatpush1.bf16.msra.mxu1 %v9176_v45  ;;  %v9853_v42 = vld [vmem:[#allocation27_spill] sm:$0xff] }
 0x61e   :  { %5460 = vmatprep.subr.bf16.mxu0 %v9185_v33  ;;  %5501 = vmatprep.subr.bf16.mxu1 %v9190_v43 }
 0x61f   :  { %5490 = vmatprep.mubr.bf16.mxu0 %v9716_v26  ;;  %5531 = vmatprep.mubr.bf16.mxu1 %v9716_v26 }
 0x621   :  { %5461 = vmatpush1.bf16.msra.mxu0 %v9195_v44  ;;  %5502 = vmatpush1.bf16.msra.mxu1 %v9200_v51  ;;  %v9854_v51 = vld [vmem:[#allocation29_spill] sm:$0xff] }
 0x622   :  { %5462 = vmatprep.subr.bf16.mxu0 %v9209_v58  ;;  %5503 = vmatprep.subr.bf16.mxu1 %v9214_v1 }
 0x625   :  { %5463 = vmatpush1.bf16.msra.mxu0 %v9219_v59  ;;  %5504 = vmatpush1.bf16.msra.mxu1 %v9224_v60  ;;  %v9855_v60 = vld [vmem:[#allocation28_spill] sm:$0xff] }
 0x626   :  { %5464 = vmatprep.subr.bf16.mxu0 %v9233_v27  ;;  %5505 = vmatprep.subr.bf16.mxu1 %v9238_v62 }
 0x629   :  { %5465 = vmatpush1.bf16.msra.mxu0 %v9243_v63  ;;  %5506 = vmatpush1.bf16.msra.mxu1 %v9248_v0 }
 0x62a   :  { %5466 = vmatprep.subr.bf16.mxu0 %v9257_v2  ;;  %5507 = vmatprep.subr.bf16.mxu1 %v9262_v3  ;;  %v9856_v2 = vld [vmem:[#allocation30_spill] sm:$0xff] }
 0x62d   :  { %5467 = vmatpush1.bf16.msra.mxu0 %v9267_v12  ;;  %5508 = vmatpush1.bf16.msra.mxu1 %v9272_v52 }
 0x62e   :  { %5468 = vmatprep.subr.bf16.mxu0 %v9281_v53  ;;  %5509 = vmatprep.subr.bf16.mxu1 %v9286_v11 }
 0x631   :  { %5469 = vmatpush1.bf16.msra.mxu0 %v9291_v25  ;;  %5510 = vmatpush1.bf16.msra.mxu1 %v9296_v41 }
 0x632   :  { %5470 = vmatprep.subr.bf16.mxu0 %v9305_v40  ;;  %5511 = vmatprep.subr.bf16.mxu1 %v9310_v46 }
 0x635   :  { %5471 = vmatpush1.bf16.msra.mxu0 %v9315_v22  ;;  %5512 = vmatpush1.bf16.msra.mxu1 %v9320_v5 }
 0x636   :  { %5472 = vmatprep.subr.bf16.mxu0 %v9329_v47  ;;  %5513 = vmatprep.subr.bf16.mxu1 %v9334_v36 }
 0x639   :  { %5473 = vmatpush1.bf16.msra.mxu0 %v9339_v29  ;;  %5514 = vmatpush1.bf16.msra.mxu1 %v9344_v28  ;;  %v9857_v28 = vld [vmem:[#allocation39_spill] sm:$0xff] }
 0x63a   :  { %5763 = vmatprep.subr.bf16.mxu0 %v9353_v32  ;;  %5804 = vmatprep.subr.bf16.mxu1 %v9358_v31 }
 0x6bc   :  { %v4874_v56 = vpop.f32.mrf.mxu0  ;;  %v4915_v14 = vpop.f32.mrf.mxu1 }
 0x6bd   :  { %v4922_v45 = vadd.f32 %v4874_v56, %v9853_v42  ;;  %v4924_v27 = vadd.f32 %v4915_v14, %v9855_v60 }
 0x6be   :  { %v4876_v33 = vpop.f32.mrf.mxu0  ;;  %v4917_v43 = vpop.f32.mrf.mxu1 }
 0x6bf   :  { %v4926_v44 = vmul.f32 0.5, %v4922_v45  ;;  %v4923_v58 = vadd.f32 %v4876_v33, %v9854_v51  ;;  %v4925_v3 = vadd.f32 %v4917_v43, %v9856_v2  ;;  %v9859_v45 = vld [vmem:[#allocation40_spill] sm:$0xff] }
 0x6c0   :  { %v4878_v1 = vpop.f32.mrf.mxu0  ;;  %v4919_v59 = vpop.f32.mrf.mxu1 }
 0x6c1   :  { %7132 = vtanh.f32 %v4926_v44  ;;  %v4930_v62 = vmul.f32 0.5, %v4923_v58  ;;  %v4935_v12 = vmul.f32 0.5, %v4925_v3  ;;  %v9860_v59 = vld [vmem:[#allocation42_spill] sm:$0xff] }
 0x6c2   :  { %v4879_v63 = vpop.f32.mrf.mxu0  ;;  %v4920_v0 = vpop.f32.mrf.mxu1 }
 0x6c3   :  { %7134 = vtanh.f32 %v4930_v62 }
 0x6c4   :  { %7136 = vtanh.f32 %v4924_v27 }
 0x6c5   :  { %7138 = vtanh.f32 %v4935_v12 }
 0x6ce   :  { %v7133_v52 = vpop.eup %7132 }
 0x6cf   :  { %v4928_v53 = vmul.f32 0.5, %v7133_v52 }
 0x6d0   :  { %v7135_v11 = vpop.eup %7134 }
 0x6d1   :  { %v4929_v25 = vadd.f32 0.5, %v4928_v53  ;;  %v4932_v41 = vmul.f32 0.5, %v7135_v11  ;;  %v7137_v40 = vpop.eup %7136  ;;  %v9869_v53 = vld [vmem:[#allocation31_spill] sm:$0xff] }
 0x6d2   :  { %v7139_v31 = vpop.eup %7138 }
 0x6d3   :  { %v4933_v46 = vadd.f32 0.5, %v4932_v41  ;;  %v4940_v22 = vmul.f32 %v7137_v40, %v4929_v25  ;;  %v4937_v42 = vmul.f32 0.5, %v7139_v31  ;;  %v9870_v41 = vld [vmem:[#allocation33_spill] sm:$0xff] }
 0x6d5   :  { %v4939_v5 = vmul.f32 %v4933_v46, %v9367_v50  ;;  %v4938_v51 = vadd.f32 0.5, %v4937_v42 }
 0x6d7   :  { %v9607_v47 = vadd.f32 %v4940_v22, %v4939_v5 }
 0x6d9   :  { %7140 = vtanh.f32 %v9607_v47 }
 0x6dc   :  { %v5179_v36 = vpop.f32.mrf.mxu0  ;;  %v5220_v29 = vpop.f32.mrf.mxu1 }
 0x6dd   :  { %v5227_v32 = vadd.f32 %v5179_v36, %v9857_v28  ;;  %v5229_v50 = vadd.f32 %v5220_v29, %v9859_v45  ;;  %v9872_v28 = vld [vmem:[#allocation34_spill] sm:$0xff] }
 0x6de   :  { %v5181_v10 = vpop.f32.mrf.mxu0  ;;  %v5222_v30 = vpop.f32.mrf.mxu1 }
 0x6df   :  { %v5231_v54 = vmul.f32 0.5, %v5227_v32  ;;  %v5228_v49 = vadd.f32 %v5181_v10, %v9858_v23  ;;  %v5230_v60 = vadd.f32 %v5222_v30, %v9860_v59 }
 0x6e0   :  { %v5183_v56 = vpop.f32.mrf.mxu0  ;;  %v5224_v14 = vpop.f32.mrf.mxu1 }
 0x6e1   :  { %7142 = vtanh.f32 %v5231_v54  ;;  %v5235_v33 = vmul.f32 0.5, %v5228_v49  ;;  %v5240_v62 = vmul.f32 0.5, %v5230_v60 }
 0x6e2   :  { %v5184_v43 = vpop.f32.mrf.mxu0  ;;  %v5225_v44 = vpop.f32.mrf.mxu1 }
 0x6e3   :  { %7144 = vtanh.f32 %v5235_v33  ;;  %v9873_v44 = vld [vmem:[#allocation35_spill] sm:$0xff] }
 0x6e4   :  { %7146 = vtanh.f32 %v5229_v50 }
 0x6e5   :  { %7148 = vtanh.f32 %v5240_v62 }
 0x6e6   :  { %v7141_v58 = vpop.eup %7140 }
 0x6e7   :  { %v4943_v1 = vmul.f32 %v7141_v58, %v4938_v51 }
 0x6e9   :  { %6455 = vst [vmem:[%s9680_s8 + $0x30] sm:$0xff] %v4943_v1  ;;  %v5265_v27 = vpack.c.bf16 %v4943_v1, %v4943_v1 }
 0x6eb   :  { %5491 = vmatmul.mubr.bf16.vlgmr.msra.gmra.mxu0 %v5265_v27  ;;  %5532 = vmatmul.mubr.bf16.vlgmr.msra.gmra.mxu1 %v5265_v27  ;;  %v9874_v27 = vld [vmem:[#allocation37_spill] sm:$0xff] }
 0x6ec   :  { %5764 = vmatpush1.bf16.msra.mxu0 %v9376_v55  ;;  %5805 = vmatpush1.bf16.msra.mxu1 %v9381_v48 }
 0x6ed   :  { %5765 = vmatprep.subr.bf16.mxu0 %v9390_v6  ;;  %5806 = vmatprep.subr.bf16.mxu1 %v9395_v13 }
 0x6ee   :  { %v7143_v63 = vpop.eup %7142  ;;  %5795 = vmatprep.mubr.bf16.mxu0 %v9716_v26  ;;  %5836 = vmatprep.mubr.bf16.mxu1 %v9716_v26 }
 0x6ef   :  { %v5233_v0 = vmul.f32 0.5, %v7143_v63 }
 0x6f0   :  { %v7145_v2 = vpop.eup %7144  ;;  %5766 = vmatpush1.bf16.msra.mxu0 %v9402_v20  ;;  %5807 = vmatpush1.bf16.msra.mxu1 %v9407_v24  ;;  %v9861_v24 = vld [vmem:[#allocation8_spill] sm:$0xff] }
 0x6f1   :  { %v5234_v3 = vadd.f32 0.5, %v5233_v0  ;;  %v5237_v55 = vmul.f32 0.5, %v7145_v2  ;;  %5767 = vmatprep.subr.bf16.mxu0 %v9414_v37  ;;  %5808 = vmatprep.subr.bf16.mxu1 %v9419_v38  ;;  %v7147_v48 = vpop.eup %7146  ;;  %v9862_v37 = vld [vmem:[#allocation9_spill] sm:$0xff]  ;;  %v9863_v38 = vld [vmem:[#allocation10_spill] sm:$0xff] }
 0x6f3   :  { %v5238_v6 = vadd.f32 0.5, %v5237_v55  ;;  %v5245_v13 = vmul.f32 %v7147_v48, %v5234_v3  ;;  %v9875_v3 = vld [vmem:[#allocation36_spill] sm:$0xff] }
 0x6f4   :  { %5768 = vmatpush1.bf16.msra.mxu0 %v9428_v8  ;;  %5809 = vmatpush1.bf16.msra.mxu1 %v9433_v16  ;;  %v7149_v8 = vpop.eup %7148  ;;  %v9864_v16 = vld [vmem:[#allocation59_spill] sm:$0xff] }
 0x6f5   :  { %v5244_v26 = vmul.f32 %v5238_v6, %v9472_v34  ;;  %5769 = vmatprep.subr.bf16.mxu0 %v9440_v7  ;;  %5810 = vmatprep.subr.bf16.mxu1 %v9445_v61  ;;  %v9865_v7 = vld [vmem:[#allocation61_spill] sm:$0xff]  ;;  %v5242_v61 = vmul.f32 0.5, %v7149_v8 }
 0x6f7   :  { %v9632_v20 = vadd.f32 %v5245_v13, %v5244_v26 }
 0x6f8   :  { %5770 = vmatpush1.bf16.msra.mxu0 %v9452_v18  ;;  %5811 = vmatpush1.bf16.msra.mxu1 %v9457_v39  ;;  %v9866_v18 = vld [vmem:[#allocation60_spill] sm:$0xff]  ;;  %v9867_v39 = vld [vmem:[#allocation62_spill] sm:$0xff] }
 0x6f9   :  { %7150 = vtanh.f32 %v9632_v20  ;;  %5771 = vmatprep.subr.bf16.mxu0 %v9465_v21  ;;  %5812 = vmatprep.subr.bf16.mxu1 %v9470_v9  ;;  %v9868_v21 = vld [vmem:[#allocation63_spill] sm:$0xff]  ;;  %v5243_v9 = vadd.f32 0.5, %v5242_v61 }
 0x6fc   :  { %5772 = vmatpush1.bf16.msra.mxu0 %v9479_v17  ;;  %5813 = vmatpush1.bf16.msra.mxu1 %v9861_v24 }
 0x6fd   :  { %5773 = vmatprep.subr.bf16.mxu0 %v9862_v37  ;;  %5814 = vmatprep.subr.bf16.mxu1 %v9863_v38  ;;  %v9876_v37 = vld [vmem:[#allocation38_spill] sm:$0xff] }
 0x700   :  { %5774 = vmatpush1.bf16.msra.mxu0 %v9864_v16  ;;  %5815 = vmatpush1.bf16.msra.mxu1 %v9865_v7 }
 0x701   :  { %5775 = vmatprep.subr.bf16.mxu0 %v9866_v18  ;;  %5816 = vmatprep.subr.bf16.mxu1 %v9867_v39 }
 0x704   :  { %5776 = vmatpush1.bf16.msra.mxu0 %v9528_v15  ;;  %5817 = vmatpush1.bf16.msra.mxu1 %v9868_v21 }
 0x705   :  { %5777 = vmatprep.subr.bf16.mxu0 %v9540_v4  ;;  %5818 = vmatprep.subr.bf16.mxu1 %v9545_v35 }
 0x706   :  { %v7151_v34 = vpop.eup %7150 }
 0x707   :  { %v5248_v17 = vmul.f32 %v7151_v34, %v5243_v9 }
 0x708   :  { %5778 = vmatpush1.bf16.msra.mxu0 %v9552_v19  ;;  %5819 = vmatpush1.bf16.msra.mxu1 %v9557_v57  ;;  %v9871_v57 = vld [vmem:[#allocation32_spill] sm:$0xff] }
 0x709   :  { %6456 = vst [vmem:[%s9681_s9 + $0x8] sm:$0xff] %v5248_v17  ;;  %v5570_v12 = vpack.c.bf16 %v5248_v17, %v5248_v17 }
 0x70b   :  { %5796 = vmatmul.mubr.bf16.vlgmr.msra.gmra.mxu0 %v5570_v12  ;;  %5837 = vmatmul.mubr.bf16.vlgmr.msra.gmra.mxu1 %v5570_v12 }
 0x7ab   :  { %v5492_v15 = vpop.f32.mrf.mxu0  ;;  %v5533_v52 = vpop.f32.mrf.mxu1 }
 0x7ac   :  { %v5540_v11 = vadd.f32 %v5492_v15, %v9869_v53  ;;  %v5542_v22 = vadd.f32 %v5533_v52, %v9871_v57 }
 0x7ad   :  { %v5494_v4 = vpop.f32.mrf.mxu0  ;;  %v5535_v25 = vpop.f32.mrf.mxu1 }
 0x7ae   :  { %v5544_v35 = vmul.f32 0.5, %v5540_v11  ;;  %v5541_v40 = vadd.f32 %v5494_v4, %v9870_v41  ;;  %v5543_v32 = vadd.f32 %v5535_v25, %v9872_v28 }
 0x7af   :  { %v5496_v46 = vpop.f32.mrf.mxu0  ;;  %v5537_v19 = vpop.f32.mrf.mxu1 }
 0x7b0   :  { %7152 = vtanh.f32 %v5544_v35  ;;  %v5548_v5 = vmul.f32 0.5, %v5541_v40  ;;  %v5553_v31 = vmul.f32 0.5, %v5543_v32 }
 0x7b1   :  { %v5497_v36 = vpop.f32.mrf.mxu0  ;;  %v5538_v29 = vpop.f32.mrf.mxu1 }
 0x7b2   :  { %7154 = vtanh.f32 %v5548_v5 }
 0x7b3   :  { %7156 = vtanh.f32 %v5542_v22 }
 0x7b4   :  { %7158 = vtanh.f32 %v5553_v31 }
 0x7bd   :  { %v7153_v10 = vpop.eup %7152 }
 0x7be   :  { %v5546_v30 = vmul.f32 0.5, %v7153_v10 }
 0x7bf   :  { %v7155_v54 = vpop.eup %7154 }
 0x7c0   :  { %v5547_v23 = vadd.f32 0.5, %v5546_v30  ;;  %v5550_v49 = vmul.f32 0.5, %v7155_v54  ;;  %v7157_v56 = vpop.eup %7156 }
 0x7c1   :  { %v7159_v58 = vpop.eup %7158 }
 0x7c2   :  { %v5551_v14 = vadd.f32 0.5, %v5550_v49  ;;  %v5558_v42 = vmul.f32 %v7157_v56, %v5547_v23  ;;  %v5555_v2 = vmul.f32 0.5, %v7159_v58 }
 0x7c4   :  { %v5557_v45 = vmul.f32 %v5551_v14, %v9607_v47  ;;  %v5556_v13 = vadd.f32 0.5, %v5555_v2 }
 0x7c6   :  { %v5559_v50 = vadd.f32 %v5558_v42, %v5557_v45 }
 0x7c8   :  { %7160 = vtanh.f32 %v5559_v50 }
 0x7cb   :  { %v5797_v33 = vpop.f32.mrf.mxu0  ;;  %v5838_v43 = vpop.f32.mrf.mxu1 }
 0x7cc   :  { %v5845_v51 = vadd.f32 %v5797_v33, %v9873_v44  ;;  %v5847_v55 = vadd.f32 %v5838_v43, %v9875_v3 }
 0x7cd   :  { %v5799_v1 = vpop.f32.mrf.mxu0  ;;  %v5840_v59 = vpop.f32.mrf.mxu1 }
 0x7ce   :  { %v5849_v60 = vmul.f32 0.5, %v5845_v51  ;;  %v5846_v62 = vadd.f32 %v5799_v1, %v9874_v27  ;;  %v5848_v38 = vadd.f32 %v5840_v59, %v9876_v37 }
 0x7cf   :  { %v5801_v63 = vpop.f32.mrf.mxu0  ;;  %v5842_v0 = vpop.f32.mrf.mxu1 }
 0x7d0   :  { %7162 = vtanh.f32 %v5849_v60  ;;  %v5853_v48 = vmul.f32 0.5, %v5846_v62  ;;  %v5858_v8 = vmul.f32 0.5, %v5848_v38 }
 0x7d1   :  { %v5802_v47 = vpop.f32.mrf.mxu0  ;;  %v5843_v6 = vpop.f32.mrf.mxu1 }
 0x7d2   :  { %7164 = vtanh.f32 %v5853_v48 }
 0x7d3   :  { %7166 = vtanh.f32 %v5847_v55 }
 0x7d4   :  { %7168 = vtanh.f32 %v5858_v8 }
 0x7d5   :  { %v7161_v26 = vpop.eup %7160 }
 0x7d6   :  { %v5561_v24 = vmul.f32 %v7161_v26, %v5556_v13 }
 0x7d8   :  { %6521 = vst [vmem:[%s9680_s8 + $0x38] sm:$0xff] %v5561_v24 }
 0x7dd   :  { %v7163_v16 = vpop.eup %7162 }
 0x7de   :  { %v5851_v7 = vmul.f32 0.5, %v7163_v16 }
 0x7df   :  { %v7165_v61 = vpop.eup %7164 }
 0x7e0   :  { %v5852_v18 = vadd.f32 0.5, %v5851_v7  ;;  %v5855_v39 = vmul.f32 0.5, %v7165_v61  ;;  %v7167_v21 = vpop.eup %7166 }
 0x7e1   :  { %v7169_v15 = vpop.eup %7168 }
 0x7e2   :  { %v5856_v9 = vadd.f32 0.5, %v5855_v39  ;;  %v5863_v34 = vmul.f32 %v7167_v21, %v5852_v18  ;;  %v5860_v52 = vmul.f32 0.5, %v7169_v15 }
 0x7e4   :  { %v5862_v17 = vmul.f32 %v5856_v9, %v9632_v20  ;;  %v5861_v53 = vadd.f32 0.5, %v5860_v52 }
 0x7e6   :  { %v5864_v12 = vadd.f32 %v5863_v34, %v5862_v17 }
 0x7e8   :  { %7170 = vtanh.f32 %v5864_v12 }
 0x7f5   :  { %v7171_v11 = vpop.eup %7170 }
 0x7f6   :  { %v5866_v4 = vmul.f32 %v7171_v11, %v5861_v53 }
 0x7f8   :  { %5869 = vst [vmem:[%s9681_s9] sm:$0xff] %v5866_v4 }

</bundles_post_ra>
